<compile_context>
chip_gen: v7x
topology: tpu7x:2x2x1
jax: 0.10.0
libtpu: 0.0.40
codegen_flags: <defaults>
</compile_context>

<pallas_src>
import jax
import jax.numpy as jnp
from jax import lax
from jax.experimental import pallas as pl
from jax.experimental.pallas import tpu as pltpu

HIDDEN = 64
HIDDEN_PAD = 128   # pad H 64 -> 128: each gate slice == one full 128-lane row
SUBLANES = 8       # batch tiles are multiples of 8 sublanes
NUM_LAYERS = 2


def _lstm_kernel(x_ref, wih0_ref, b0_ref, whh0_ref, w1_ref, b1_ref,
                 wfc_ref, bfc_ref, out_ref,
                 xp_ref, h0_ref, c0_ref, h1_ref, c1_ref):
    BT = out_ref.shape[0]            # batch rows in this block
    TB = x_ref.shape[0]              # Tc * BT rows in this time chunk
    TC = TB // BT                    # time steps in this chunk
    Hp = whh0_ref.shape[0]           # padded hidden (128)
    c_idx = pl.program_id(1)

    # (Re)initialize the recurrent state at the first time-chunk of each batch
    # block (h == c == 0 at t == 0).
    @pl.when(c_idx == 0)
    def _():
        z = jnp.zeros((BT, Hp), jnp.float32)
        h0_ref[...] = z
        c0_ref[...] = z
        h1_ref[...] = z
        c1_ref[...] = z

    # Hoisted layer-0 input projection for THIS chunk only: one MXU matmul
    # covering Tc steps.  Only h0 @ whh0 remains inside the recurrence.
    xp_ref[...] = (jnp.dot(x_ref[...], wih0_ref[...],
                           preferred_element_type=jnp.float32) + b0_ref[...])

    whh0 = whh0_ref[...]
    w1 = w1_ref[...]                                     # stacked [wih1; whh1]
    b1 = jnp.broadcast_to(b1_ref[...], (BT, 4 * Hp))     # hoisted broadcast

    def gates(g):
        # Gate slices are 128-lane aligned thanks to the H->128 padding.
        i = jax.nn.sigmoid(g[:, 0 * Hp:1 * Hp])
        f = jax.nn.sigmoid(g[:, 1 * Hp:2 * Hp])
        gg = jnp.tanh(g[:, 2 * Hp:3 * Hp])
        o = jax.nn.sigmoid(g[:, 3 * Hp:4 * Hp])
        return i, f, gg, o

    def layer0(row, h0, c0):
        g0 = xp_ref[pl.ds(row, BT), :] + jnp.dot(
            h0, whh0, preferred_element_type=jnp.float32)
        i, f, gg, o = gates(g0)
        c0 = f * c0 + i * gg
        return o * jnp.tanh(c0), c0

    # TODO(synk): nn.LSTM(dropout=0.2) between layers is identity in eval mode;
    # training-mode dropout is intentionally not applied here.
    def layer1(h0, h1, c1):
        g1 = jnp.dot(jnp.concatenate([h0, h1], axis=-1), w1,
                     preferred_element_type=jnp.float32) + b1
        i, f, gg, o = gates(g1)
        c1 = f * c1 + i * gg
        return o * jnp.tanh(c1), c1

    h0 = h0_ref[...]
    c0 = c0_ref[...]
    h1 = h1_ref[...]
    c1 = c1_ref[...]

    # Layer-0 for the first local step of the chunk (its xp rows are in VMEM).
    h0, c0 = layer0(0, h0, c0)

    # Wavefront: layer-1(step t) needs (h0(t), h1(t-1)); layer-0(step t+1)
    # needs (h0(t), c0(t)) -- the two are independent inside one iteration, so
    # their MXU / EUP work overlaps instead of chaining.
    def wave(t, carry):
        h0, c0, h1, c1 = carry
        h1n, c1n = layer1(h0, h1, c1)
        row = pl.multiple_of((t + 1) * BT, BT)
        h0n, c0n = layer0(row, h0, c0)
        return h0n, c0n, h1n, c1n

    unroll = True if TC <= 16 else 8
    h0, c0, h1, c1 = lax.fori_loop(0, TC - 1, wave, (h0, c0, h1, c1),
                                   unroll=unroll)

    # Trailing layer-1 for the last local step of the chunk.
    h1, c1 = layer1(h0, h1, c1)

    # Persist the state for the next chunk.
    h0_ref[...] = h0
    c0_ref[...] = c0
    h1_ref[...] = h1
    c1_ref[...] = c1

    # Final FC(H,1) + sigmoid only after the last chunk: VPU multiply + lane
    # reduction (skip a lane-sparse N=1 MXU matmul).
    @pl.when(c_idx == pl.num_programs(1) - 1)
    def _():
        logits = (jnp.sum(h1 * wfc_ref[...], axis=-1, keepdims=True)
                  + bfc_ref[...])
        out_ref[...] = jax.nn.sigmoid(logits)


def _pad_gates(w, h, hp):
    """Pad each of the 4 gate blocks ([i,f,g,o] order) along the last axis."""
    parts = [w[..., k * h:(k + 1) * h] for k in range(4)]
    pad = [(0, 0)] * (w.ndim - 1) + [(0, hp - h)]
    return jnp.concatenate([jnp.pad(p, pad) for p in parts], axis=-1)


def _pack_params(params, hidden=HIDDEN, hp=HIDDEN_PAD):
    """Zero-pad H->Hp (gate-aware) and pre-stack the layer-1 weights."""
    h = hidden

    def pad_rows(w):
        return jnp.pad(w, ((0, hp - h), (0, 0)))

    # TODO(synk): cut the ~2x H-padding waste on the serial path (dense 64-lane
    # state + sigmoid-via-tanh + pltpu.roll packing) once a bundle dump shows
    # which slot binds.
    wih0 = _pad_gates(params["wih0"], h, hp)                    # (D, 4Hp)
    whh0 = pad_rows(_pad_gates(params["whh0"], h, hp))          # (Hp, 4Hp)
    b0 = _pad_gates(params["b0"], h, hp)                        # (1, 4Hp)
    wih1 = pad_rows(_pad_gates(params["wih1"], h, hp))          # (Hp, 4Hp)
    whh1 = pad_rows(_pad_gates(params["whh1"], h, hp))          # (Hp, 4Hp)
    w1 = jnp.concatenate([wih1, whh1], axis=0)                  # (2Hp, 4Hp)
    b1 = _pad_gates(params["b1"], h, hp)                        # (1, 4Hp)
    wfc = jnp.pad(params["wfc"].T, ((0, 0), (0, hp - h)))       # (1, Hp)
    bfc = params["bfc"]                                         # (1, 1)
    return wih0, whh0, b0, w1, b1, wfc, bfc


def _pick_chunk(T, target):
    """Largest divisor of T that is <= target (keeps T % Tc == 0)."""
    # TODO(synk): handle non-dividing chunk sizes via per-step validity masking
    # instead of shrinking Tc (matters only for large prime-ish T).
    tc = max(1, min(T, target))
    while T % tc:
        tc -= 1
    return tc


def _vmem_limit_bytes(TC, BT, D, Hp):
    f32 = 4
    x_blk = TC * BT * D * f32
    weights = (D * 4 * Hp + Hp * 4 * Hp + 2 * Hp * 4 * Hp
               + 2 * 4 * Hp + Hp + 1) * f32
    out_blk = BT * 1 * f32
    scratch = (TC * BT * 4 * Hp + 4 * BT * Hp) * f32
    total = 2 * (x_blk + weights + out_blk) + scratch   # in/out double-buffered
    return int(min(max(2 * total + (2 << 20), 8 << 20), 64 << 20))


def byzantine_lstm_forward(x, params, *, chunk_target=32):
    """x: (B, T, D) float32, batch_first like the PyTorch module. Returns (B, 1)."""
    B, T, D = x.shape
    Hp = HIDDEN_PAD

    # Batch tiling: >= 2 blocks when batch allows, so v7x's two TensorCores can
    # each run an independent shard of the recurrence ("parallel" axis).
    Bp0 = ((B + SUBLANES - 1) // SUBLANES) * SUBLANES
    NB = 1 if Bp0 <= SUBLANES else 2
    BT = ((-(-Bp0 // NB)) + SUBLANES - 1) // SUBLANES * SUBLANES
    Bp = NB * BT

    # Time chunking: stream x and compute the x-projection per chunk.
    TC = _pick_chunk(T, chunk_target)
    NC = T // TC

    x = x.astype(jnp.float32)
    x_tm = jnp.transpose(x, (1, 0, 2))                       # (T, B, D)
    x_tm = jnp.pad(x_tm, ((0, 0), (0, Bp - B), (0, 0)))      # (T, Bp, D)
    # Layout plumbing so each (batch-block, chunk) is one lane-dense slab of
    # (TC*BT, D) rows (row = local_t * BT + local_b).
    x_blk = x_tm.reshape(NC, TC, NB, BT, D)
    x_blk = jnp.transpose(x_blk, (2, 0, 1, 3, 4))            # (NB, NC, TC, BT, D)
    x_blk = x_blk.reshape(NB, NC, TC * BT, D)

    wih0, whh0, b0, w1, b1, wfc, bfc = _pack_params(params)

    def _const_spec(shape):
        nd = len(shape)
        return pl.BlockSpec(shape, lambda b, c, _n=nd: (0,) * _n)

    grid_spec = pltpu.PrefetchScalarGridSpec(
        num_scalar_prefetch=0,
        grid=(NB, NC),
        in_specs=[
            pl.BlockSpec((None, None, TC * BT, D), lambda b, c: (b, c, 0, 0)),
            _const_spec((D, 4 * Hp)),       # wih0
            _const_spec((1, 4 * Hp)),       # b0
            _const_spec((Hp, 4 * Hp)),      # whh0
            _const_spec((2 * Hp, 4 * Hp)),  # w1
            _const_spec((1, 4 * Hp)),       # b1
            _const_spec((1, Hp)),           # wfc
            _const_spec((1, 1)),            # bfc
        ],
        out_specs=pl.BlockSpec((BT, 1), lambda b, c: (b, 0)),
        scratch_shapes=[
            pltpu.VMEM((TC * BT, 4 * Hp), jnp.float32),   # per-chunk x-projection
            pltpu.VMEM((BT, Hp), jnp.float32),            # h0
            pltpu.VMEM((BT, Hp), jnp.float32),            # c0
            pltpu.VMEM((BT, Hp), jnp.float32),            # h1
            pltpu.VMEM((BT, Hp), jnp.float32),            # c1
        ],
    )

    flops = int(2 * T * Bp * 4 * Hp * (D + Hp + 2 * Hp) + 2 * Bp * Hp)
    transcendentals = int(10 * T * Bp * Hp + Bp)
    bytes_accessed = int(4 * (T * Bp * D + D * 4 * Hp + Hp * 4 * Hp
                              + 2 * Hp * 4 * Hp + 8 * Hp + Hp + 1 + Bp))

    out = pl.pallas_call(
        _lstm_kernel,
        out_shape=jax.ShapeDtypeStruct((Bp, 1), jnp.float32),
        grid_spec=grid_spec,
        compiler_params=pltpu.CompilerParams(
            dimension_semantics=("parallel", "arbitrary"),
            vmem_limit_bytes=_vmem_limit_bytes(TC, BT, D, Hp)),
        cost_estimate=pl.CostEstimate(flops=flops,
                                      transcendentals=transcendentals,
                                      bytes_accessed=bytes_accessed),
    )(x_blk, wih0, b0, whh0, w1, b1, wfc, bfc)
    return out[:B]


def init_params(key, input_size, hidden=HIDDEN):
    """Deterministic init mimicking PyTorch's U(-1/sqrt(H), 1/sqrt(H))."""
    k = 1.0 / float(jnp.sqrt(float(hidden)))
    keys = jax.random.split(key, 10)

    def u(kk, shape):
        return jax.random.uniform(kk, shape, jnp.float32, -k, k)

    return dict(
        # PyTorch weight_ih_l0 is (4H, D); we store the transpose (D, 4H).
        wih0=u(keys[0], (input_size, 4 * hidden)),
        whh0=u(keys[1], (hidden, 4 * hidden)),
        b0=u(keys[2], (1, 4 * hidden)) + u(keys[3], (1, 4 * hidden)),   # b_ih + b_hh
        wih1=u(keys[4], (hidden, 4 * hidden)),
        whh1=u(keys[5], (hidden, 4 * hidden)),
        b1=u(keys[6], (1, 4 * hidden)) + u(keys[7], (1, 4 * hidden)),
        wfc=u(keys[8], (hidden, 1)),
        bfc=u(keys[9], (1, 1)),
    )


def _reference_forward(x, params, hidden=HIDDEN):
    """Pure-JAX reference of the same LSTM math (unpadded, for correctness)."""
    B, T, _ = x.shape
    H = hidden

    def cell(x_t, h, c, wih, whh, b):
        g = x_t @ wih + h @ whh + b
        i = jax.nn.sigmoid(g[:, :H])
        f = jax.nn.sigmoid(g[:, H:2 * H])
        gg = jnp.tanh(g[:, 2 * H:3 * H])
        o = jax.nn.sigmoid(g[:, 3 * H:])
        c = f * c + i * gg
        return o * jnp.tanh(c), c

    h0 = c0 = h1 = c1 = jnp.zeros((B, H), jnp.float32)
    for t in range(T):
        h0, c0 = cell(x[:, t, :], h0, c0, params["wih0"], params["whh0"], params["b0"])
        h1, c1 = cell(h0, h1, c1, params["wih1"], params["whh1"], params["b1"])
    return jax.nn.sigmoid(h1 @ params["wfc"] + params["bfc"])


if __name__ == "__main__":
    key = jax.random.PRNGKey(0)
    k_x, k_p, k_x2 = jax.random.split(key, 3)

    B, T, D = 2, 8, 16
    x = jax.random.normal(k_x, (B, T, D), jnp.float32)
    params = init_params(k_p, input_size=D, hidden=HIDDEN)

    out = jax.block_until_ready(byzantine_lstm_forward(x, params))
    ref = _reference_forward(x, params)
    assert out.shape == (B, 1)
    assert bool(jnp.all(jnp.isfinite(out)))
    assert bool(jnp.allclose(out, ref, atol=2e-5, rtol=1e-5))

    # Also exercise the chunked-T / multi-batch-block grid path.
    B2, T2 = 10, 8
    x2 = jax.random.normal(k_x2, (B2, T2, D), jnp.float32)
    out2 = jax.block_until_ready(
        byzantine_lstm_forward(x2, params, chunk_target=4))
    ref2 = _reference_forward(x2, params)
    assert out2.shape == (B2, 1)
    assert bool(jnp.all(jnp.isfinite(out2)))
    assert bool(jnp.allclose(out2, ref2, atol=2e-5, rtol=1e-5))

    print("KERNEL_OK")
</pallas_src>

<mosaic_0001>
module attributes {stable_mosaic.version = 11 : i64} {
  func.func @_lstm_kernel(%arg0: i32, %arg1: i32, %arg2: memref<1x1x64x16xf32, #tpu.memory_space<vmem>>, %arg3: memref<16x512xf32, #tpu.memory_space<vmem>>, %arg4: memref<1x512xf32, #tpu.memory_space<vmem>>, %arg5: memref<128x512xf32, #tpu.memory_space<vmem>>, %arg6: memref<256x512xf32, #tpu.memory_space<vmem>>, %arg7: memref<1x512xf32, #tpu.memory_space<vmem>>, %arg8: memref<1x128xf32, #tpu.memory_space<vmem>>, %arg9: memref<1x1xf32, #tpu.memory_space<vmem>>, %arg10: memref<8x1xf32, #tpu.memory_space<vmem>>, %arg11: memref<64x512xf32, #tpu.memory_space<vmem>>, %arg12: memref<8x128xf32, #tpu.memory_space<vmem>>, %arg13: memref<8x128xf32, #tpu.memory_space<vmem>>, %arg14: memref<8x128xf32, #tpu.memory_space<vmem>>, %arg15: memref<8x128xf32, #tpu.memory_space<vmem>>) attributes {dimension_semantics = [#tpu.dimension_semantics<parallel>, #tpu.dimension_semantics<arbitrary>], iteration_bounds = array<i64: 1, 1>, scalar_prefetch = 0 : i64, scratch_operands = 5 : i64, tpu.core_type = #tpu.core_type<tc>, window_params = [{transform_indices = @transform_0, window_bounds = array<i64: 1, 1, 64, 16>}, {pipeline_mode = #tpu.pipeline_mode<synchronous>, transform_indices = @transform_1, window_bounds = array<i64: 16, 512>}, {pipeline_mode = #tpu.pipeline_mode<synchronous>, transform_indices = @transform_2, window_bounds = array<i64: 1, 512>}, {pipeline_mode = #tpu.pipeline_mode<synchronous>, transform_indices = @transform_3, window_bounds = array<i64: 128, 512>}, {pipeline_mode = #tpu.pipeline_mode<synchronous>, transform_indices = @transform_4, window_bounds = array<i64: 256, 512>}, {pipeline_mode = #tpu.pipeline_mode<synchronous>, transform_indices = @transform_5, window_bounds = array<i64: 1, 512>}, {pipeline_mode = #tpu.pipeline_mode<synchronous>, transform_indices = @transform_6, window_bounds = array<i64: 1, 128>}, {pipeline_mode = #tpu.pipeline_mode<synchronous>, transform_indices = @transform_7, window_bounds = array<i64: 1, 1>}, {transform_indices = @transform_8, window_bounds = array<i64: 8, 1>}]} {
    %c0_i32 = arith.constant 0 : i32
    %0 = arith.cmpi eq, %arg1, %c0_i32 : i32
    %1 = arith.extui %0 : i1 to i32
    %c0_i32_0 = arith.constant 0 : i32
    %2 = arith.cmpi ne, %1, %c0_i32_0 : i32
    scf.if %2 {
      %cst_121 = arith.constant 0.000000e+00 : f32
      %503 = vector.broadcast %cst_121 : f32 to vector<8x128xf32>
      %c0_122 = arith.constant 0 : index
      %c0_123 = arith.constant 0 : index
      %504 = vector.load %arg12[%c0_122, %c0_123] : memref<8x128xf32, #tpu.memory_space<vmem>>, vector<8x128xf32>
      tpu.vector_store %arg12[%c0_122, %c0_123], %503 {strides = array<i32>} : memref<8x128xf32, #tpu.memory_space<vmem>>, vector<8x128xf32>,
      %c0_124 = arith.constant 0 : index
      %c0_125 = arith.constant 0 : index
      %505 = vector.load %arg13[%c0_124, %c0_125] : memref<8x128xf32, #tpu.memory_space<vmem>>, vector<8x128xf32>
      tpu.vector_store %arg13[%c0_124, %c0_125], %503 {strides = array<i32>} : memref<8x128xf32, #tpu.memory_space<vmem>>, vector<8x128xf32>,
      %c0_126 = arith.constant 0 : index
      %c0_127 = arith.constant 0 : index
      %506 = vector.load %arg14[%c0_126, %c0_127] : memref<8x128xf32, #tpu.memory_space<vmem>>, vector<8x128xf32>
      tpu.vector_store %arg14[%c0_126, %c0_127], %503 {strides = array<i32>} : memref<8x128xf32, #tpu.memory_space<vmem>>, vector<8x128xf32>,
      %c0_128 = arith.constant 0 : index
      %c0_129 = arith.constant 0 : index
      %507 = vector.load %arg15[%c0_128, %c0_129] : memref<8x128xf32, #tpu.memory_space<vmem>>, vector<8x128xf32>
      tpu.vector_store %arg15[%c0_128, %c0_129], %503 {strides = array<i32>} : memref<8x128xf32, #tpu.memory_space<vmem>>, vector<8x128xf32>,
    } else {
    }
    %c0 = arith.constant 0 : index
    %c0_1 = arith.constant 0 : index
    %c0_2 = arith.constant 0 : index
    %c0_3 = arith.constant 0 : index
    %3 = vector.load %arg2[%c0, %c0_1, %c0_2, %c0_3] : memref<1x1x64x16xf32, #tpu.memory_space<vmem>>, vector<1x1x64x16xf32>
    %4 = vector.shape_cast %3 : vector<1x1x64x16xf32> to vector<64x16xf32>
    %c0_4 = arith.constant 0 : index
    %c0_5 = arith.constant 0 : index
    %5 = vector.load %arg3[%c0_4, %c0_5] : memref<16x512xf32, #tpu.memory_space<vmem>>, vector<16x512xf32>
    %cst = arith.constant dense<0.000000e+00> : vector<64x512xf32>
    %6 = tpu.matmul %4, %5, %cst {dimension_numbers = #tpu.dot_dimension_numbers<[1], [0], [0], [1], [0, 0, 1, 1], [], []>} : vector<64x16xf32>, vector<16x512xf32>, vector<64x512xf32> -> vector<64x512xf32>
    %c0_6 = arith.constant 0 : index
    %c0_7 = arith.constant 0 : index
    %7 = vector.load %arg4[%c0_6, %c0_7] : memref<1x512xf32, #tpu.memory_space<vmem>>, vector<1x512xf32>
    %8 = vector.broadcast %7 : vector<1x512xf32> to vector<64x512xf32>
    %9 = arith.addf %6, %8 : vector<64x512xf32>
    %c0_8 = arith.constant 0 : index
    %c0_9 = arith.constant 0 : index
    %10 = vector.load %arg11[%c0_8, %c0_9] : memref<64x512xf32, #tpu.memory_space<vmem>>, vector<64x512xf32>
    tpu.vector_store %arg11[%c0_8, %c0_9], %9 {strides = array<i32>} : memref<64x512xf32, #tpu.memory_space<vmem>>, vector<64x512xf32>,
    %c0_10 = arith.constant 0 : index
    %c0_11 = arith.constant 0 : index
    %11 = vector.load %arg5[%c0_10, %c0_11] : memref<128x512xf32, #tpu.memory_space<vmem>>, vector<128x512xf32>
    %c0_12 = arith.constant 0 : index
    %c0_13 = arith.constant 0 : index
    %12 = vector.load %arg6[%c0_12, %c0_13] : memref<256x512xf32, #tpu.memory_space<vmem>>, vector<256x512xf32>
    %c0_14 = arith.constant 0 : index
    %c0_15 = arith.constant 0 : index
    %13 = vector.load %arg7[%c0_14, %c0_15] : memref<1x512xf32, #tpu.memory_space<vmem>>, vector<1x512xf32>
    %14 = vector.shape_cast %13 : vector<1x512xf32> to vector<1x512xf32>
    %15 = vector.broadcast %14 : vector<1x512xf32> to vector<8x512xf32>
    %c0_16 = arith.constant 0 : index
    %c0_17 = arith.constant 0 : index
    %16 = vector.load %arg12[%c0_16, %c0_17] : memref<8x128xf32, #tpu.memory_space<vmem>>, vector<8x128xf32>
    %c0_18 = arith.constant 0 : index
    %c0_19 = arith.constant 0 : index
    %17 = vector.load %arg13[%c0_18, %c0_19] : memref<8x128xf32, #tpu.memory_space<vmem>>, vector<8x128xf32>
    %c0_20 = arith.constant 0 : index
    %c0_21 = arith.constant 0 : index
    %18 = vector.load %arg14[%c0_20, %c0_21] : memref<8x128xf32, #tpu.memory_space<vmem>>, vector<8x128xf32>
    %c0_22 = arith.constant 0 : index
    %c0_23 = arith.constant 0 : index
    %19 = vector.load %arg15[%c0_22, %c0_23] : memref<8x128xf32, #tpu.memory_space<vmem>>, vector<8x128xf32>
    %c0_24 = arith.constant 0 : index
    %c0_25 = arith.constant 0 : index
    %20 = vector.load %arg11[%c0_24, %c0_25] : memref<64x512xf32, #tpu.memory_space<vmem>>, vector<8x512xf32>
    %cst_26 = arith.constant dense<0.000000e+00> : vector<8x512xf32>
    %21 = tpu.matmul %16, %11, %cst_26 {dimension_numbers = #tpu.dot_dimension_numbers<[1], [0], [0], [1], [0, 0, 1, 1], [], []>} : vector<8x128xf32>, vector<128x512xf32>, vector<8x512xf32> -> vector<8x512xf32>
    %22 = arith.addf %20, %21 : vector<8x512xf32>
    %23 = vector.extract_strided_slice %22 {offsets = [0, 0], sizes = [8, 128], strides = [1, 1]} : vector<8x512xf32> to vector<8x128xf32>
    %24 = arith.negf %23 : vector<8x128xf32>
    %25 = math.exp %24 : vector<8x128xf32>
    %cst_27 = arith.constant 1.000000e+00 : f32
    %26 = vector.broadcast %cst_27 : f32 to vector<8x128xf32>
    %27 = arith.addf %26, %25 : vector<8x128xf32>
    %28 = arith.divf %26, %27 : vector<8x128xf32>
    %29 = vector.extract_strided_slice %22 {offsets = [0, 128], sizes = [8, 128], strides = [1, 1]} : vector<8x512xf32> to vector<8x128xf32>
    %30 = arith.negf %29 : vector<8x128xf32>
    %31 = math.exp %30 : vector<8x128xf32>
    %cst_28 = arith.constant 1.000000e+00 : f32
    %32 = vector.broadcast %cst_28 : f32 to vector<8x128xf32>
    %33 = arith.addf %32, %31 : vector<8x128xf32>
    %34 = arith.divf %32, %33 : vector<8x128xf32>
    %35 = vector.extract_strided_slice %22 {offsets = [0, 256], sizes = [8, 128], strides = [1, 1]} : vector<8x512xf32> to vector<8x128xf32>
    %36 = math.tanh %35 : vector<8x128xf32>
    %37 = vector.extract_strided_slice %22 {offsets = [0, 384], sizes = [8, 128], strides = [1, 1]} : vector<8x512xf32> to vector<8x128xf32>
    %38 = arith.negf %37 : vector<8x128xf32>
    %39 = math.exp %38 : vector<8x128xf32>
    %cst_29 = arith.constant 1.000000e+00 : f32
    %40 = vector.broadcast %cst_29 : f32 to vector<8x128xf32>
    %41 = arith.addf %40, %39 : vector<8x128xf32>
    %42 = arith.divf %40, %41 : vector<8x128xf32>
    %43 = arith.mulf %34, %17 : vector<8x128xf32>
    %44 = arith.mulf %28, %36 : vector<8x128xf32>
    %45 = arith.addf %43, %44 : vector<8x128xf32>
    %46 = math.tanh %45 : vector<8x128xf32>
    %47 = arith.mulf %42, %46 : vector<8x128xf32>
    %c0_i32_30 = arith.constant 0 : i32
    %48 = tpu.concatenate %47, %18 in 1 : vector<8x128xf32>, vector<8x128xf32> -> vector<8x256xf32>
    %cst_31 = arith.constant dense<0.000000e+00> : vector<8x512xf32>
    %49 = tpu.matmul %48, %12, %cst_31 {dimension_numbers = #tpu.dot_dimension_numbers<[1], [0], [0], [1], [0, 0, 1, 1], [], []>} : vector<8x256xf32>, vector<256x512xf32>, vector<8x512xf32> -> vector<8x512xf32>
    %50 = arith.addf %49, %15 : vector<8x512xf32>
    %51 = vector.extract_strided_slice %50 {offsets = [0, 0], sizes = [8, 128], strides = [1, 1]} : vector<8x512xf32> to vector<8x128xf32>
    %52 = arith.negf %51 : vector<8x128xf32>
    %53 = math.exp %52 : vector<8x128xf32>
    %cst_32 = arith.constant 1.000000e+00 : f32
    %54 = vector.broadcast %cst_32 : f32 to vector<8x128xf32>
    %55 = arith.addf %54, %53 : vector<8x128xf32>
    %56 = arith.divf %54, %55 : vector<8x128xf32>
    %57 = vector.extract_strided_slice %50 {offsets = [0, 128], sizes = [8, 128], strides = [1, 1]} : vector<8x512xf32> to vector<8x128xf32>
    %58 = arith.negf %57 : vector<8x128xf32>
    %59 = math.exp %58 : vector<8x128xf32>
    %cst_33 = arith.constant 1.000000e+00 : f32
    %60 = vector.broadcast %cst_33 : f32 to vector<8x128xf32>
    %61 = arith.addf %60, %59 : vector<8x128xf32>
    %62 = arith.divf %60, %61 : vector<8x128xf32>
    %63 = vector.extract_strided_slice %50 {offsets = [0, 256], sizes = [8, 128], strides = [1, 1]} : vector<8x512xf32> to vector<8x128xf32>
    %64 = math.tanh %63 : vector<8x128xf32>
    %65 = vector.extract_strided_slice %50 {offsets = [0, 384], sizes = [8, 128], strides = [1, 1]} : vector<8x512xf32> to vector<8x128xf32>
    %66 = arith.negf %65 : vector<8x128xf32>
    %67 = math.exp %66 : vector<8x128xf32>
    %cst_34 = arith.constant 1.000000e+00 : f32
    %68 = vector.broadcast %cst_34 : f32 to vector<8x128xf32>
    %69 = arith.addf %68, %67 : vector<8x128xf32>
    %70 = arith.divf %68, %69 : vector<8x128xf32>
    %71 = arith.mulf %62, %19 : vector<8x128xf32>
    %72 = arith.mulf %56, %64 : vector<8x128xf32>
    %73 = arith.addf %71, %72 : vector<8x128xf32>
    %74 = math.tanh %73 : vector<8x128xf32>
    %75 = arith.mulf %70, %74 : vector<8x128xf32>
    %c1_i32 = arith.constant 1 : i32
    %76 = arith.addi %c0_i32_30, %c1_i32 : i32
    %c8_i32 = arith.constant 8 : i32
    %77 = arith.muli %76, %c8_i32 : i32
    %78 = tpu.assume_multiple %77, 8 : i32
    %79 = arith.index_cast %78 : i32 to index
    %c0_35 = arith.constant 0 : index
    %80 = vector.load %arg11[%79, %c0_35] : memref<64x512xf32, #tpu.memory_space<vmem>>, vector<8x512xf32>
    %cst_36 = arith.constant dense<0.000000e+00> : vector<8x512xf32>
    %81 = tpu.matmul %47, %11, %cst_36 {dimension_numbers = #tpu.dot_dimension_numbers<[1], [0], [0], [1], [0, 0, 1, 1], [], []>} : vector<8x128xf32>, vector<128x512xf32>, vector<8x512xf32> -> vector<8x512xf32>
    %82 = arith.addf %80, %81 : vector<8x512xf32>
    %83 = vector.extract_strided_slice %82 {offsets = [0, 0], sizes = [8, 128], strides = [1, 1]} : vector<8x512xf32> to vector<8x128xf32>
    %84 = arith.negf %83 : vector<8x128xf32>
    %85 = math.exp %84 : vector<8x128xf32>
    %cst_37 = arith.constant 1.000000e+00 : f32
    %86 = vector.broadcast %cst_37 : f32 to vector<8x128xf32>
    %87 = arith.addf %86, %85 : vector<8x128xf32>
    %88 = arith.divf %86, %87 : vector<8x128xf32>
    %89 = vector.extract_strided_slice %82 {offsets = [0, 128], sizes = [8, 128], strides = [1, 1]} : vector<8x512xf32> to vector<8x128xf32>
    %90 = arith.negf %89 : vector<8x128xf32>
    %91 = math.exp %90 : vector<8x128xf32>
    %cst_38 = arith.constant 1.000000e+00 : f32
    %92 = vector.broadcast %cst_38 : f32 to vector<8x128xf32>
    %93 = arith.addf %92, %91 : vector<8x128xf32>
    %94 = arith.divf %92, %93 : vector<8x128xf32>
    %95 = vector.extract_strided_slice %82 {offsets = [0, 256], sizes = [8, 128], strides = [1, 1]} : vector<8x512xf32> to vector<8x128xf32>
    %96 = math.tanh %95 : vector<8x128xf32>
    %97 = vector.extract_strided_slice %82 {offsets = [0, 384], sizes = [8, 128], strides = [1, 1]} : vector<8x512xf32> to vector<8x128xf32>
    %98 = arith.negf %97 : vector<8x128xf32>
    %99 = math.exp %98 : vector<8x128xf32>
    %cst_39 = arith.constant 1.000000e+00 : f32
    %100 = vector.broadcast %cst_39 : f32 to vector<8x128xf32>
    %101 = arith.addf %100, %99 : vector<8x128xf32>
    %102 = arith.divf %100, %101 : vector<8x128xf32>
    %103 = arith.mulf %94, %45 : vector<8x128xf32>
    %104 = arith.mulf %88, %96 : vector<8x128xf32>
    %105 = arith.addf %103, %104 : vector<8x128xf32>
    %106 = math.tanh %105 : vector<8x128xf32>
    %107 = arith.mulf %102, %106 : vector<8x128xf32>
    %c1_i32_40 = arith.constant 1 : i32
    %108 = tpu.concatenate %107, %75 in 1 : vector<8x128xf32>, vector<8x128xf32> -> vector<8x256xf32>
    %cst_41 = arith.constant dense<0.000000e+00> : vector<8x512xf32>
    %109 = tpu.matmul %108, %12, %cst_41 {dimension_numbers = #tpu.dot_dimension_numbers<[1], [0], [0], [1], [0, 0, 1, 1], [], []>} : vector<8x256xf32>, vector<256x512xf32>, vector<8x512xf32> -> vector<8x512xf32>
    %110 = arith.addf %109, %15 : vector<8x512xf32>
    %111 = vector.extract_strided_slice %110 {offsets = [0, 0], sizes = [8, 128], strides = [1, 1]} : vector<8x512xf32> to vector<8x128xf32>
    %112 = arith.negf %111 : vector<8x128xf32>
    %113 = math.exp %112 : vector<8x128xf32>
    %cst_42 = arith.constant 1.000000e+00 : f32
    %114 = vector.broadcast %cst_42 : f32 to vector<8x128xf32>
    %115 = arith.addf %114, %113 : vector<8x128xf32>
    %116 = arith.divf %114, %115 : vector<8x128xf32>
    %117 = vector.extract_strided_slice %110 {offsets = [0, 128], sizes = [8, 128], strides = [1, 1]} : vector<8x512xf32> to vector<8x128xf32>
    %118 = arith.negf %117 : vector<8x128xf32>
    %119 = math.exp %118 : vector<8x128xf32>
    %cst_43 = arith.constant 1.000000e+00 : f32
    %120 = vector.broadcast %cst_43 : f32 to vector<8x128xf32>
    %121 = arith.addf %120, %119 : vector<8x128xf32>
    %122 = arith.divf %120, %121 : vector<8x128xf32>
    %123 = vector.extract_strided_slice %110 {offsets = [0, 256], sizes = [8, 128], strides = [1, 1]} : vector<8x512xf32> to vector<8x128xf32>
    %124 = math.tanh %123 : vector<8x128xf32>
    %125 = vector.extract_strided_slice %110 {offsets = [0, 384], sizes = [8, 128], strides = [1, 1]} : vector<8x512xf32> to vector<8x128xf32>
    %126 = arith.negf %125 : vector<8x128xf32>
    %127 = math.exp %126 : vector<8x128xf32>
    %cst_44 = arith.constant 1.000000e+00 : f32
    %128 = vector.broadcast %cst_44 : f32 to vector<8x128xf32>
    %129 = arith.addf %128, %127 : vector<8x128xf32>
    %130 = arith.divf %128, %129 : vector<8x128xf32>
    %131 = arith.mulf %122, %73 : vector<8x128xf32>
    %132 = arith.mulf %116, %124 : vector<8x128xf32>
    %133 = arith.addf %131, %132 : vector<8x128xf32>
    %134 = math.tanh %133 : vector<8x128xf32>
    %135 = arith.mulf %130, %134 : vector<8x128xf32>
    %c1_i32_45 = arith.constant 1 : i32
    %136 = arith.addi %c1_i32_40, %c1_i32_45 : i32
    %c8_i32_46 = arith.constant 8 : i32
    %137 = arith.muli %136, %c8_i32_46 : i32
    %138 = tpu.assume_multiple %137, 8 : i32
    %139 = arith.index_cast %138 : i32 to index
    %c0_47 = arith.constant 0 : index
    %140 = vector.load %arg11[%139, %c0_47] : memref<64x512xf32, #tpu.memory_space<vmem>>, vector<8x512xf32>
    %cst_48 = arith.constant dense<0.000000e+00> : vector<8x512xf32>
    %141 = tpu.matmul %107, %11, %cst_48 {dimension_numbers = #tpu.dot_dimension_numbers<[1], [0], [0], [1], [0, 0, 1, 1], [], []>} : vector<8x128xf32>, vector<128x512xf32>, vector<8x512xf32> -> vector<8x512xf32>
    %142 = arith.addf %140, %141 : vector<8x512xf32>
    %143 = vector.extract_strided_slice %142 {offsets = [0, 0], sizes = [8, 128], strides = [1, 1]} : vector<8x512xf32> to vector<8x128xf32>
    %144 = arith.negf %143 : vector<8x128xf32>
    %145 = math.exp %144 : vector<8x128xf32>
    %cst_49 = arith.constant 1.000000e+00 : f32
    %146 = vector.broadcast %cst_49 : f32 to vector<8x128xf32>
    %147 = arith.addf %146, %145 : vector<8x128xf32>
    %148 = arith.divf %146, %147 : vector<8x128xf32>
    %149 = vector.extract_strided_slice %142 {offsets = [0, 128], sizes = [8, 128], strides = [1, 1]} : vector<8x512xf32> to vector<8x128xf32>
    %150 = arith.negf %149 : vector<8x128xf32>
    %151 = math.exp %150 : vector<8x128xf32>
    %cst_50 = arith.constant 1.000000e+00 : f32
    %152 = vector.broadcast %cst_50 : f32 to vector<8x128xf32>
    %153 = arith.addf %152, %151 : vector<8x128xf32>
    %154 = arith.divf %152, %153 : vector<8x128xf32>
    %155 = vector.extract_strided_slice %142 {offsets = [0, 256], sizes = [8, 128], strides = [1, 1]} : vector<8x512xf32> to vector<8x128xf32>
    %156 = math.tanh %155 : vector<8x128xf32>
    %157 = vector.extract_strided_slice %142 {offsets = [0, 384], sizes = [8, 128], strides = [1, 1]} : vector<8x512xf32> to vector<8x128xf32>
    %158 = arith.negf %157 : vector<8x128xf32>
    %159 = math.exp %158 : vector<8x128xf32>
    %cst_51 = arith.constant 1.000000e+00 : f32
    %160 = vector.broadcast %cst_51 : f32 to vector<8x128xf32>
    %161 = arith.addf %160, %159 : vector<8x128xf32>
    %162 = arith.divf %160, %161 : vector<8x128xf32>
    %163 = arith.mulf %154, %105 : vector<8x128xf32>
    %164 = arith.mulf %148, %156 : vector<8x128xf32>
    %165 = arith.addf %163, %164 : vector<8x128xf32>
    %166 = math.tanh %165 : vector<8x128xf32>
    %167 = arith.mulf %162, %166 : vector<8x128xf32>
    %c2_i32 = arith.constant 2 : i32
    %168 = tpu.concatenate %167, %135 in 1 : vector<8x128xf32>, vector<8x128xf32> -> vector<8x256xf32>
    %cst_52 = arith.constant dense<0.000000e+00> : vector<8x512xf32>
    %169 = tpu.matmul %168, %12, %cst_52 {dimension_numbers = #tpu.dot_dimension_numbers<[1], [0], [0], [1], [0, 0, 1, 1], [], []>} : vector<8x256xf32>, vector<256x512xf32>, vector<8x512xf32> -> vector<8x512xf32>
    %170 = arith.addf %169, %15 : vector<8x512xf32>
    %171 = vector.extract_strided_slice %170 {offsets = [0, 0], sizes = [8, 128], strides = [1, 1]} : vector<8x512xf32> to vector<8x128xf32>
    %172 = arith.negf %171 : vector<8x128xf32>
    %173 = math.exp %172 : vector<8x128xf32>
    %cst_53 = arith.constant 1.000000e+00 : f32
    %174 = vector.broadcast %cst_53 : f32 to vector<8x128xf32>
    %175 = arith.addf %174, %173 : vector<8x128xf32>
    %176 = arith.divf %174, %175 : vector<8x128xf32>
    %177 = vector.extract_strided_slice %170 {offsets = [0, 128], sizes = [8, 128], strides = [1, 1]} : vector<8x512xf32> to vector<8x128xf32>
    %178 = arith.negf %177 : vector<8x128xf32>
    %179 = math.exp %178 : vector<8x128xf32>
    %cst_54 = arith.constant 1.000000e+00 : f32
    %180 = vector.broadcast %cst_54 : f32 to vector<8x128xf32>
    %181 = arith.addf %180, %179 : vector<8x128xf32>
    %182 = arith.divf %180, %181 : vector<8x128xf32>
    %183 = vector.extract_strided_slice %170 {offsets = [0, 256], sizes = [8, 128], strides = [1, 1]} : vector<8x512xf32> to vector<8x128xf32>
    %184 = math.tanh %183 : vector<8x128xf32>
    %185 = vector.extract_strided_slice %170 {offsets = [0, 384], sizes = [8, 128], strides = [1, 1]} : vector<8x512xf32> to vector<8x128xf32>
    %186 = arith.negf %185 : vector<8x128xf32>
    %187 = math.exp %186 : vector<8x128xf32>
    %cst_55 = arith.constant 1.000000e+00 : f32
    %188 = vector.broadcast %cst_55 : f32 to vector<8x128xf32>
    %189 = arith.addf %188, %187 : vector<8x128xf32>
    %190 = arith.divf %188, %189 : vector<8x128xf32>
    %191 = arith.mulf %182, %133 : vector<8x128xf32>
    %192 = arith.mulf %176, %184 : vector<8x128xf32>
    %193 = arith.addf %191, %192 : vector<8x128xf32>
    %194 = math.tanh %193 : vector<8x128xf32>
    %195 = arith.mulf %190, %194 : vector<8x128xf32>
    %c1_i32_56 = arith.constant 1 : i32
    %196 = arith.addi %c2_i32, %c1_i32_56 : i32
    %c8_i32_57 = arith.constant 8 : i32
    %197 = arith.muli %196, %c8_i32_57 : i32
    %198 = tpu.assume_multiple %197, 8 : i32
    %199 = arith.index_cast %198 : i32 to index
    %c0_58 = arith.constant 0 : index
    %200 = vector.load %arg11[%199, %c0_58] : memref<64x512xf32, #tpu.memory_space<vmem>>, vector<8x512xf32>
    %cst_59 = arith.constant dense<0.000000e+00> : vector<8x512xf32>
    %201 = tpu.matmul %167, %11, %cst_59 {dimension_numbers = #tpu.dot_dimension_numbers<[1], [0], [0], [1], [0, 0, 1, 1], [], []>} : vector<8x128xf32>, vector<128x512xf32>, vector<8x512xf32> -> vector<8x512xf32>
    %202 = arith.addf %200, %201 : vector<8x512xf32>
    %203 = vector.extract_strided_slice %202 {offsets = [0, 0], sizes = [8, 128], strides = [1, 1]} : vector<8x512xf32> to vector<8x128xf32>
    %204 = arith.negf %203 : vector<8x128xf32>
    %205 = math.exp %204 : vector<8x128xf32>
    %cst_60 = arith.constant 1.000000e+00 : f32
    %206 = vector.broadcast %cst_60 : f32 to vector<8x128xf32>
    %207 = arith.addf %206, %205 : vector<8x128xf32>
    %208 = arith.divf %206, %207 : vector<8x128xf32>
    %209 = vector.extract_strided_slice %202 {offsets = [0, 128], sizes = [8, 128], strides = [1, 1]} : vector<8x512xf32> to vector<8x128xf32>
    %210 = arith.negf %209 : vector<8x128xf32>
    %211 = math.exp %210 : vector<8x128xf32>
    %cst_61 = arith.constant 1.000000e+00 : f32
    %212 = vector.broadcast %cst_61 : f32 to vector<8x128xf32>
    %213 = arith.addf %212, %211 : vector<8x128xf32>
    %214 = arith.divf %212, %213 : vector<8x128xf32>
    %215 = vector.extract_strided_slice %202 {offsets = [0, 256], sizes = [8, 128], strides = [1, 1]} : vector<8x512xf32> to vector<8x128xf32>
    %216 = math.tanh %215 : vector<8x128xf32>
    %217 = vector.extract_strided_slice %202 {offsets = [0, 384], sizes = [8, 128], strides = [1, 1]} : vector<8x512xf32> to vector<8x128xf32>
    %218 = arith.negf %217 : vector<8x128xf32>
    %219 = math.exp %218 : vector<8x128xf32>
    %cst_62 = arith.constant 1.000000e+00 : f32
    %220 = vector.broadcast %cst_62 : f32 to vector<8x128xf32>
    %221 = arith.addf %220, %219 : vector<8x128xf32>
    %222 = arith.divf %220, %221 : vector<8x128xf32>
    %223 = arith.mulf %214, %165 : vector<8x128xf32>
    %224 = arith.mulf %208, %216 : vector<8x128xf32>
    %225 = arith.addf %223, %224 : vector<8x128xf32>
    %226 = math.tanh %225 : vector<8x128xf32>
    %227 = arith.mulf %222, %226 : vector<8x128xf32>
    %c3_i32 = arith.constant 3 : i32
    %228 = tpu.concatenate %227, %195 in 1 : vector<8x128xf32>, vector<8x128xf32> -> vector<8x256xf32>
    %cst_63 = arith.constant dense<0.000000e+00> : vector<8x512xf32>
    %229 = tpu.matmul %228, %12, %cst_63 {dimension_numbers = #tpu.dot_dimension_numbers<[1], [0], [0], [1], [0, 0, 1, 1], [], []>} : vector<8x256xf32>, vector<256x512xf32>, vector<8x512xf32> -> vector<8x512xf32>
    %230 = arith.addf %229, %15 : vector<8x512xf32>
    %231 = vector.extract_strided_slice %230 {offsets = [0, 0], sizes = [8, 128], strides = [1, 1]} : vector<8x512xf32> to vector<8x128xf32>
    %232 = arith.negf %231 : vector<8x128xf32>
    %233 = math.exp %232 : vector<8x128xf32>
    %cst_64 = arith.constant 1.000000e+00 : f32
    %234 = vector.broadcast %cst_64 : f32 to vector<8x128xf32>
    %235 = arith.addf %234, %233 : vector<8x128xf32>
    %236 = arith.divf %234, %235 : vector<8x128xf32>
    %237 = vector.extract_strided_slice %230 {offsets = [0, 128], sizes = [8, 128], strides = [1, 1]} : vector<8x512xf32> to vector<8x128xf32>
    %238 = arith.negf %237 : vector<8x128xf32>
    %239 = math.exp %238 : vector<8x128xf32>
    %cst_65 = arith.constant 1.000000e+00 : f32
    %240 = vector.broadcast %cst_65 : f32 to vector<8x128xf32>
    %241 = arith.addf %240, %239 : vector<8x128xf32>
    %242 = arith.divf %240, %241 : vector<8x128xf32>
    %243 = vector.extract_strided_slice %230 {offsets = [0, 256], sizes = [8, 128], strides = [1, 1]} : vector<8x512xf32> to vector<8x128xf32>
    %244 = math.tanh %243 : vector<8x128xf32>
    %245 = vector.extract_strided_slice %230 {offsets = [0, 384], sizes = [8, 128], strides = [1, 1]} : vector<8x512xf32> to vector<8x128xf32>
    %246 = arith.negf %245 : vector<8x128xf32>
    %247 = math.exp %246 : vector<8x128xf32>
    %cst_66 = arith.constant 1.000000e+00 : f32
    %248 = vector.broadcast %cst_66 : f32 to vector<8x128xf32>
    %249 = arith.addf %248, %247 : vector<8x128xf32>
    %250 = arith.divf %248, %249 : vector<8x128xf32>
    %251 = arith.mulf %242, %193 : vector<8x128xf32>
    %252 = arith.mulf %236, %244 : vector<8x128xf32>
    %253 = arith.addf %251, %252 : vector<8x128xf32>
    %254 = math.tanh %253 : vector<8x128xf32>
    %255 = arith.mulf %250, %254 : vector<8x128xf32>
    %c1_i32_67 = arith.constant 1 : i32
    %256 = arith.addi %c3_i32, %c1_i32_67 : i32
    %c8_i32_68 = arith.constant 8 : i32
    %257 = arith.muli %256, %c8_i32_68 : i32
    %258 = tpu.assume_multiple %257, 8 : i32
    %259 = arith.index_cast %258 : i32 to index
    %c0_69 = arith.constant 0 : index
    %260 = vector.load %arg11[%259, %c0_69] : memref<64x512xf32, #tpu.memory_space<vmem>>, vector<8x512xf32>
    %cst_70 = arith.constant dense<0.000000e+00> : vector<8x512xf32>
    %261 = tpu.matmul %227, %11, %cst_70 {dimension_numbers = #tpu.dot_dimension_numbers<[1], [0], [0], [1], [0, 0, 1, 1], [], []>} : vector<8x128xf32>, vector<128x512xf32>, vector<8x512xf32> -> vector<8x512xf32>
    %262 = arith.addf %260, %261 : vector<8x512xf32>
    %263 = vector.extract_strided_slice %262 {offsets = [0, 0], sizes = [8, 128], strides = [1, 1]} : vector<8x512xf32> to vector<8x128xf32>
    %264 = arith.negf %263 : vector<8x128xf32>
    %265 = math.exp %264 : vector<8x128xf32>
    %cst_71 = arith.constant 1.000000e+00 : f32
    %266 = vector.broadcast %cst_71 : f32 to vector<8x128xf32>
    %267 = arith.addf %266, %265 : vector<8x128xf32>
    %268 = arith.divf %266, %267 : vector<8x128xf32>
    %269 = vector.extract_strided_slice %262 {offsets = [0, 128], sizes = [8, 128], strides = [1, 1]} : vector<8x512xf32> to vector<8x128xf32>
    %270 = arith.negf %269 : vector<8x128xf32>
    %271 = math.exp %270 : vector<8x128xf32>
    %cst_72 = arith.constant 1.000000e+00 : f32
    %272 = vector.broadcast %cst_72 : f32 to vector<8x128xf32>
    %273 = arith.addf %272, %271 : vector<8x128xf32>
    %274 = arith.divf %272, %273 : vector<8x128xf32>
    %275 = vector.extract_strided_slice %262 {offsets = [0, 256], sizes = [8, 128], strides = [1, 1]} : vector<8x512xf32> to vector<8x128xf32>
    %276 = math.tanh %275 : vector<8x128xf32>
    %277 = vector.extract_strided_slice %262 {offsets = [0, 384], sizes = [8, 128], strides = [1, 1]} : vector<8x512xf32> to vector<8x128xf32>
    %278 = arith.negf %277 : vector<8x128xf32>
    %279 = math.exp %278 : vector<8x128xf32>
    %cst_73 = arith.constant 1.000000e+00 : f32
    %280 = vector.broadcast %cst_73 : f32 to vector<8x128xf32>
    %281 = arith.addf %280, %279 : vector<8x128xf32>
    %282 = arith.divf %280, %281 : vector<8x128xf32>
    %283 = arith.mulf %274, %225 : vector<8x128xf32>
    %284 = arith.mulf %268, %276 : vector<8x128xf32>
    %285 = arith.addf %283, %284 : vector<8x128xf32>
    %286 = math.tanh %285 : vector<8x128xf32>
    %287 = arith.mulf %282, %286 : vector<8x128xf32>
    %c4_i32 = arith.constant 4 : i32
    %288 = tpu.concatenate %287, %255 in 1 : vector<8x128xf32>, vector<8x128xf32> -> vector<8x256xf32>
    %cst_74 = arith.constant dense<0.000000e+00> : vector<8x512xf32>
    %289 = tpu.matmul %288, %12, %cst_74 {dimension_numbers = #tpu.dot_dimension_numbers<[1], [0], [0], [1], [0, 0, 1, 1], [], []>} : vector<8x256xf32>, vector<256x512xf32>, vector<8x512xf32> -> vector<8x512xf32>
    %290 = arith.addf %289, %15 : vector<8x512xf32>
    %291 = vector.extract_strided_slice %290 {offsets = [0, 0], sizes = [8, 128], strides = [1, 1]} : vector<8x512xf32> to vector<8x128xf32>
    %292 = arith.negf %291 : vector<8x128xf32>
    %293 = math.exp %292 : vector<8x128xf32>
    %cst_75 = arith.constant 1.000000e+00 : f32
    %294 = vector.broadcast %cst_75 : f32 to vector<8x128xf32>
    %295 = arith.addf %294, %293 : vector<8x128xf32>
    %296 = arith.divf %294, %295 : vector<8x128xf32>
    %297 = vector.extract_strided_slice %290 {offsets = [0, 128], sizes = [8, 128], strides = [1, 1]} : vector<8x512xf32> to vector<8x128xf32>
    %298 = arith.negf %297 : vector<8x128xf32>
    %299 = math.exp %298 : vector<8x128xf32>
    %cst_76 = arith.constant 1.000000e+00 : f32
    %300 = vector.broadcast %cst_76 : f32 to vector<8x128xf32>
    %301 = arith.addf %300, %299 : vector<8x128xf32>
    %302 = arith.divf %300, %301 : vector<8x128xf32>
    %303 = vector.extract_strided_slice %290 {offsets = [0, 256], sizes = [8, 128], strides = [1, 1]} : vector<8x512xf32> to vector<8x128xf32>
    %304 = math.tanh %303 : vector<8x128xf32>
    %305 = vector.extract_strided_slice %290 {offsets = [0, 384], sizes = [8, 128], strides = [1, 1]} : vector<8x512xf32> to vector<8x128xf32>
    %306 = arith.negf %305 : vector<8x128xf32>
    %307 = math.exp %306 : vector<8x128xf32>
    %cst_77 = arith.constant 1.000000e+00 : f32
    %308 = vector.broadcast %cst_77 : f32 to vector<8x128xf32>
    %309 = arith.addf %308, %307 : vector<8x128xf32>
    %310 = arith.divf %308, %309 : vector<8x128xf32>
    %311 = arith.mulf %302, %253 : vector<8x128xf32>
    %312 = arith.mulf %296, %304 : vector<8x128xf32>
    %313 = arith.addf %311, %312 : vector<8x128xf32>
    %314 = math.tanh %313 : vector<8x128xf32>
    %315 = arith.mulf %310, %314 : vector<8x128xf32>
    %c1_i32_78 = arith.constant 1 : i32
    %316 = arith.addi %c4_i32, %c1_i32_78 : i32
    %c8_i32_79 = arith.constant 8 : i32
    %317 = arith.muli %316, %c8_i32_79 : i32
    %318 = tpu.assume_multiple %317, 8 : i32
    %319 = arith.index_cast %318 : i32 to index
    %c0_80 = arith.constant 0 : index
    %320 = vector.load %arg11[%319, %c0_80] : memref<64x512xf32, #tpu.memory_space<vmem>>, vector<8x512xf32>
    %cst_81 = arith.constant dense<0.000000e+00> : vector<8x512xf32>
    %321 = tpu.matmul %287, %11, %cst_81 {dimension_numbers = #tpu.dot_dimension_numbers<[1], [0], [0], [1], [0, 0, 1, 1], [], []>} : vector<8x128xf32>, vector<128x512xf32>, vector<8x512xf32> -> vector<8x512xf32>
    %322 = arith.addf %320, %321 : vector<8x512xf32>
    %323 = vector.extract_strided_slice %322 {offsets = [0, 0], sizes = [8, 128], strides = [1, 1]} : vector<8x512xf32> to vector<8x128xf32>
    %324 = arith.negf %323 : vector<8x128xf32>
    %325 = math.exp %324 : vector<8x128xf32>
    %cst_82 = arith.constant 1.000000e+00 : f32
    %326 = vector.broadcast %cst_82 : f32 to vector<8x128xf32>
    %327 = arith.addf %326, %325 : vector<8x128xf32>
    %328 = arith.divf %326, %327 : vector<8x128xf32>
    %329 = vector.extract_strided_slice %322 {offsets = [0, 128], sizes = [8, 128], strides = [1, 1]} : vector<8x512xf32> to vector<8x128xf32>
    %330 = arith.negf %329 : vector<8x128xf32>
    %331 = math.exp %330 : vector<8x128xf32>
    %cst_83 = arith.constant 1.000000e+00 : f32
    %332 = vector.broadcast %cst_83 : f32 to vector<8x128xf32>
    %333 = arith.addf %332, %331 : vector<8x128xf32>
    %334 = arith.divf %332, %333 : vector<8x128xf32>
    %335 = vector.extract_strided_slice %322 {offsets = [0, 256], sizes = [8, 128], strides = [1, 1]} : vector<8x512xf32> to vector<8x128xf32>
    %336 = math.tanh %335 : vector<8x128xf32>
    %337 = vector.extract_strided_slice %322 {offsets = [0, 384], sizes = [8, 128], strides = [1, 1]} : vector<8x512xf32> to vector<8x128xf32>
    %338 = arith.negf %337 : vector<8x128xf32>
    %339 = math.exp %338 : vector<8x128xf32>
    %cst_84 = arith.constant 1.000000e+00 : f32
    %340 = vector.broadcast %cst_84 : f32 to vector<8x128xf32>
    %341 = arith.addf %340, %339 : vector<8x128xf32>
    %342 = arith.divf %340, %341 : vector<8x128xf32>
    %343 = arith.mulf %334, %285 : vector<8x128xf32>
    %344 = arith.mulf %328, %336 : vector<8x128xf32>
    %345 = arith.addf %343, %344 : vector<8x128xf32>
    %346 = math.tanh %345 : vector<8x128xf32>
    %347 = arith.mulf %342, %346 : vector<8x128xf32>
    %c5_i32 = arith.constant 5 : i32
    %348 = tpu.concatenate %347, %315 in 1 : vector<8x128xf32>, vector<8x128xf32> -> vector<8x256xf32>
    %cst_85 = arith.constant dense<0.000000e+00> : vector<8x512xf32>
    %349 = tpu.matmul %348, %12, %cst_85 {dimension_numbers = #tpu.dot_dimension_numbers<[1], [0], [0], [1], [0, 0, 1, 1], [], []>} : vector<8x256xf32>, vector<256x512xf32>, vector<8x512xf32> -> vector<8x512xf32>
    %350 = arith.addf %349, %15 : vector<8x512xf32>
    %351 = vector.extract_strided_slice %350 {offsets = [0, 0], sizes = [8, 128], strides = [1, 1]} : vector<8x512xf32> to vector<8x128xf32>
    %352 = arith.negf %351 : vector<8x128xf32>
    %353 = math.exp %352 : vector<8x128xf32>
    %cst_86 = arith.constant 1.000000e+00 : f32
    %354 = vector.broadcast %cst_86 : f32 to vector<8x128xf32>
    %355 = arith.addf %354, %353 : vector<8x128xf32>
    %356 = arith.divf %354, %355 : vector<8x128xf32>
    %357 = vector.extract_strided_slice %350 {offsets = [0, 128], sizes = [8, 128], strides = [1, 1]} : vector<8x512xf32> to vector<8x128xf32>
    %358 = arith.negf %357 : vector<8x128xf32>
    %359 = math.exp %358 : vector<8x128xf32>
    %cst_87 = arith.constant 1.000000e+00 : f32
    %360 = vector.broadcast %cst_87 : f32 to vector<8x128xf32>
    %361 = arith.addf %360, %359 : vector<8x128xf32>
    %362 = arith.divf %360, %361 : vector<8x128xf32>
    %363 = vector.extract_strided_slice %350 {offsets = [0, 256], sizes = [8, 128], strides = [1, 1]} : vector<8x512xf32> to vector<8x128xf32>
    %364 = math.tanh %363 : vector<8x128xf32>
    %365 = vector.extract_strided_slice %350 {offsets = [0, 384], sizes = [8, 128], strides = [1, 1]} : vector<8x512xf32> to vector<8x128xf32>
    %366 = arith.negf %365 : vector<8x128xf32>
    %367 = math.exp %366 : vector<8x128xf32>
    %cst_88 = arith.constant 1.000000e+00 : f32
    %368 = vector.broadcast %cst_88 : f32 to vector<8x128xf32>
    %369 = arith.addf %368, %367 : vector<8x128xf32>
    %370 = arith.divf %368, %369 : vector<8x128xf32>
    %371 = arith.mulf %362, %313 : vector<8x128xf32>
    %372 = arith.mulf %356, %364 : vector<8x128xf32>
    %373 = arith.addf %371, %372 : vector<8x128xf32>
    %374 = math.tanh %373 : vector<8x128xf32>
    %375 = arith.mulf %370, %374 : vector<8x128xf32>
    %c1_i32_89 = arith.constant 1 : i32
    %376 = arith.addi %c5_i32, %c1_i32_89 : i32
    %c8_i32_90 = arith.constant 8 : i32
    %377 = arith.muli %376, %c8_i32_90 : i32
    %378 = tpu.assume_multiple %377, 8 : i32
    %379 = arith.index_cast %378 : i32 to index
    %c0_91 = arith.constant 0 : index
    %380 = vector.load %arg11[%379, %c0_91] : memref<64x512xf32, #tpu.memory_space<vmem>>, vector<8x512xf32>
    %cst_92 = arith.constant dense<0.000000e+00> : vector<8x512xf32>
    %381 = tpu.matmul %347, %11, %cst_92 {dimension_numbers = #tpu.dot_dimension_numbers<[1], [0], [0], [1], [0, 0, 1, 1], [], []>} : vector<8x128xf32>, vector<128x512xf32>, vector<8x512xf32> -> vector<8x512xf32>
    %382 = arith.addf %380, %381 : vector<8x512xf32>
    %383 = vector.extract_strided_slice %382 {offsets = [0, 0], sizes = [8, 128], strides = [1, 1]} : vector<8x512xf32> to vector<8x128xf32>
    %384 = arith.negf %383 : vector<8x128xf32>
    %385 = math.exp %384 : vector<8x128xf32>
    %cst_93 = arith.constant 1.000000e+00 : f32
    %386 = vector.broadcast %cst_93 : f32 to vector<8x128xf32>
    %387 = arith.addf %386, %385 : vector<8x128xf32>
    %388 = arith.divf %386, %387 : vector<8x128xf32>
    %389 = vector.extract_strided_slice %382 {offsets = [0, 128], sizes = [8, 128], strides = [1, 1]} : vector<8x512xf32> to vector<8x128xf32>
    %390 = arith.negf %389 : vector<8x128xf32>
    %391 = math.exp %390 : vector<8x128xf32>
    %cst_94 = arith.constant 1.000000e+00 : f32
    %392 = vector.broadcast %cst_94 : f32 to vector<8x128xf32>
    %393 = arith.addf %392, %391 : vector<8x128xf32>
    %394 = arith.divf %392, %393 : vector<8x128xf32>
    %395 = vector.extract_strided_slice %382 {offsets = [0, 256], sizes = [8, 128], strides = [1, 1]} : vector<8x512xf32> to vector<8x128xf32>
    %396 = math.tanh %395 : vector<8x128xf32>
    %397 = vector.extract_strided_slice %382 {offsets = [0, 384], sizes = [8, 128], strides = [1, 1]} : vector<8x512xf32> to vector<8x128xf32>
    %398 = arith.negf %397 : vector<8x128xf32>
    %399 = math.exp %398 : vector<8x128xf32>
    %cst_95 = arith.constant 1.000000e+00 : f32
    %400 = vector.broadcast %cst_95 : f32 to vector<8x128xf32>
    %401 = arith.addf %400, %399 : vector<8x128xf32>
    %402 = arith.divf %400, %401 : vector<8x128xf32>
    %403 = arith.mulf %394, %345 : vector<8x128xf32>
    %404 = arith.mulf %388, %396 : vector<8x128xf32>
    %405 = arith.addf %403, %404 : vector<8x128xf32>
    %406 = math.tanh %405 : vector<8x128xf32>
    %407 = arith.mulf %402, %406 : vector<8x128xf32>
    %c6_i32 = arith.constant 6 : i32
    %408 = tpu.concatenate %407, %375 in 1 : vector<8x128xf32>, vector<8x128xf32> -> vector<8x256xf32>
    %cst_96 = arith.constant dense<0.000000e+00> : vector<8x512xf32>
    %409 = tpu.matmul %408, %12, %cst_96 {dimension_numbers = #tpu.dot_dimension_numbers<[1], [0], [0], [1], [0, 0, 1, 1], [], []>} : vector<8x256xf32>, vector<256x512xf32>, vector<8x512xf32> -> vector<8x512xf32>
    %410 = arith.addf %409, %15 : vector<8x512xf32>
    %411 = vector.extract_strided_slice %410 {offsets = [0, 0], sizes = [8, 128], strides = [1, 1]} : vector<8x512xf32> to vector<8x128xf32>
    %412 = arith.negf %411 : vector<8x128xf32>
    %413 = math.exp %412 : vector<8x128xf32>
    %cst_97 = arith.constant 1.000000e+00 : f32
    %414 = vector.broadcast %cst_97 : f32 to vector<8x128xf32>
    %415 = arith.addf %414, %413 : vector<8x128xf32>
    %416 = arith.divf %414, %415 : vector<8x128xf32>
    %417 = vector.extract_strided_slice %410 {offsets = [0, 128], sizes = [8, 128], strides = [1, 1]} : vector<8x512xf32> to vector<8x128xf32>
    %418 = arith.negf %417 : vector<8x128xf32>
    %419 = math.exp %418 : vector<8x128xf32>
    %cst_98 = arith.constant 1.000000e+00 : f32
    %420 = vector.broadcast %cst_98 : f32 to vector<8x128xf32>
    %421 = arith.addf %420, %419 : vector<8x128xf32>
    %422 = arith.divf %420, %421 : vector<8x128xf32>
    %423 = vector.extract_strided_slice %410 {offsets = [0, 256], sizes = [8, 128], strides = [1, 1]} : vector<8x512xf32> to vector<8x128xf32>
    %424 = math.tanh %423 : vector<8x128xf32>
    %425 = vector.extract_strided_slice %410 {offsets = [0, 384], sizes = [8, 128], strides = [1, 1]} : vector<8x512xf32> to vector<8x128xf32>
    %426 = arith.negf %425 : vector<8x128xf32>
    %427 = math.exp %426 : vector<8x128xf32>
    %cst_99 = arith.constant 1.000000e+00 : f32
    %428 = vector.broadcast %cst_99 : f32 to vector<8x128xf32>
    %429 = arith.addf %428, %427 : vector<8x128xf32>
    %430 = arith.divf %428, %429 : vector<8x128xf32>
    %431 = arith.mulf %422, %373 : vector<8x128xf32>
    %432 = arith.mulf %416, %424 : vector<8x128xf32>
    %433 = arith.addf %431, %432 : vector<8x128xf32>
    %434 = math.tanh %433 : vector<8x128xf32>
    %435 = arith.mulf %430, %434 : vector<8x128xf32>
    %c1_i32_100 = arith.constant 1 : i32
    %436 = arith.addi %c6_i32, %c1_i32_100 : i32
    %c8_i32_101 = arith.constant 8 : i32
    %437 = arith.muli %436, %c8_i32_101 : i32
    %438 = tpu.assume_multiple %437, 8 : i32
    %439 = arith.index_cast %438 : i32 to index
    %c0_102 = arith.constant 0 : index
    %440 = vector.load %arg11[%439, %c0_102] : memref<64x512xf32, #tpu.memory_space<vmem>>, vector<8x512xf32>
    %cst_103 = arith.constant dense<0.000000e+00> : vector<8x512xf32>
    %441 = tpu.matmul %407, %11, %cst_103 {dimension_numbers = #tpu.dot_dimension_numbers<[1], [0], [0], [1], [0, 0, 1, 1], [], []>} : vector<8x128xf32>, vector<128x512xf32>, vector<8x512xf32> -> vector<8x512xf32>
    %442 = arith.addf %440, %441 : vector<8x512xf32>
    %443 = vector.extract_strided_slice %442 {offsets = [0, 0], sizes = [8, 128], strides = [1, 1]} : vector<8x512xf32> to vector<8x128xf32>
    %444 = arith.negf %443 : vector<8x128xf32>
    %445 = math.exp %444 : vector<8x128xf32>
    %cst_104 = arith.constant 1.000000e+00 : f32
    %446 = vector.broadcast %cst_104 : f32 to vector<8x128xf32>
    %447 = arith.addf %446, %445 : vector<8x128xf32>
    %448 = arith.divf %446, %447 : vector<8x128xf32>
    %449 = vector.extract_strided_slice %442 {offsets = [0, 128], sizes = [8, 128], strides = [1, 1]} : vector<8x512xf32> to vector<8x128xf32>
    %450 = arith.negf %449 : vector<8x128xf32>
    %451 = math.exp %450 : vector<8x128xf32>
    %cst_105 = arith.constant 1.000000e+00 : f32
    %452 = vector.broadcast %cst_105 : f32 to vector<8x128xf32>
    %453 = arith.addf %452, %451 : vector<8x128xf32>
    %454 = arith.divf %452, %453 : vector<8x128xf32>
    %455 = vector.extract_strided_slice %442 {offsets = [0, 256], sizes = [8, 128], strides = [1, 1]} : vector<8x512xf32> to vector<8x128xf32>
    %456 = math.tanh %455 : vector<8x128xf32>
    %457 = vector.extract_strided_slice %442 {offsets = [0, 384], sizes = [8, 128], strides = [1, 1]} : vector<8x512xf32> to vector<8x128xf32>
    %458 = arith.negf %457 : vector<8x128xf32>
    %459 = math.exp %458 : vector<8x128xf32>
    %cst_106 = arith.constant 1.000000e+00 : f32
    %460 = vector.broadcast %cst_106 : f32 to vector<8x128xf32>
    %461 = arith.addf %460, %459 : vector<8x128xf32>
    %462 = arith.divf %460, %461 : vector<8x128xf32>
    %463 = arith.mulf %454, %405 : vector<8x128xf32>
    %464 = arith.mulf %448, %456 : vector<8x128xf32>
    %465 = arith.addf %463, %464 : vector<8x128xf32>
    %466 = math.tanh %465 : vector<8x128xf32>
    %467 = arith.mulf %462, %466 : vector<8x128xf32>
    %c7_i32 = arith.constant 7 : i32
    %468 = tpu.concatenate %467, %435 in 1 : vector<8x128xf32>, vector<8x128xf32> -> vector<8x256xf32>
    %cst_107 = arith.constant dense<0.000000e+00> : vector<8x512xf32>
    %469 = tpu.matmul %468, %12, %cst_107 {dimension_numbers = #tpu.dot_dimension_numbers<[1], [0], [0], [1], [0, 0, 1, 1], [], []>} : vector<8x256xf32>, vector<256x512xf32>, vector<8x512xf32> -> vector<8x512xf32>
    %470 = arith.addf %469, %15 : vector<8x512xf32>
    %471 = vector.extract_strided_slice %470 {offsets = [0, 0], sizes = [8, 128], strides = [1, 1]} : vector<8x512xf32> to vector<8x128xf32>
    %472 = arith.negf %471 : vector<8x128xf32>
    %473 = math.exp %472 : vector<8x128xf32>
    %cst_108 = arith.constant 1.000000e+00 : f32
    %474 = vector.broadcast %cst_108 : f32 to vector<8x128xf32>
    %475 = arith.addf %474, %473 : vector<8x128xf32>
    %476 = arith.divf %474, %475 : vector<8x128xf32>
    %477 = vector.extract_strided_slice %470 {offsets = [0, 128], sizes = [8, 128], strides = [1, 1]} : vector<8x512xf32> to vector<8x128xf32>
    %478 = arith.negf %477 : vector<8x128xf32>
    %479 = math.exp %478 : vector<8x128xf32>
    %cst_109 = arith.constant 1.000000e+00 : f32
    %480 = vector.broadcast %cst_109 : f32 to vector<8x128xf32>
    %481 = arith.addf %480, %479 : vector<8x128xf32>
    %482 = arith.divf %480, %481 : vector<8x128xf32>
    %483 = vector.extract_strided_slice %470 {offsets = [0, 256], sizes = [8, 128], strides = [1, 1]} : vector<8x512xf32> to vector<8x128xf32>
    %484 = math.tanh %483 : vector<8x128xf32>
    %485 = vector.extract_strided_slice %470 {offsets = [0, 384], sizes = [8, 128], strides = [1, 1]} : vector<8x512xf32> to vector<8x128xf32>
    %486 = arith.negf %485 : vector<8x128xf32>
    %487 = math.exp %486 : vector<8x128xf32>
    %cst_110 = arith.constant 1.000000e+00 : f32
    %488 = vector.broadcast %cst_110 : f32 to vector<8x128xf32>
    %489 = arith.addf %488, %487 : vector<8x128xf32>
    %490 = arith.divf %488, %489 : vector<8x128xf32>
    %491 = arith.mulf %482, %433 : vector<8x128xf32>
    %492 = arith.mulf %476, %484 : vector<8x128xf32>
    %493 = arith.addf %491, %492 : vector<8x128xf32>
    %494 = math.tanh %493 : vector<8x128xf32>
    %495 = arith.mulf %490, %494 : vector<8x128xf32>
    %c0_111 = arith.constant 0 : index
    %c0_112 = arith.constant 0 : index
    %496 = vector.load %arg12[%c0_111, %c0_112] : memref<8x128xf32, #tpu.memory_space<vmem>>, vector<8x128xf32>
    tpu.vector_store %arg12[%c0_111, %c0_112], %467 {strides = array<i32>} : memref<8x128xf32, #tpu.memory_space<vmem>>, vector<8x128xf32>,
    %c0_113 = arith.constant 0 : index
    %c0_114 = arith.constant 0 : index
    %497 = vector.load %arg13[%c0_113, %c0_114] : memref<8x128xf32, #tpu.memory_space<vmem>>, vector<8x128xf32>
    tpu.vector_store %arg13[%c0_113, %c0_114], %465 {strides = array<i32>} : memref<8x128xf32, #tpu.memory_space<vmem>>, vector<8x128xf32>,
    %c0_115 = arith.constant 0 : index
    %c0_116 = arith.constant 0 : index
    %498 = vector.load %arg14[%c0_115, %c0_116] : memref<8x128xf32, #tpu.memory_space<vmem>>, vector<8x128xf32>
    tpu.vector_store %arg14[%c0_115, %c0_116], %495 {strides = array<i32>} : memref<8x128xf32, #tpu.memory_space<vmem>>, vector<8x128xf32>,
    %c0_117 = arith.constant 0 : index
    %c0_118 = arith.constant 0 : index
    %499 = vector.load %arg15[%c0_117, %c0_118] : memref<8x128xf32, #tpu.memory_space<vmem>>, vector<8x128xf32>
    tpu.vector_store %arg15[%c0_117, %c0_118], %493 {strides = array<i32>} : memref<8x128xf32, #tpu.memory_space<vmem>>, vector<8x128xf32>,
    %c0_i32_119 = arith.constant 0 : i32
    %500 = arith.cmpi eq, %arg1, %c0_i32_119 : i32
    %501 = arith.extui %500 : i1 to i32
    %c0_i32_120 = arith.constant 0 : i32
    %502 = arith.cmpi ne, %501, %c0_i32_120 : i32
    scf.if %502 {
      %c0_121 = arith.constant 0 : index
      %c0_122 = arith.constant 0 : index
      %503 = vector.load %arg8[%c0_121, %c0_122] : memref<1x128xf32, #tpu.memory_space<vmem>>, vector<1x128xf32>
      %504 = vector.broadcast %503 : vector<1x128xf32> to vector<8x128xf32>
      %505 = arith.mulf %495, %504 : vector<8x128xf32>
      %cst_123 = arith.constant dense<0.000000e+00> : vector<8xf32>
      %506 = vector.multi_reduction <add>, %505, %cst_123 [1] : vector<8x128xf32> to vector<8xf32>
      %507 = vector.shape_cast %506 : vector<8xf32> to vector<8x1xf32>
      %c0_124 = arith.constant 0 : index
      %c0_125 = arith.constant 0 : index
      %508 = vector.load %arg9[%c0_124, %c0_125] : memref<1x1xf32, #tpu.memory_space<vmem>>, vector<1x1xf32>
      %509 = vector.broadcast %508 : vector<1x1xf32> to vector<8x1xf32>
      %510 = arith.addf %507, %509 : vector<8x1xf32>
      %511 = arith.negf %510 : vector<8x1xf32>
      %512 = math.exp %511 : vector<8x1xf32>
      %cst_126 = arith.constant 1.000000e+00 : f32
      %513 = vector.broadcast %cst_126 : f32 to vector<8x1xf32>
      %514 = arith.addf %513, %512 : vector<8x1xf32>
      %515 = arith.divf %513, %514 : vector<8x1xf32>
      %c0_127 = arith.constant 0 : index
      %c0_128 = arith.constant 0 : index
      %516 = vector.load %arg10[%c0_127, %c0_128] : memref<8x1xf32, #tpu.memory_space<vmem>>, vector<8x1xf32>
      tpu.vector_store %arg10[%c0_127, %c0_128], %515 {strides = array<i32>} : memref<8x1xf32, #tpu.memory_space<vmem>>, vector<8x1xf32>,
    } else {
    }
    return
  }
  func.func @transform_0(%arg0: i32, %arg1: i32) -> (i32, i32, i32, i32) {
    %c0_i32 = arith.constant 0 : i32
    %c0_i32_0 = arith.constant 0 : i32
    %c0_i32_1 = arith.constant 0 : i32
    return %arg0, %arg1, %c0_i32, %c0_i32_0 : i32, i32, i32, i32
  }
  func.func @transform_1(%arg0: i32, %arg1: i32) -> (i32, i32) {
    %c0_i32 = arith.constant 0 : i32
    %c0_i32_0 = arith.constant 0 : i32
    %c0_i32_1 = arith.constant 0 : i32
    return %c0_i32, %c0_i32_0 : i32, i32
  }
  func.func @transform_2(%arg0: i32, %arg1: i32) -> (i32, i32) {
    %c0_i32 = arith.constant 0 : i32
    %c0_i32_0 = arith.constant 0 : i32
    %c0_i32_1 = arith.constant 0 : i32
    return %c0_i32, %c0_i32_0 : i32, i32
  }
  func.func @transform_3(%arg0: i32, %arg1: i32) -> (i32, i32) {
    %c0_i32 = arith.constant 0 : i32
    %c0_i32_0 = arith.constant 0 : i32
    %c0_i32_1 = arith.constant 0 : i32
    return %c0_i32, %c0_i32_0 : i32, i32
  }
  func.func @transform_4(%arg0: i32, %arg1: i32) -> (i32, i32) {
    %c0_i32 = arith.constant 0 : i32
    %c0_i32_0 = arith.constant 0 : i32
    %c0_i32_1 = arith.constant 0 : i32
    return %c0_i32, %c0_i32_0 : i32, i32
  }
  func.func @transform_5(%arg0: i32, %arg1: i32) -> (i32, i32) {
    %c0_i32 = arith.constant 0 : i32
    %c0_i32_0 = arith.constant 0 : i32
    %c0_i32_1 = arith.constant 0 : i32
    return %c0_i32, %c0_i32_0 : i32, i32
  }
  func.func @transform_6(%arg0: i32, %arg1: i32) -> (i32, i32) {
    %c0_i32 = arith.constant 0 : i32
    %c0_i32_0 = arith.constant 0 : i32
    %c0_i32_1 = arith.constant 0 : i32
    return %c0_i32, %c0_i32_0 : i32, i32
  }
  func.func @transform_7(%arg0: i32, %arg1: i32) -> (i32, i32) {
    %c0_i32 = arith.constant 0 : i32
    %c0_i32_0 = arith.constant 0 : i32
    %c0_i32_1 = arith.constant 0 : i32
    return %c0_i32, %c0_i32_0 : i32, i32
  }
  func.func @transform_8(%arg0: i32, %arg1: i32) -> (i32, i32) {
    %c0_i32 = arith.constant 0 : i32
    %c0_i32_0 = arith.constant 0 : i32
    return %arg0, %c0_i32 : i32, i32
  }
}

</mosaic_0001>

<bundles_post_ra>
// kernel: tpu_custom_call.1
= control target key start
LH: loop header
LB: loop body
LE: loop exit
PB: predicated region body
PF: predicated region fallthrough
CT: control target
= control target key end

     0   :  { %s6688_s0 = inlined_call_operand.vmem [shape: f32[1,1,64,16], index: 0, kind: input, shape index: {}]   ;;  %s6689_s1 = inlined_call_operand.vmem [shape: f32[16,512], index: 1, kind: input, shape index: {}]   ;;  %s6690_s2 = inlined_call_operand.vmem [shape: f32[1,512], index: 2, kind: input, shape index: {}]   ;;  %s6691_s3 = inlined_call_operand.hbm [shape: f32[128,512], index: 3, kind: input, shape index: {}]   ;;  %s6692_s4 = inlined_call_operand.hbm [shape: f32[256,512], index: 4, kind: input, shape index: {}]   ;;  %s6693_s5 = inlined_call_operand.vmem [shape: f32[1,512], index: 5, kind: input, shape index: {}]   ;;  %s6694_s6 = inlined_call_operand.vmem [shape: f32[1,128], index: 6, kind: input, shape index: {}]   ;;  %s6695_s7 = inlined_call_operand.<no memory space> [shape: f32[1,1], index: 7, kind: input, shape index: {}]   ;;  %s6696_s8 = inlined_call_operand.vmem [shape: f32[8,1], index: 8, kind: output, shape index: {}]  }
   0x1   :  { %v13_v0 = vstv %s6695_s7 }
   0x2   :  { %14 = vst [vmem:[#allocation7] sm:$0x1] %v13_v0 }
   0x3   :  { %15 = vsyncpa [#allocation9], 0 }
   0x4   :  { %16 = vsyncpa [#allocation11], 0  ;;  %s5381_s29 = smov [#allocation8]   ;;  %s5333_s11 = scalar_lea.hbm %s6691_s3, 8192 }
   0x5   :  { %s28_s30 = sshll.u32 %s5381_s29, 4  ;;  %p5334_p0 = scmp.ne.s32.totalorder %s6691_s3, %s5333_s11  ;;  %s29_s30 = int_to_ptr.vmem [resolvable:$true] %s28_s30 }
   0x6   :  { %p5337_p1 = scmp.lt.u32.totalorder %s5333_s11, %s6691_s3 }
   0x8   :  { %p5339_p2 = pnand %p5337_p1, %p5334_p0 }
   0xa   :  { %5342 = shalt.err (!%p5339_p2)
}
   0xb   :  { %s5343_s7 = scalar_lea.vmem %s29_s30, 8192  ;;  %p5348_p4 = scmp.lt.s32.totalorder %s29_s30, %s29_s30 }
   0xc   :  { %p5344_p3 = scmp.ne.s32.totalorder %s29_s30, %s5343_s7  ;;  %p5349_p5 = scmp.lt.s32.totalorder %s5343_s7, %s5343_s7 }
   0xe   :  { %p5350_p6 = por %p5349_p5, %p5348_p4 }
  0x10   :  { %p5351_p7 = pnand %p5350_p6, %p5344_p3 }
  0x12   :  { %5354 = shalt.err (!%p5351_p7)
}
  0x13   :  { %s5382_s16 = smov 512   ;;  %s5383_s17 = smov 32  }
  0x14   :  { %34 = dma.hbm_to_vmem [thread:$0]  %s6691_s3, 8192, %s29_s30, [#allocation9], %s5382_s16, %s5382_s16, %s5383_s17  }
  0x15   :  { %s5384_s20 = smov [#allocation10]   ;;  %s5355_s24 = scalar_lea.hbm %s6692_s4, 16384 }
  0x16   :  { %s40_s21 = sshll.u32 %s5384_s20, 4  ;;  %p5356_p8 = scmp.ne.s32.totalorder %s6692_s4, %s5355_s24  ;;  %s41_s21 = int_to_ptr.vmem [resolvable:$true] %s40_s21 }
  0x17   :  { %p5359_p9 = scmp.lt.u32.totalorder %s5355_s24, %s6692_s4 }
  0x19   :  { %p5361_p10 = pnand %p5359_p9, %p5356_p8 }
  0x1b   :  { %5364 = shalt.err (!%p5361_p10)
}
  0x1c   :  { %s5365_s29 = scalar_lea.vmem %s41_s21, 16384  ;;  %p5370_p12 = scmp.lt.s32.totalorder %s41_s21, %s41_s21 }
  0x1d   :  { %p5366_p11 = scmp.ne.s32.totalorder %s41_s21, %s5365_s29  ;;  %p5371_p13 = scmp.lt.s32.totalorder %s5365_s29, %s5365_s29 }
  0x1f   :  { %p5372_p0 = por %p5371_p13, %p5370_p12 }
  0x21   :  { %p5373_p1 = pnand %p5372_p0, %p5366_p11 }
  0x23   :  { %5376 = shalt.err (!%p5373_p1)
}
  0x24   :  { %46 = dma.hbm_to_vmem [thread:$0]  %s6692_s4, 16384, %s41_s21, [#allocation11], %s5382_s16, %s5382_s16, %s5383_s17  }
  0x25   :  { %5377 = dma.done.wait [#allocation9], 8192  }
  0x26   :  { %5378 = vsyncadd [#allocation9], 4294959104 }
  0x27   :  { %5379 = dma.done.wait [#allocation11], 16384  }
  0x28   :  { %5380 = vsyncadd [#allocation11], 4294950912  ;;  %v6697_v1 = vmov 0.0   ;;  %v76_v2 = vld [vmem:[%s6689_s1 + $0x8] sm:$0xff]  ;;  %v78_v4 = vld [vmem:[%s6689_s1 + $0x18] sm:$0xff]  ;;  %vm105_vm0 = vcmask 130048  }
  0x29   :  { %194 = vmatprep.mubr.f32.mxu0 %v6697_v1  ;;  %307 = vmatprep.mubr.f32.mxu1 %v6697_v1  ;;  %v80_v3 = vld [vmem:[%s6689_s1 + $0x28] sm:$0xff]  ;;  %v82_v6 = vld [vmem:[%s6689_s1 + $0x38] sm:$0xff]  ;;  %v75_v7 = vld [vmem:[%s6689_s1] sm:$0xff]  ;;  %vm3378_vm1 = vcmask 7168  }
  0x2a   :  { %v3460_v5 = vpack.c.bf16 %v80_v3, %v76_v2  ;;  %v79_v8 = vld [vmem:[%s6689_s1 + $0x20] sm:$0xff]  ;;  %v3464_v9 = vpack.c.bf16 %v82_v6, %v78_v4  ;;  %v77_v11 = vld [vmem:[%s6689_s1 + $0x10] sm:$0xff]  ;;  %v68_v34 = vld [vmem:[%s6688_s0 + $0x8] sm:$0xff] }
  0x2b   :  { %v3462_v10 = vpack.c.bf16 %v79_v8, %v75_v7  ;;  %v81_v12 = vld [vmem:[%s6689_s1 + $0x30] sm:$0xff]  ;;  %v67_v13 = vld [vmem:[%s6688_s0] sm:$0xff]  ;;  %v70_v2 = vld [vmem:[%s6688_s0 + $0x18] sm:$0xff] }
  0x2c   :  { %3461 = vmatprep.subr.bf16.mxu0 %v3460_v5  ;;  %v3466_v14 = vpack.c.bf16 %v81_v12, %v77_v11  ;;  %v389_v15 = vld [vmem:[#allocation8 + $0x8] sm:$0xff]  ;;  %v391_v17 = vld [vmem:[#allocation8 + $0x18] sm:$0xff]  ;;  %3465 = vmatprep.subr.bf16.mxu1 %v3464_v9  ;;  %v388_v20 = vld [vmem:[#allocation8] sm:$0xff] }
  0x2d   :  { %v393_v16 = vld [vmem:[#allocation8 + $0x28] sm:$0xff]  ;;  %3463 = vmatpush1.bf16.msra.mxu0 %v3462_v10  ;;  %v395_v19 = vld [vmem:[#allocation8 + $0x38] sm:$0xff]  ;;  %v392_v21 = vld [vmem:[#allocation8 + $0x20] sm:$0xff] }
  0x2e   :  { %v5487_v18 = vpack.c.bf16 %v393_v16, %v389_v15  ;;  %3467 = vmatpush1.bf16.msra.mxu1 %v3466_v14  ;;  %v5489_v22 = vpack.c.bf16 %v395_v19, %v391_v17  ;;  %v5491_v23 = vpack.c.bf16 %v392_v21, %v388_v20  ;;  %v390_v24 = vld [vmem:[#allocation8 + $0x10] sm:$0xff]  ;;  %v397_v27 = vld [vmem:[#allocation8 + $0x48] sm:$0xff]  ;;  %v399_v29 = vld [vmem:[#allocation8 + $0x58] sm:$0xff] }
  0x2f   :  { %v394_v25 = vld [vmem:[#allocation8 + $0x30] sm:$0xff]  ;;  %v401_v28 = vld [vmem:[#allocation8 + $0x68] sm:$0xff]  ;;  %v403_v31 = vld [vmem:[#allocation8 + $0x78] sm:$0xff] }
  0x30   :  { %6831 = vst [vmem:[#allocation14_spill] sm:$0xff] %v5487_v18  ;;  %6832 = vst [vmem:[#allocation15_spill] sm:$0xff] %v5489_v22  ;;  %3469 = vmatprep.subr.bf16.mxu0 %v5487_v18  ;;  %v5494_v26 = vpack.c.bf16 %v394_v25, %v390_v24  ;;  %3393 = vmatmul.mubr.msk.f32.vlgmr.msra.gmra.mrb[0].mxu0 %vm105_vm0, %v67_v13  ;;  %v5498_v30 = vpack.c.bf16 %v401_v28, %v397_v27  ;;  %v396_v32 = vld [vmem:[#allocation8 + $0x40] sm:$0xff]  ;;  %v398_v37 = vld [vmem:[#allocation8 + $0x50] sm:$0xff] }
  0x31   :  { %3501 = vmatprep.subr.bf16.mxu1 %v5489_v22  ;;  %v400_v33 = vld [vmem:[#allocation8 + $0x60] sm:$0xff]  ;;  %3401 = vmatmul.mubr.msk.f32.vlgmr.msra.gmra.mrb[0].mxu1 %vm105_vm0, %v67_v13  ;;  %v5505_v35 = vpack.c.bf16 %v403_v31, %v399_v29  ;;  %v402_v38 = vld [vmem:[#allocation8 + $0x70] sm:$0xff]  ;;  %v405_v40 = vld [vmem:[#allocation8 + $0x88] sm:$0xff] }
  0x32   :  { %3471 = vmatpush1.bf16.msra.mxu0 %v5491_v23  ;;  %v5507_v36 = vpack.c.bf16 %v400_v33, %v396_v32  ;;  %3503 = vmatpush1.bf16.msra.mxu1 %v5494_v26  ;;  %v5511_v39 = vpack.c.bf16 %v402_v38, %v398_v37  ;;  %v409_v41 = vld [vmem:[#allocation8 + $0xa8] sm:$0xff]  ;;  %v407_v42 = vld [vmem:[#allocation8 + $0x98] sm:$0xff]  ;;  %v404_v45 = vld [vmem:[#allocation8 + $0x80] sm:$0xff] }
  0x33   :  { %200 = vmatprep.mubr.f32.mxu0 %v6697_v1  ;;  %313 = vmatprep.mubr.f32.mxu1 %v6697_v1  ;;  %v5515_v43 = vpack.c.bf16 %v409_v41, %v405_v40  ;;  %v411_v44 = vld [vmem:[#allocation8 + $0xb8] sm:$0xff]  ;;  %v408_v46 = vld [vmem:[#allocation8 + $0xa0] sm:$0xff]  ;;  %v69_v47 = vld [vmem:[%s6688_s0 + $0x10] sm:$0xff] }
  0x34   :  { %3473 = vmatprep.subr.bf16.mxu0 %v5498_v30  ;;  %3394 = vmatmul.mubr.msk.f32.gmra.mrb[2].mxu0 %vm105_vm0, %v68_v34  ;;  %v5522_v48 = vpack.c.bf16 %v411_v44, %v407_v42  ;;  %v406_v49 = vld [vmem:[#allocation8 + $0x90] sm:$0xff]  ;;  %v5526_v51 = vpack.c.bf16 %v408_v46, %v404_v45  ;;  %v413_v52 = vld [vmem:[#allocation8 + $0xc8] sm:$0xff]  ;;  %v415_v54 = vld [vmem:[#allocation8 + $0xd8] sm:$0xff] }
  0x35   :  { %3505 = vmatprep.subr.bf16.mxu1 %v5505_v35  ;;  %v410_v50 = vld [vmem:[#allocation8 + $0xb0] sm:$0xff]  ;;  %3402 = vmatmul.mubr.msk.f32.gmra.mrb[2].mxu1 %vm105_vm0, %v68_v34  ;;  %v417_v53 = vld [vmem:[#allocation8 + $0xe8] sm:$0xff]  ;;  %v419_v56 = vld [vmem:[#allocation8 + $0xf8] sm:$0xff] }
  0x36   :  { %3475 = vmatpush1.bf16.msra.mxu0 %v5507_v36  ;;  %3507 = vmatpush1.bf16.msra.mxu1 %v5511_v39  ;;  %v5530_v55 = vpack.c.bf16 %v410_v50, %v406_v49  ;;  %v412_v57 = vld [vmem:[#allocation8 + $0xc0] sm:$0xff]  ;;  %v5534_v59 = vpack.c.bf16 %v417_v53, %v413_v52  ;;  %v414_v60 = vld [vmem:[#allocation8 + $0xd0] sm:$0xff]  ;;  %v5538_v62 = vpack.c.bf16 %v419_v56, %v415_v54  ;;  %v421_v63 = vld [vmem:[#allocation8 + $0x108] sm:$0xff] }
  0x37   :  { %206 = vmatprep.mubr.f32.mxu0 %v6697_v1  ;;  %v416_v58 = vld [vmem:[#allocation8 + $0xe0] sm:$0xff]  ;;  %319 = vmatprep.mubr.f32.mxu1 %v6697_v1  ;;  %v418_v61 = vld [vmem:[#allocation8 + $0xf0] sm:$0xff]  ;;  %v425_v0 = vld [vmem:[#allocation8 + $0x128] sm:$0xff] }
  0x38   :  { %3477 = vmatprep.subr.bf16.mxu0 %v5515_v43  ;;  %3395 = vmatmul.mubr.msk.f32.gmra.mrb[4].mxu0 %vm105_vm0, %v69_v47  ;;  %v5545_v3 = vpack.c.bf16 %v416_v58, %v412_v57  ;;  %v423_v4 = vld [vmem:[#allocation8 + $0x118] sm:$0xff]  ;;  %v5549_v6 = vpack.c.bf16 %v418_v61, %v414_v60  ;;  %v420_v7 = vld [vmem:[#allocation8 + $0x100] sm:$0xff]  ;;  %v5553_v9 = vpack.c.bf16 %v425_v0, %v421_v63  ;;  %v422_v10 = vld [vmem:[#allocation8 + $0x110] sm:$0xff] }
  0x39   :  { %3509 = vmatprep.subr.bf16.mxu1 %v5522_v48  ;;  %3403 = vmatmul.mubr.msk.f32.gmra.mrb[4].mxu1 %vm105_vm0, %v69_v47  ;;  %v427_v5 = vld [vmem:[#allocation8 + $0x138] sm:$0xff]  ;;  %v424_v8 = vld [vmem:[#allocation8 + $0x120] sm:$0xff]  ;;  %v426_v11 = vld [vmem:[#allocation8 + $0x130] sm:$0xff] }
  0x3a   :  { %3479 = vmatpush1.bf16.msra.mxu0 %v5526_v51  ;;  %3511 = vmatpush1.bf16.msra.mxu1 %v5530_v55  ;;  %v5557_v12 = vpack.c.bf16 %v427_v5, %v423_v4  ;;  %v429_v13 = vld [vmem:[#allocation8 + $0x148] sm:$0xff]  ;;  %v71_v15 = vld [vmem:[%s6688_s0 + $0x20] sm:$0xff]  ;;  %v5564_v16 = vpack.c.bf16 %v424_v8, %v420_v7  ;;  %v5568_v20 = vpack.c.bf16 %v426_v11, %v422_v10  ;;  %v430_v27 = vld [vmem:[#allocation8 + $0x150] sm:$0xff] }
  0x3b   :  { %212 = vmatprep.mubr.f32.mxu0 %v6697_v1  ;;  %325 = vmatprep.mubr.f32.mxu1 %v6697_v1  ;;  %v433_v14 = vld [vmem:[#allocation8 + $0x168] sm:$0xff]  ;;  %v431_v17 = vld [vmem:[#allocation8 + $0x158] sm:$0xff]  ;;  %v428_v21 = vld [vmem:[#allocation8 + $0x140] sm:$0xff] }
  0x3c   :  { %3481 = vmatprep.subr.bf16.mxu0 %v5534_v59  ;;  %3396 = vmatmul.mubr.msk.f32.gmra.mrb[6].mxu0 %vm105_vm0, %v70_v2  ;;  %v435_v19 = vld [vmem:[#allocation8 + $0x178] sm:$0xff]  ;;  %v432_v24 = vld [vmem:[#allocation8 + $0x160] sm:$0xff]  ;;  %v5572_v25 = vpack.c.bf16 %v433_v14, %v429_v13  ;;  %v434_v28 = vld [vmem:[#allocation8 + $0x170] sm:$0xff] }
  0x3d   :  { %3513 = vmatprep.subr.bf16.mxu1 %v5538_v62  ;;  %3404 = vmatmul.mubr.msk.f32.gmra.mrb[6].mxu1 %vm105_vm0, %v70_v2  ;;  %v5576_v29 = vpack.c.bf16 %v435_v19, %v431_v17  ;;  %v437_v31 = vld [vmem:[#allocation8 + $0x188] sm:$0xff]  ;;  %v5583_v34 = vpack.c.bf16 %v432_v24, %v428_v21  ;;  %v439_v37 = vld [vmem:[#allocation8 + $0x198] sm:$0xff]  ;;  %v5587_v40 = vpack.c.bf16 %v434_v28, %v430_v27  ;;  %v436_v41 = vld [vmem:[#allocation8 + $0x180] sm:$0xff] }
  0x3e   :  { %3483 = vmatpush1.bf16.msra.mxu0 %v5545_v3  ;;  %3515 = vmatpush1.bf16.msra.mxu1 %v5549_v6  ;;  %v441_v32 = vld [vmem:[#allocation8 + $0x1a8] sm:$0xff]  ;;  %v443_v38 = vld [vmem:[#allocation8 + $0x1b8] sm:$0xff]  ;;  %v440_v42 = vld [vmem:[#allocation8 + $0x1a0] sm:$0xff] }
  0x3f   :  { %218 = vmatprep.mubr.f32.mxu0 %v6697_v1  ;;  %331 = vmatprep.mubr.f32.mxu1 %v6697_v1  ;;  %v72_v33 = vld [vmem:[%s6688_s0 + $0x28] sm:$0xff]  ;;  %v5591_v44 = vpack.c.bf16 %v441_v32, %v437_v31  ;;  %v438_v45 = vld [vmem:[#allocation8 + $0x190] sm:$0xff]  ;;  %v5595_v47 = vpack.c.bf16 %v443_v38, %v439_v37  ;;  %v5602_v53 = vpack.c.bf16 %v440_v42, %v436_v41  ;;  %v447_v54 = vld [vmem:[#allocation8 + $0x1d8] sm:$0xff] }
  0x40   :  { %3485 = vmatprep.subr.bf16.mxu0 %v5553_v9  ;;  %3397 = vmatmul.mubr.msk.f32.gmra.mrb[8].mxu0 %vm105_vm0, %v71_v15  ;;  %v442_v46 = vld [vmem:[#allocation8 + $0x1b0] sm:$0xff]  ;;  %v445_v49 = vld [vmem:[#allocation8 + $0x1c8] sm:$0xff]  ;;  %v451_v56 = vld [vmem:[#allocation8 + $0x1f8] sm:$0xff] }
  0x41   :  { %3517 = vmatprep.subr.bf16.mxu1 %v5557_v12  ;;  %3405 = vmatmul.mubr.msk.f32.gmra.mrb[8].mxu1 %vm105_vm0, %v71_v15  ;;  %v449_v50 = vld [vmem:[#allocation8 + $0x1e8] sm:$0xff]  ;;  %v5606_v57 = vpack.c.bf16 %v442_v46, %v438_v45  ;;  %v444_v58 = vld [vmem:[#allocation8 + $0x1c0] sm:$0xff]  ;;  %v446_v63 = vld [vmem:[#allocation8 + $0x1d0] sm:$0xff]  ;;  %v5614_v2 = vpack.c.bf16 %v451_v56, %v447_v54 }
  0x42   :  { %3487 = vmatpush1.bf16.msra.mxu0 %v5564_v16  ;;  %3519 = vmatpush1.bf16.msra.mxu1 %v5568_v20  ;;  %v73_v52 = vld [vmem:[%s6688_s0 + $0x30] sm:$0xff]  ;;  %v448_v60 = vld [vmem:[#allocation8 + $0x1e0] sm:$0xff]  ;;  %v5610_v61 = vpack.c.bf16 %v449_v50, %v445_v49  ;;  %v74_v7 = vld [vmem:[%s6688_s0 + $0x38] sm:$0xff] }
  0x43   :  { %224 = vmatprep.mubr.f32.mxu0 %v6697_v1  ;;  %337 = vmatprep.mubr.f32.mxu1 %v6697_v1  ;;  %v450_v0 = vld [vmem:[#allocation8 + $0x1f0] sm:$0xff]  ;;  %v453_v4 = vld [vmem:[#allocation10 + $0x8] sm:$0xff]  ;;  %v5621_v8 = vpack.c.bf16 %v448_v60, %v444_v58  ;;  %v455_v10 = vld [vmem:[#allocation10 + $0x18] sm:$0xff] }
  0x44   :  { %3489 = vmatprep.subr.bf16.mxu0 %v5572_v25  ;;  %3398 = vmatmul.mubr.msk.f32.gmra.mrb[10].mxu0 %vm105_vm0, %v72_v33  ;;  %v457_v5 = vld [vmem:[#allocation10 + $0x28] sm:$0xff]  ;;  %v459_v11 = vld [vmem:[#allocation10 + $0x38] sm:$0xff]  ;;  %v5625_v13 = vpack.c.bf16 %v450_v0, %v446_v63  ;;  %v452_v14 = vld [vmem:[#allocation10] sm:$0xff] }
  0x45   :  { %3521 = vmatprep.subr.bf16.mxu1 %v5576_v29  ;;  %3406 = vmatmul.mubr.msk.f32.gmra.mrb[10].mxu1 %vm105_vm0, %v72_v33  ;;  %v456_v15 = vld [vmem:[#allocation10 + $0x20] sm:$0xff]  ;;  %v454_v17 = vld [vmem:[#allocation10 + $0x10] sm:$0xff]  ;;  %v5629_v19 = vpack.c.bf16 %v457_v5, %v453_v4  ;;  %v461_v24 = vld [vmem:[#allocation10 + $0x48] sm:$0xff]  ;;  %v5633_v28 = vpack.c.bf16 %v459_v11, %v455_v10 }
  0x46   :  { %3491 = vmatpush1.bf16.msra.mxu0 %v5583_v34  ;;  %3523 = vmatpush1.bf16.msra.mxu1 %v5587_v40  ;;  %v458_v21 = vld [vmem:[#allocation10 + $0x30] sm:$0xff]  ;;  %v465_v27 = vld [vmem:[#allocation10 + $0x68] sm:$0xff]  ;;  %v463_v31 = vld [vmem:[#allocation10 + $0x58] sm:$0xff]  ;;  %v5637_v33 = vpack.c.bf16 %v456_v15, %v452_v14 }
  0x47   :  { %230 = vmatprep.mubr.f32.mxu0 %v6697_v1  ;;  %343 = vmatprep.mubr.f32.mxu1 %v6697_v1  ;;  %v467_v32 = vld [vmem:[#allocation10 + $0x78] sm:$0xff]  ;;  %v5641_v37 = vpack.c.bf16 %v458_v21, %v454_v17  ;;  %v5643_v38 = vpack.c.bf16 %v465_v27, %v461_v24  ;;  %v460_v41 = vld [vmem:[#allocation10 + $0x40] sm:$0xff]  ;;  %v462_v45 = vld [vmem:[#allocation10 + $0x50] sm:$0xff] }
  0x48   :  { %3493 = vmatprep.subr.bf16.mxu0 %v5591_v44  ;;  %3399 = vmatmul.mubr.msk.f32.gmra.mrb[12].mxu0 %vm105_vm0, %v73_v52  ;;  %v464_v42 = vld [vmem:[#allocation10 + $0x60] sm:$0xff]  ;;  %v5647_v46 = vpack.c.bf16 %v467_v32, %v463_v31  ;;  %v466_v49 = vld [vmem:[#allocation10 + $0x70] sm:$0xff]  ;;  %v469_v50 = vld [vmem:[#allocation10 + $0x88] sm:$0xff] }
  0x49   :  { %3525 = vmatprep.subr.bf16.mxu1 %v5595_v47  ;;  %3407 = vmatmul.mubr.msk.f32.gmra.mrb[12].mxu1 %vm105_vm0, %v73_v52  ;;  %v473_v52 = vld [vmem:[#allocation10 + $0xa8] sm:$0xff]  ;;  %v471_v54 = vld [vmem:[#allocation10 + $0x98] sm:$0xff]  ;;  %v5653_v58 = vpack.c.bf16 %v464_v42, %v460_v41  ;;  %v5657_v60 = vpack.c.bf16 %v466_v49, %v462_v45  ;;  %v468_v0 = vld [vmem:[#allocation10 + $0x80] sm:$0xff] }
  0x4a   :  { %3495 = vmatpush1.bf16.msra.mxu0 %v5602_v53  ;;  %3527 = vmatpush1.bf16.msra.mxu1 %v5606_v57  ;;  %v475_v56 = vld [vmem:[#allocation10 + $0xb8] sm:$0xff]  ;;  %v5659_v63 = vpack.c.bf16 %v473_v52, %v469_v50  ;;  %v472_v4 = vld [vmem:[#allocation10 + $0xa0] sm:$0xff]  ;;  %v470_v5 = vld [vmem:[#allocation10 + $0x90] sm:$0xff] }
  0x4b   :  { %236 = vmatprep.mubr.f32.mxu0 %v6697_v1  ;;  %349 = vmatprep.mubr.f32.mxu1 %v6697_v1  ;;  %v474_v10 = vld [vmem:[#allocation10 + $0xb0] sm:$0xff]  ;;  %v477_v11 = vld [vmem:[#allocation10 + $0xc8] sm:$0xff]  ;;  %v479_v15 = vld [vmem:[#allocation10 + $0xd8] sm:$0xff]  ;;  %v5667_v21 = vpack.c.bf16 %v472_v4, %v468_v0 }
  0x4c   :  { %3497 = vmatprep.subr.bf16.mxu0 %v5610_v61  ;;  %3400 = vmatmul.mubr.msk.f32.gmra.mrb[14].mxu0 %vm105_vm0, %v74_v7  ;;  %v481_v14 = vld [vmem:[#allocation10 + $0xe8] sm:$0xff]  ;;  %v483_v17 = vld [vmem:[#allocation10 + $0xf8] sm:$0xff]  ;;  %v5671_v24 = vpack.c.bf16 %v474_v10, %v470_v5  ;;  %v476_v31 = vld [vmem:[#allocation10 + $0xc0] sm:$0xff] }
  0x4d   :  { %3529 = vmatprep.subr.bf16.mxu1 %v5614_v2  ;;  %3408 = vmatmul.mubr.msk.f32.gmra.mrb[14].mxu1 %vm105_vm0, %v74_v7  ;;  %v5662_v7 = vpack.c.bf16 %v475_v56, %v471_v54  ;;  %6833 = vst [vmem:[#allocation16_spill] sm:$0xff] %v5667_v21  ;;  %v5673_v27 = vpack.c.bf16 %v481_v14, %v477_v11  ;;  %v480_v32 = vld [vmem:[#allocation10 + $0xe0] sm:$0xff]  ;;  %v478_v41 = vld [vmem:[#allocation10 + $0xd0] sm:$0xff]  ;;  %v485_v49 = vld [vmem:[#allocation10 + $0x108] sm:$0xff] }
  0x4e   :  { %3499 = vmatpush1.bf16.msra.mxu0 %v5621_v8  ;;  %3531 = vmatpush1.bf16.msra.mxu1 %v5625_v13  ;;  %6834 = vst [vmem:[#allocation17_spill] sm:$0xff] %v5671_v24  ;;  %v5676_v42 = vpack.c.bf16 %v483_v17, %v479_v15  ;;  %v482_v45 = vld [vmem:[#allocation10 + $0xf0] sm:$0xff]  ;;  %v489_v50 = vld [vmem:[#allocation10 + $0x128] sm:$0xff]  ;;  %v487_v52 = vld [vmem:[#allocation10 + $0x118] sm:$0xff]  ;;  %v5679_v56 = vpack.c.bf16 %v480_v32, %v476_v31 }
  0x4f   :  { %674 = vmatprep.mubr.f32.mxu0 %v6697_v1  ;;  %745 = vmatprep.mubr.f32.mxu1 %v6697_v1  ;;  %6835 = vst [vmem:[#allocation18_spill] sm:$0xff] %v5673_v27  ;;  %v491_v54 = vld [vmem:[#allocation10 + $0x138] sm:$0xff]  ;;  %v5683_v0 = vpack.c.bf16 %v482_v45, %v478_v41  ;;  %v5685_v4 = vpack.c.bf16 %v489_v50, %v485_v49  ;;  %v484_v5 = vld [vmem:[#allocation10 + $0x100] sm:$0xff]  ;;  %v486_v14 = vld [vmem:[#allocation10 + $0x110] sm:$0xff] }
  0x50   :  { %3533 = vmatprep.subr.bf16.mxu0 %v5629_v19  ;;  %3597 = vmatprep.subr.bf16.mxu1 %v5633_v28  ;;  %6836 = vst [vmem:[#allocation19_spill] sm:$0xff] %v5676_v42  ;;  %6837 = vst [vmem:[#allocation20_spill] sm:$0xff] %v5679_v56  ;;  %v488_v10 = vld [vmem:[#allocation10 + $0x120] sm:$0xff]  ;;  %v5688_v11 = vpack.c.bf16 %v491_v54, %v487_v52  ;;  %v490_v15 = vld [vmem:[#allocation10 + $0x130] sm:$0xff] }
  0x51   :  { %675 = vmatmul.mubr.f32.vlgmr.msra.gmra.mrb[0].mxu0 %v6697_v1  ;;  %746 = vmatmul.mubr.f32.vlgmr.msra.gmra.mrb[0].mxu1 %v6697_v1  ;;  %6838 = vst [vmem:[#allocation21_spill] sm:$0xff] %v5683_v0  ;;  %6839 = vst [vmem:[#allocation22_spill] sm:$0xff] %v5685_v4  ;;  %v5691_v17 = vpack.c.bf16 %v488_v10, %v484_v5  ;;  %v5695_v31 = vpack.c.bf16 %v490_v15, %v486_v14  ;;  %v493_v32 = vld [vmem:[#allocation10 + $0x148] sm:$0xff]  ;;  %v495_v45 = vld [vmem:[#allocation10 + $0x158] sm:$0xff] }
  0x52   :  { %3535 = vmatpush1.bf16.msra.mxu0 %v5637_v33  ;;  %3599 = vmatpush1.bf16.msra.mxu1 %v5641_v37  ;;  %6840 = vst [vmem:[#allocation23_spill] sm:$0xff] %v5688_v11  ;;  %v497_v41 = vld [vmem:[#allocation10 + $0x168] sm:$0xff]  ;;  %v499_v50 = vld [vmem:[#allocation10 + $0x178] sm:$0xff]  ;;  %v492_v52 = vld [vmem:[#allocation10 + $0x140] sm:$0xff] }
  0x53   :  { %3537 = vmatprep.subr.bf16.mxu0 %v5643_v38  ;;  %3601 = vmatprep.subr.bf16.mxu1 %v5647_v46  ;;  %6841 = vst [vmem:[#allocation24_spill] sm:$0xff] %v5691_v17  ;;  %6842 = vst [vmem:[#allocation25_spill] sm:$0xff] %v5695_v31  ;;  %v5700_v49 = vpack.c.bf16 %v497_v41, %v493_v32  ;;  %v496_v54 = vld [vmem:[#allocation10 + $0x160] sm:$0xff]  ;;  %v5702_v5 = vpack.c.bf16 %v499_v50, %v495_v45  ;;  %v494_v14 = vld [vmem:[#allocation10 + $0x150] sm:$0xff] }
  0x54   :  { %844 = vmatprep.mubr.f32.mxu0 %v6697_v1  ;;  %915 = vmatprep.mubr.f32.mxu1 %v6697_v1  ;;  %v5704_v10 = vpack.c.bf16 %v496_v54, %v492_v52  ;;  %v498_v15 = vld [vmem:[#allocation10 + $0x170] sm:$0xff]  ;;  %v505_v32 = vld [vmem:[#allocation10 + $0x1a8] sm:$0xff]  ;;  %v503_v41 = vld [vmem:[#allocation10 + $0x198] sm:$0xff] }
  0x55   :  { %6843 = vst [vmem:[#allocation26_spill] sm:$0xff] %v5700_v49  ;;  %6844 = vst [vmem:[#allocation27_spill] sm:$0xff] %v5702_v5  ;;  %v5707_v1 = vpack.c.bf16 %v498_v15, %v494_v14  ;;  %v507_v45 = vld [vmem:[#allocation10 + $0x1b8] sm:$0xff]  ;;  %v500_v50 = vld [vmem:[#allocation10 + $0x180] sm:$0xff] }
  0x56   :  { %3539 = vmatpush1.bf16.msra.mxu0 %v5653_v58  ;;  %3603 = vmatpush1.bf16.msra.mxu1 %v5657_v60  ;;  %6845 = vst [vmem:[#allocation28_spill] sm:$0xff] %v5704_v10  ;;  %v504_v52 = vld [vmem:[#allocation10 + $0x1a0] sm:$0xff]  ;;  %v5714_v54 = vpack.c.bf16 %v507_v45, %v503_v41  ;;  %v502_v14 = vld [vmem:[#allocation10 + $0x190] sm:$0xff]  ;;  %v515_v41 = vld [vmem:[#allocation10 + $0x1f8] sm:$0xff] }
  0x57   :  { %3541 = vmatprep.subr.bf16.mxu0 %v5659_v63  ;;  %3605 = vmatprep.subr.bf16.mxu1 %v5662_v7  ;;  %6846 = vst [vmem:[#allocation29_spill] sm:$0xff] %v5707_v1  ;;  %v506_v15 = vld [vmem:[#allocation10 + $0x1b0] sm:$0xff]  ;;  %v508_v45 = vld [vmem:[#allocation10 + $0x1c0] sm:$0xff] }
  0x58   :  { %6848 = vst [vmem:[#allocation31_spill] sm:$0xff] %v5714_v54 }
  0x5a   :  { %3543 = vmatpush1.bf16.msra.mxu0 %v5667_v21  ;;  %3607 = vmatpush1.bf16.msra.mxu1 %v5671_v24 }
  0x5b   :  { %3545 = vmatprep.subr.bf16.mxu0 %v5673_v27  ;;  %3609 = vmatprep.subr.bf16.mxu1 %v5676_v42 }
  0x5e   :  { %3547 = vmatpush1.bf16.msra.mxu0 %v5679_v56  ;;  %3611 = vmatpush1.bf16.msra.mxu1 %v5683_v0  ;;  %v571_v0 = vld [vmem:[#allocation10 + $0x3b8] sm:$0xff] }
  0x5f   :  { %3549 = vmatprep.subr.bf16.mxu0 %v5685_v4  ;;  %3613 = vmatprep.subr.bf16.mxu1 %v5688_v11  ;;  %v5716_v11 = vpack.c.bf16 %v504_v52, %v500_v50  ;;  %v512_v50 = vld [vmem:[#allocation10 + $0x1e0] sm:$0xff]  ;;  %v567_v4 = vld [vmem:[#allocation10 + $0x398] sm:$0xff] }
  0x61   :  { %6849 = vst [vmem:[#allocation32_spill] sm:$0xff] %v5716_v11 }
  0x62   :  { %3551 = vmatpush1.bf16.msra.mxu0 %v5691_v17  ;;  %3615 = vmatpush1.bf16.msra.mxu1 %v5695_v31  ;;  %v501_v31 = vld [vmem:[#allocation10 + $0x188] sm:$0xff] }
  0x63   :  { %3553 = vmatprep.subr.bf16.mxu0 %v5700_v49  ;;  %3617 = vmatprep.subr.bf16.mxu1 %v5702_v5  ;;  %v5712_v17 = vpack.c.bf16 %v505_v32, %v501_v31  ;;  %v5719_v5 = vpack.c.bf16 %v506_v15, %v502_v14  ;;  %v513_v31 = vld [vmem:[#allocation10 + $0x1e8] sm:$0xff]  ;;  %v511_v32 = vld [vmem:[#allocation10 + $0x1d8] sm:$0xff]  ;;  %v5728_v49 = vpack.c.bf16 %v512_v50, %v508_v45  ;;  %v510_v14 = vld [vmem:[#allocation10 + $0x1d0] sm:$0xff] }
  0x64   :  { %v5726_v52 = vpack.c.bf16 %v515_v41, %v511_v32  ;;  %v514_v15 = vld [vmem:[#allocation10 + $0x1f0] sm:$0xff]  ;;  %v523_v32 = vld [vmem:[#allocation10 + $0x238] sm:$0xff]  ;;  %v516_v41 = vld [vmem:[#allocation10 + $0x200] sm:$0xff] }
  0x65   :  { %6847 = vst [vmem:[#allocation30_spill] sm:$0xff] %v5712_v17  ;;  %6850 = vst [vmem:[#allocation33_spill] sm:$0xff] %v5719_v5  ;;  %v520_v45 = vld [vmem:[#allocation10 + $0x220] sm:$0xff] }
  0x66   :  { %3555 = vmatpush1.bf16.msra.mxu0 %v5704_v10  ;;  %3619 = vmatpush1.bf16.msra.mxu1 %v5707_v1  ;;  %v509_v1 = vld [vmem:[#allocation10 + $0x1c8] sm:$0xff]  ;;  %6852 = vst [vmem:[#allocation35_spill] sm:$0xff] %v5726_v52  ;;  %6853 = vst [vmem:[#allocation36_spill] sm:$0xff] %v5728_v49 }
  0x67   :  { %3557 = vmatprep.subr.bf16.mxu0 %v5712_v17  ;;  %3621 = vmatprep.subr.bf16.mxu1 %v5714_v54  ;;  %v5724_v10 = vpack.c.bf16 %v513_v31, %v509_v1  ;;  %v5731_v54 = vpack.c.bf16 %v514_v15, %v510_v14  ;;  %v521_v1 = vld [vmem:[#allocation10 + $0x228] sm:$0xff]  ;;  %v519_v31 = vld [vmem:[#allocation10 + $0x218] sm:$0xff]  ;;  %v5740_v17 = vpack.c.bf16 %v520_v45, %v516_v41  ;;  %v518_v14 = vld [vmem:[#allocation10 + $0x210] sm:$0xff] }
  0x68   :  { %v5738_v50 = vpack.c.bf16 %v523_v32, %v519_v31  ;;  %v522_v15 = vld [vmem:[#allocation10 + $0x230] sm:$0xff]  ;;  %v531_v31 = vld [vmem:[#allocation10 + $0x278] sm:$0xff]  ;;  %v524_v32 = vld [vmem:[#allocation10 + $0x240] sm:$0xff] }
  0x69   :  { %6851 = vst [vmem:[#allocation34_spill] sm:$0xff] %v5724_v10  ;;  %6854 = vst [vmem:[#allocation37_spill] sm:$0xff] %v5731_v54  ;;  %v528_v41 = vld [vmem:[#allocation10 + $0x260] sm:$0xff] }
  0x6a   :  { %3559 = vmatpush1.bf16.msra.mxu0 %v5716_v11  ;;  %3623 = vmatpush1.bf16.msra.mxu1 %v5719_v5  ;;  %v517_v5 = vld [vmem:[#allocation10 + $0x208] sm:$0xff]  ;;  %6856 = vst [vmem:[#allocation39_spill] sm:$0xff] %v5738_v50  ;;  %6857 = vst [vmem:[#allocation40_spill] sm:$0xff] %v5740_v17 }
  0x6b   :  { %3561 = vmatprep.subr.bf16.mxu0 %v5724_v10  ;;  %3625 = vmatprep.subr.bf16.mxu1 %v5726_v52  ;;  %v5736_v11 = vpack.c.bf16 %v521_v1, %v517_v5  ;;  %v5743_v52 = vpack.c.bf16 %v522_v15, %v518_v14  ;;  %v529_v5 = vld [vmem:[#allocation10 + $0x268] sm:$0xff]  ;;  %v527_v1 = vld [vmem:[#allocation10 + $0x258] sm:$0xff]  ;;  %v5752_v10 = vpack.c.bf16 %v528_v41, %v524_v32  ;;  %v526_v14 = vld [vmem:[#allocation10 + $0x250] sm:$0xff] }
  0x6c   :  { %v5750_v45 = vpack.c.bf16 %v531_v31, %v527_v1  ;;  %v530_v15 = vld [vmem:[#allocation10 + $0x270] sm:$0xff]  ;;  %v539_v1 = vld [vmem:[#allocation10 + $0x2b8] sm:$0xff]  ;;  %v532_v31 = vld [vmem:[#allocation10 + $0x280] sm:$0xff] }
  0x6d   :  { %6855 = vst [vmem:[#allocation38_spill] sm:$0xff] %v5736_v11  ;;  %6858 = vst [vmem:[#allocation41_spill] sm:$0xff] %v5743_v52  ;;  %v536_v32 = vld [vmem:[#allocation10 + $0x2a0] sm:$0xff] }
  0x6e   :  { %3563 = vmatpush1.bf16.msra.mxu0 %v5728_v49  ;;  %3627 = vmatpush1.bf16.msra.mxu1 %v5731_v54  ;;  %v525_v54 = vld [vmem:[#allocation10 + $0x248] sm:$0xff]  ;;  %6860 = vst [vmem:[#allocation43_spill] sm:$0xff] %v5750_v45  ;;  %6861 = vst [vmem:[#allocation44_spill] sm:$0xff] %v5752_v10 }
  0x6f   :  { %3565 = vmatprep.subr.bf16.mxu0 %v5736_v11  ;;  %3629 = vmatprep.subr.bf16.mxu1 %v5738_v50  ;;  %v5748_v49 = vpack.c.bf16 %v529_v5, %v525_v54  ;;  %v5755_v50 = vpack.c.bf16 %v530_v15, %v526_v14  ;;  %v537_v54 = vld [vmem:[#allocation10 + $0x2a8] sm:$0xff]  ;;  %v535_v5 = vld [vmem:[#allocation10 + $0x298] sm:$0xff]  ;;  %v5764_v11 = vpack.c.bf16 %v536_v32, %v532_v31  ;;  %v534_v14 = vld [vmem:[#allocation10 + $0x290] sm:$0xff] }
  0x70   :  { %v5762_v41 = vpack.c.bf16 %v539_v1, %v535_v5  ;;  %v538_v15 = vld [vmem:[#allocation10 + $0x2b0] sm:$0xff]  ;;  %v547_v5 = vld [vmem:[#allocation10 + $0x2f8] sm:$0xff]  ;;  %v540_v1 = vld [vmem:[#allocation10 + $0x2c0] sm:$0xff] }
  0x71   :  { %6859 = vst [vmem:[#allocation42_spill] sm:$0xff] %v5748_v49  ;;  %6862 = vst [vmem:[#allocation45_spill] sm:$0xff] %v5755_v50  ;;  %v544_v31 = vld [vmem:[#allocation10 + $0x2e0] sm:$0xff] }
  0x72   :  { %3567 = vmatpush1.bf16.msra.mxu0 %v5740_v17  ;;  %3631 = vmatpush1.bf16.msra.mxu1 %v5743_v52  ;;  %v533_v52 = vld [vmem:[#allocation10 + $0x288] sm:$0xff]  ;;  %6864 = vst [vmem:[#allocation47_spill] sm:$0xff] %v5762_v41  ;;  %6865 = vst [vmem:[#allocation48_spill] sm:$0xff] %v5764_v11 }
  0x73   :  { %3569 = vmatprep.subr.bf16.mxu0 %v5748_v49  ;;  %3633 = vmatprep.subr.bf16.mxu1 %v5750_v45  ;;  %v5760_v17 = vpack.c.bf16 %v537_v54, %v533_v52  ;;  %v5767_v45 = vpack.c.bf16 %v538_v15, %v534_v14  ;;  %v545_v52 = vld [vmem:[#allocation10 + $0x2e8] sm:$0xff]  ;;  %v543_v54 = vld [vmem:[#allocation10 + $0x2d8] sm:$0xff]  ;;  %v5776_v49 = vpack.c.bf16 %v544_v31, %v540_v1  ;;  %v542_v14 = vld [vmem:[#allocation10 + $0x2d0] sm:$0xff] }
  0x74   :  { %v5774_v32 = vpack.c.bf16 %v547_v5, %v543_v54  ;;  %v546_v15 = vld [vmem:[#allocation10 + $0x2f0] sm:$0xff]  ;;  %v555_v54 = vld [vmem:[#allocation10 + $0x338] sm:$0xff]  ;;  %v548_v5 = vld [vmem:[#allocation10 + $0x300] sm:$0xff] }
  0x75   :  { %6863 = vst [vmem:[#allocation46_spill] sm:$0xff] %v5760_v17  ;;  %6866 = vst [vmem:[#allocation49_spill] sm:$0xff] %v5767_v45  ;;  %v552_v1 = vld [vmem:[#allocation10 + $0x320] sm:$0xff] }
  0x76   :  { %3571 = vmatpush1.bf16.msra.mxu0 %v5752_v10  ;;  %3635 = vmatpush1.bf16.msra.mxu1 %v5755_v50  ;;  %v541_v50 = vld [vmem:[#allocation10 + $0x2c8] sm:$0xff]  ;;  %6868 = vst [vmem:[#allocation51_spill] sm:$0xff] %v5774_v32  ;;  %6869 = vst [vmem:[#allocation52_spill] sm:$0xff] %v5776_v49 }
  0x77   :  { %3573 = vmatprep.subr.bf16.mxu0 %v5760_v17  ;;  %3637 = vmatprep.subr.bf16.mxu1 %v5762_v41  ;;  %v5772_v10 = vpack.c.bf16 %v545_v52, %v541_v50  ;;  %v5779_v41 = vpack.c.bf16 %v546_v15, %v542_v14  ;;  %v553_v50 = vld [vmem:[#allocation10 + $0x328] sm:$0xff]  ;;  %v551_v52 = vld [vmem:[#allocation10 + $0x318] sm:$0xff]  ;;  %v5788_v17 = vpack.c.bf16 %v552_v1, %v548_v5  ;;  %v550_v14 = vld [vmem:[#allocation10 + $0x310] sm:$0xff] }
  0x78   :  { %v5786_v31 = vpack.c.bf16 %v555_v54, %v551_v52  ;;  %v554_v15 = vld [vmem:[#allocation10 + $0x330] sm:$0xff]  ;;  %v563_v52 = vld [vmem:[#allocation10 + $0x378] sm:$0xff]  ;;  %v556_v54 = vld [vmem:[#allocation10 + $0x340] sm:$0xff] }
  0x79   :  { %6867 = vst [vmem:[#allocation50_spill] sm:$0xff] %v5772_v10  ;;  %6870 = vst [vmem:[#allocation53_spill] sm:$0xff] %v5779_v41  ;;  %v560_v5 = vld [vmem:[#allocation10 + $0x360] sm:$0xff] }
  0x7a   :  { %3575 = vmatpush1.bf16.msra.mxu0 %v5764_v11  ;;  %3639 = vmatpush1.bf16.msra.mxu1 %v5767_v45  ;;  %v549_v45 = vld [vmem:[#allocation10 + $0x308] sm:$0xff]  ;;  %6872 = vst [vmem:[#allocation55_spill] sm:$0xff] %v5786_v31  ;;  %6873 = vst [vmem:[#allocation56_spill] sm:$0xff] %v5788_v17 }
  0x7b   :  { %3577 = vmatprep.subr.bf16.mxu0 %v5772_v10  ;;  %3641 = vmatprep.subr.bf16.mxu1 %v5774_v32  ;;  %v5784_v11 = vpack.c.bf16 %v553_v50, %v549_v45  ;;  %v5791_v32 = vpack.c.bf16 %v554_v15, %v550_v14  ;;  %v561_v45 = vld [vmem:[#allocation10 + $0x368] sm:$0xff]  ;;  %v559_v50 = vld [vmem:[#allocation10 + $0x358] sm:$0xff]  ;;  %v5800_v10 = vpack.c.bf16 %v560_v5, %v556_v54  ;;  %v558_v14 = vld [vmem:[#allocation10 + $0x350] sm:$0xff] }
  0x7c   :  { %v5798_v1 = vpack.c.bf16 %v563_v52, %v559_v50  ;;  %v562_v15 = vld [vmem:[#allocation10 + $0x370] sm:$0xff]  ;;  %v564_v50 = vld [vmem:[#allocation10 + $0x380] sm:$0xff] }
  0x7d   :  { %6871 = vst [vmem:[#allocation54_spill] sm:$0xff] %v5784_v11  ;;  %6874 = vst [vmem:[#allocation57_spill] sm:$0xff] %v5791_v32  ;;  %v568_v52 = vld [vmem:[#allocation10 + $0x3a0] sm:$0xff]  ;;  %v566_v54 = vld [vmem:[#allocation10 + $0x390] sm:$0xff] }
  0x7e   :  { %3579 = vmatpush1.bf16.msra.mxu0 %v5776_v49  ;;  %3643 = vmatpush1.bf16.msra.mxu1 %v5779_v41  ;;  %v557_v41 = vld [vmem:[#allocation10 + $0x348] sm:$0xff]  ;;  %6876 = vst [vmem:[#allocation59_spill] sm:$0xff] %v5798_v1  ;;  %6877 = vst [vmem:[#allocation60_spill] sm:$0xff] %v5800_v10  ;;  %v5812_v5 = vpack.c.bf16 %v568_v52, %v564_v50  ;;  %v578_v50 = vld [vmem:[#allocation10 + $0x3f0] sm:$0xff] }
  0x7f   :  { %3581 = vmatprep.subr.bf16.mxu0 %v5784_v11  ;;  %3645 = vmatprep.subr.bf16.mxu1 %v5786_v31  ;;  %v5796_v49 = vpack.c.bf16 %v561_v45, %v557_v41  ;;  %v565_v11 = vld [vmem:[#allocation10 + $0x388] sm:$0xff]  ;;  %v5809_v45 = vpack.c.bf16 %v571_v0, %v567_v4  ;;  %v575_v0 = vld [vmem:[#allocation10 + $0x3d8] sm:$0xff] }
  0x80   :  { %v569_v31 = vld [vmem:[#allocation10 + $0x3a8] sm:$0xff]  ;;  %6881 = vst [vmem:[#allocation64_spill] sm:$0xff] %v5812_v5  ;;  %v579_v4 = vld [vmem:[#allocation10 + $0x3f8] sm:$0xff] }
  0x81   :  { %6875 = vst [vmem:[#allocation58_spill] sm:$0xff] %v5796_v49  ;;  %v5807_v41 = vpack.c.bf16 %v569_v31, %v565_v11  ;;  %6880 = vst [vmem:[#allocation63_spill] sm:$0xff] %v5809_v45  ;;  %v572_v31 = vld [vmem:[#allocation10 + $0x3c0] sm:$0xff] }
  0x82   :  { %3583 = vmatpush1.bf16.msra.mxu0 %v5788_v17  ;;  %3647 = vmatpush1.bf16.msra.mxu1 %v5791_v32  ;;  %v5803_v17 = vpack.c.bf16 %v562_v15, %v558_v14  ;;  %v570_v14 = vld [vmem:[#allocation10 + $0x3b0] sm:$0xff]  ;;  %v573_v15 = vld [vmem:[#allocation10 + $0x3c8] sm:$0xff]  ;;  %v576_v32 = vld [vmem:[#allocation10 + $0x3e0] sm:$0xff] }
  0x83   :  { %3585 = vmatprep.subr.bf16.mxu0 %v5796_v49  ;;  %3649 = vmatprep.subr.bf16.mxu1 %v5798_v1  ;;  %6879 = vst [vmem:[#allocation62_spill] sm:$0xff] %v5807_v41  ;;  %v577_v49 = vld [vmem:[#allocation10 + $0x3e8] sm:$0xff]  ;;  %v5816_v1 = vpack.c.bf16 %v570_v14, %v566_v54  ;;  %v5823_v52 = vpack.c.bf16 %v576_v32, %v572_v31 }
  0x84   :  { %6878 = vst [vmem:[#allocation61_spill] sm:$0xff] %v5803_v17  ;;  %v5818_v11 = vpack.c.bf16 %v577_v49, %v573_v15  ;;  %v85_v49 = vlaneseq }
  0x85   :  { %6882 = vst [vmem:[#allocation65_spill] sm:$0xff] %v5816_v1  ;;  %6885 = vst [vmem:[#allocation68_spill] sm:$0xff] %v5823_v52 }
  0x86   :  { %3587 = vmatpush1.bf16.msra.mxu0 %v5800_v10  ;;  %3651 = vmatpush1.bf16.msra.mxu1 %v5803_v17  ;;  %6883 = vst [vmem:[#allocation66_spill] sm:$0xff] %v5818_v11  ;;  %v5820_v10 = vpack.c.bf16 %v579_v4, %v575_v0  ;;  %v574_v17 = vld [vmem:[#allocation10 + $0x3d0] sm:$0xff]  ;;  %v5834_v14 = vshrl.u32 %v85_v49, 7 }
  0x87   :  { %3589 = vmatprep.subr.bf16.mxu0 %v5807_v41  ;;  %3653 = vmatprep.subr.bf16.mxu1 %v5809_v45  ;;  %v5827_v54 = vpack.c.bf16 %v578_v50, %v574_v17  ;;  %v83_v17 = vld [vmem:[%s6690_s2] sm:$0xf] }
  0x88   :  { %6884 = vst [vmem:[#allocation67_spill] sm:$0xff] %v5820_v10  ;;  %6887 = vst [vmem:[#allocation70_spill] sm:$0xff] %v5834_v14  ;;  %v6793_v32 = vsub.s32 0, %v5834_v14  ;;  %v6794_v15 = vsub.s32 1, %v5834_v14  ;;  %v6801_v50 = vsub.s32 3, %v5834_v14 }
  0x89   :  { %6886 = vst [vmem:[#allocation69_spill] sm:$0xff] %v5827_v54 }
  0x8a   :  { %3591 = vmatpush1.bf16.msra.mxu0 %v5812_v5  ;;  %3655 = vmatpush1.bf16.msra.mxu1 %v5816_v1  ;;  %v5843_v0 = vrot.slane %v83_v17, %v6793_v32  ;;  %v5847_v4 = vrot.slane %v83_v17, %v6794_v15  ;;  %v5854_v32 = vrot.slane %v83_v17, %v6801_v50  ;;  %v6810_v15 = vsub.s32 2, %v5834_v14 }
  0x8b   :  { %3593 = vmatprep.subr.bf16.mxu0 %v5818_v11  ;;  %3657 = vmatprep.subr.bf16.mxu1 %v5820_v10 }
  0x8c   :  { %6888 = vst [vmem:[#allocation71_spill] sm:$0xff] %v5843_v0  ;;  %6889 = vst [vmem:[#allocation72_spill] sm:$0xff] %v5847_v4 }
  0x8d   :  { %6890 = vst [vmem:[#allocation73_spill] sm:$0xff] %v5854_v32 }
  0x8e   :  { %3595 = vmatpush1.bf16.msra.mxu0 %v5823_v52  ;;  %3659 = vmatpush1.bf16.msra.mxu1 %v5827_v54 }
  0x8f   :  { %3661 = vmatprep.subr.bf16.mxu0 %v5487_v18  ;;  %3693 = vmatprep.subr.bf16.mxu1 %v5489_v22 }
 0x124   :  { %v676_v31 = vpop.f32.mrb[0].mxu0  ;;  %v747_v22 = vpop.f32.mrb[0].mxu1 }
 0x125   :  { %v5004_v49 = vadd.f32 %v676_v31, %v5843_v0  ;;  %v678_v18 = vpop.f32.mrb[1].mxu0  ;;  %v749_v52 = vpop.f32.mrb[1].mxu1  ;;  %v5860_v31 = vrot.slane %v83_v17, %v6810_v15  ;;  %v6906_v15 = vld [vmem:[#allocation35_spill] sm:$0xff] }
 0x126   :  { %v5005_v54 = vadd.f32 %v678_v18, %v5847_v4  ;;  %v5021_v1 = vadd.f32 %v749_v52, %v5854_v32 }
 0x127   :  { %v3409_v10 = vmul.f32 -1.442695, %v5004_v49  ;;  %v5020_v18 = vadd.f32 %v747_v22, %v5860_v31 }
 0x128   :  { %v3410_v11 = vmul.f32 -1.442695, %v5005_v54  ;;  %v3411_v0 = vmul.f32 -1.442695, %v5021_v1 }
 0x129   :  { %5073 = vpow2.f32 %v3409_v10 }
 0x12a   :  { %5075 = vpow2.f32 %v3410_v11 }
 0x12b   :  { %5077 = vpow2.f32 %v3411_v0  ;;  %v6895_v0 = vld [vmem:[#allocation24_spill] sm:$0xff] }
 0x12c   :  { %5079 = vtanh.f32 %v5020_v18  ;;  %v6897_v18 = vld [vmem:[#allocation26_spill] sm:$0xff] }
 0x133   :  { %v5074_v4 = vpop.eup %5073 }
 0x134   :  { %v5076_v49 = vpop.eup %5075  ;;  %v759_v54 = vadd.f32 1.0, %v5074_v4 }
 0x135   :  { %v765_v50 = vadd.f32 1.0, %v5076_v49  ;;  %v5078_v10 = vpop.eup %5077  ;;  %v6898_v49 = vld [vmem:[#allocation27_spill] sm:$0xff] }
 0x136   :  { %5081 = vrcp.f32 %v759_v54  ;;  %v5080_v5 = vpop.eup %5079  ;;  %v772_v32 = vadd.f32 1.0, %v5078_v10  ;;  %v6899_v54 = vld [vmem:[#allocation28_spill] sm:$0xff]  ;;  %v6900_v10 = vld [vmem:[#allocation29_spill] sm:$0xff] }
 0x137   :  { %5083 = vrcp.f32 %v765_v50  ;;  %v6896_v50 = vld [vmem:[#allocation25_spill] sm:$0xff] }
 0x138   :  { %5085 = vrcp.f32 %v772_v32  ;;  %v6894_v32 = vld [vmem:[#allocation23_spill] sm:$0xff] }
 0x140   :  { %v5082_v11 = vpop.eup %5081 }
 0x141   :  { %v5084_v45 = vpop.eup %5083  ;;  %v776_v52 = vmul.f32 %v5082_v11, %v5080_v5  ;;  %v6891_v5 = vmov 0.0   ;;  %v6901_v11 = vld [vmem:[#allocation30_spill] sm:$0xff] }
 0x142   :  { %v775_v14 = vmul.f32 0.0, %v5084_v45  ;;  %v5086_v22 = vpop.eup %5085  ;;  %v6892_v45 = vld [vmem:[#allocation21_spill] sm:$0xff] }
 0x144   :  { %v5863_v17 = vadd.f32 %v776_v52, %v775_v14  ;;  %v6893_v14 = vld [vmem:[#allocation22_spill] sm:$0xff]  ;;  %v6902_v52 = vld [vmem:[#allocation31_spill] sm:$0xff] }
 0x146   :  { %5087 = vtanh.f32 %v5863_v17 }
 0x150   :  { %v5088_v1 = vpop.eup %5087 }
 0x151   :  { %v779_v4 = vmul.f32 %v5088_v1, %v5086_v22  ;;  %v6903_v22 = vld [vmem:[#allocation32_spill] sm:$0xff]  ;;  %v6904_v1 = vld [vmem:[#allocation33_spill] sm:$0xff] }
 0x153   :  { %845 = vmatmul.mubr.f32.vlgmr.msra.gmra.mrb[16].mxu0 %v779_v4  ;;  %916 = vmatmul.mubr.f32.vlgmr.msra.gmra.mrb[16].mxu1 %v779_v4 }
 0x154   :  { %3663 = vmatpush1.bf16.msra.mxu0 %v5491_v23  ;;  %3695 = vmatpush1.bf16.msra.mxu1 %v5494_v26 }
 0x155   :  { %3665 = vmatprep.subr.bf16.mxu0 %v5498_v30  ;;  %3697 = vmatprep.subr.bf16.mxu1 %v5505_v35 }
 0x156   :  { %1017 = vmatprep.mubr.f32.mxu0 %v6891_v5  ;;  %1088 = vmatprep.mubr.f32.mxu1 %v6891_v5 }
 0x158   :  { %3667 = vmatpush1.bf16.msra.mxu0 %v5507_v36  ;;  %3699 = vmatpush1.bf16.msra.mxu1 %v5511_v39 }
 0x159   :  { %3669 = vmatprep.subr.bf16.mxu0 %v5515_v43  ;;  %3701 = vmatprep.subr.bf16.mxu1 %v5522_v48 }
 0x15c   :  { %3671 = vmatpush1.bf16.msra.mxu0 %v5526_v51  ;;  %3703 = vmatpush1.bf16.msra.mxu1 %v5530_v55 }
 0x15d   :  { %3673 = vmatprep.subr.bf16.mxu0 %v5534_v59  ;;  %3705 = vmatprep.subr.bf16.mxu1 %v5538_v62 }
 0x160   :  { %3675 = vmatpush1.bf16.msra.mxu0 %v5545_v3  ;;  %3707 = vmatpush1.bf16.msra.mxu1 %v5549_v6 }
 0x161   :  { %3677 = vmatprep.subr.bf16.mxu0 %v5553_v9  ;;  %3709 = vmatprep.subr.bf16.mxu1 %v5557_v12 }
 0x164   :  { %3679 = vmatpush1.bf16.msra.mxu0 %v5564_v16  ;;  %3711 = vmatpush1.bf16.msra.mxu1 %v5568_v20 }
 0x165   :  { %3681 = vmatprep.subr.bf16.mxu0 %v5572_v25  ;;  %3713 = vmatprep.subr.bf16.mxu1 %v5576_v29 }
 0x168   :  { %3683 = vmatpush1.bf16.msra.mxu0 %v5583_v34  ;;  %3715 = vmatpush1.bf16.msra.mxu1 %v5587_v40 }
 0x169   :  { %3685 = vmatprep.subr.bf16.mxu0 %v5591_v44  ;;  %3717 = vmatprep.subr.bf16.mxu1 %v5595_v47 }
 0x16c   :  { %3687 = vmatpush1.bf16.msra.mxu0 %v5602_v53  ;;  %3719 = vmatpush1.bf16.msra.mxu1 %v5606_v57 }
 0x16d   :  { %3689 = vmatprep.subr.bf16.mxu0 %v5610_v61  ;;  %3721 = vmatprep.subr.bf16.mxu1 %v5614_v2 }
 0x170   :  { %3691 = vmatpush1.bf16.msra.mxu0 %v5621_v8  ;;  %3723 = vmatpush1.bf16.msra.mxu1 %v5625_v13 }
 0x171   :  { %3725 = vmatprep.subr.bf16.mxu0 %v5629_v19  ;;  %3789 = vmatprep.subr.bf16.mxu1 %v5633_v28 }
 0x173   :  { %1018 = vmatmul.mubr.f32.vlgmr.msra.gmra.mrb[2].mxu0 %v779_v4  ;;  %1089 = vmatmul.mubr.f32.vlgmr.msra.gmra.mrb[2].mxu1 %v779_v4  ;;  %v6905_v4 = vld [vmem:[#allocation34_spill] sm:$0xff] }
 0x174   :  { %3727 = vmatpush1.bf16.msra.mxu0 %v5637_v33  ;;  %3791 = vmatpush1.bf16.msra.mxu1 %v5641_v37 }
 0x175   :  { %3729 = vmatprep.subr.bf16.mxu0 %v5643_v38  ;;  %3793 = vmatprep.subr.bf16.mxu1 %v5647_v46 }
 0x178   :  { %3731 = vmatpush1.bf16.msra.mxu0 %v5653_v58  ;;  %3795 = vmatpush1.bf16.msra.mxu1 %v5657_v60 }
 0x179   :  { %3733 = vmatprep.subr.bf16.mxu0 %v5659_v63  ;;  %3797 = vmatprep.subr.bf16.mxu1 %v5662_v7 }
 0x17c   :  { %3735 = vmatpush1.bf16.msra.mxu0 %v5667_v21  ;;  %3799 = vmatpush1.bf16.msra.mxu1 %v5671_v24 }
 0x17d   :  { %3737 = vmatprep.subr.bf16.mxu0 %v5673_v27  ;;  %3801 = vmatprep.subr.bf16.mxu1 %v5676_v42 }
 0x180   :  { %3739 = vmatpush1.bf16.msra.mxu0 %v5679_v56  ;;  %3803 = vmatpush1.bf16.msra.mxu1 %v6892_v45 }
 0x181   :  { %3741 = vmatprep.subr.bf16.mxu0 %v6893_v14  ;;  %3805 = vmatprep.subr.bf16.mxu1 %v6894_v32 }
 0x184   :  { %3743 = vmatpush1.bf16.msra.mxu0 %v6895_v0  ;;  %3807 = vmatpush1.bf16.msra.mxu1 %v6896_v50  ;;  %v6907_v50 = vld [vmem:[#allocation36_spill] sm:$0xff] }
 0x185   :  { %3745 = vmatprep.subr.bf16.mxu0 %v6897_v18  ;;  %3809 = vmatprep.subr.bf16.mxu1 %v6898_v49  ;;  %v6908_v18 = vld [vmem:[#allocation37_spill] sm:$0xff]  ;;  %v6909_v49 = vld [vmem:[#allocation38_spill] sm:$0xff] }
 0x188   :  { %3747 = vmatpush1.bf16.msra.mxu0 %v6899_v54  ;;  %3811 = vmatpush1.bf16.msra.mxu1 %v6900_v10  ;;  %v6910_v54 = vld [vmem:[#allocation39_spill] sm:$0xff]  ;;  %v6911_v10 = vld [vmem:[#allocation40_spill] sm:$0xff] }
 0x189   :  { %3749 = vmatprep.subr.bf16.mxu0 %v6901_v11  ;;  %3813 = vmatprep.subr.bf16.mxu1 %v6902_v52  ;;  %v6912_v11 = vld [vmem:[#allocation41_spill] sm:$0xff]  ;;  %v6913_v52 = vld [vmem:[#allocation42_spill] sm:$0xff] }
 0x18c   :  { %3751 = vmatpush1.bf16.msra.mxu0 %v6903_v22  ;;  %3815 = vmatpush1.bf16.msra.mxu1 %v6904_v1  ;;  %v6914_v22 = vld [vmem:[#allocation43_spill] sm:$0xff]  ;;  %v6915_v1 = vld [vmem:[#allocation44_spill] sm:$0xff] }
 0x18d   :  { %3753 = vmatprep.subr.bf16.mxu0 %v6905_v4  ;;  %3817 = vmatprep.subr.bf16.mxu1 %v6906_v15  ;;  %v6916_v4 = vld [vmem:[#allocation45_spill] sm:$0xff]  ;;  %v6917_v15 = vld [vmem:[#allocation46_spill] sm:$0xff] }
 0x190   :  { %3755 = vmatpush1.bf16.msra.mxu0 %v6907_v50  ;;  %3819 = vmatpush1.bf16.msra.mxu1 %v6908_v18  ;;  %v6918_v50 = vld [vmem:[#allocation47_spill] sm:$0xff]  ;;  %v6919_v18 = vld [vmem:[#allocation48_spill] sm:$0xff] }
 0x191   :  { %3757 = vmatprep.subr.bf16.mxu0 %v6909_v49  ;;  %3821 = vmatprep.subr.bf16.mxu1 %v6910_v54  ;;  %v6920_v49 = vld [vmem:[#allocation49_spill] sm:$0xff]  ;;  %v6921_v54 = vld [vmem:[#allocation50_spill] sm:$0xff] }
 0x194   :  { %3759 = vmatpush1.bf16.msra.mxu0 %v6911_v10  ;;  %3823 = vmatpush1.bf16.msra.mxu1 %v6912_v11  ;;  %v6922_v10 = vld [vmem:[#allocation51_spill] sm:$0xff]  ;;  %v6923_v11 = vld [vmem:[#allocation52_spill] sm:$0xff] }
 0x195   :  { %3761 = vmatprep.subr.bf16.mxu0 %v6913_v52  ;;  %3825 = vmatprep.subr.bf16.mxu1 %v6914_v22  ;;  %v6924_v52 = vld [vmem:[#allocation53_spill] sm:$0xff]  ;;  %v6925_v22 = vld [vmem:[#allocation54_spill] sm:$0xff] }
 0x198   :  { %3763 = vmatpush1.bf16.msra.mxu0 %v6915_v1  ;;  %3827 = vmatpush1.bf16.msra.mxu1 %v6916_v4  ;;  %v6926_v1 = vld [vmem:[#allocation55_spill] sm:$0xff]  ;;  %v6927_v4 = vld [vmem:[#allocation56_spill] sm:$0xff] }
 0x199   :  { %3765 = vmatprep.subr.bf16.mxu0 %v6917_v15  ;;  %3829 = vmatprep.subr.bf16.mxu1 %v6918_v50  ;;  %v6928_v15 = vld [vmem:[#allocation57_spill] sm:$0xff]  ;;  %v6929_v50 = vld [vmem:[#allocation58_spill] sm:$0xff] }
 0x19c   :  { %3767 = vmatpush1.bf16.msra.mxu0 %v6919_v18  ;;  %3831 = vmatpush1.bf16.msra.mxu1 %v6920_v49  ;;  %v6930_v18 = vld [vmem:[#allocation59_spill] sm:$0xff]  ;;  %v6931_v49 = vld [vmem:[#allocation60_spill] sm:$0xff] }
 0x19d   :  { %3769 = vmatprep.subr.bf16.mxu0 %v6921_v54  ;;  %3833 = vmatprep.subr.bf16.mxu1 %v6922_v10  ;;  %v6932_v54 = vld [vmem:[#allocation61_spill] sm:$0xff] }
 0x1a0   :  { %3771 = vmatpush1.bf16.msra.mxu0 %v6923_v11  ;;  %3835 = vmatpush1.bf16.msra.mxu1 %v6924_v52  ;;  %v6933_v11 = vld [vmem:[#allocation63_spill] sm:$0xff]  ;;  %v6934_v52 = vld [vmem:[#allocation64_spill] sm:$0xff] }
 0x1a1   :  { %3773 = vmatprep.subr.bf16.mxu0 %v6925_v22  ;;  %3837 = vmatprep.subr.bf16.mxu1 %v6926_v1  ;;  %v6935_v22 = vld [vmem:[#allocation65_spill] sm:$0xff]  ;;  %v6936_v1 = vld [vmem:[#allocation66_spill] sm:$0xff] }
 0x1a4   :  { %3775 = vmatpush1.bf16.msra.mxu0 %v6927_v4  ;;  %3839 = vmatpush1.bf16.msra.mxu1 %v6928_v15  ;;  %v6937_v4 = vld [vmem:[#allocation67_spill] sm:$0xff]  ;;  %v6938_v15 = vld [vmem:[#allocation68_spill] sm:$0xff] }
 0x1a5   :  { %3777 = vmatprep.subr.bf16.mxu0 %v6929_v50  ;;  %3841 = vmatprep.subr.bf16.mxu1 %v6930_v18  ;;  %v6939_v50 = vld [vmem:[#allocation69_spill] sm:$0xff]  ;;  %v6940_v18 = vld [vmem:[#allocation14_spill] sm:$0xff] }
 0x1a8   :  { %3779 = vmatpush1.bf16.msra.mxu0 %v6931_v49  ;;  %3843 = vmatpush1.bf16.msra.mxu1 %v6932_v54  ;;  %v6941_v49 = vld [vmem:[#allocation15_spill] sm:$0xff] }
 0x1a9   :  { %3781 = vmatprep.subr.bf16.mxu0 %v5807_v41  ;;  %3845 = vmatprep.subr.bf16.mxu1 %v6933_v11  ;;  %v580_v11 = vld [vmem:[%s6693_s5] sm:$0xf] }
 0x1aa   :  { %v6942_v41 = vld [vmem:[#allocation70_spill] sm:$0xff] }
 0x1ab   :  { %v6947_v14 = vsub.s32 3, %v6942_v41 }
 0x1ac   :  { %3783 = vmatpush1.bf16.msra.mxu0 %v6934_v52  ;;  %3847 = vmatpush1.bf16.msra.mxu1 %v6935_v22  ;;  %v6943_v52 = vsub.s32 0, %v6942_v41 }
 0x1ad   :  { %3785 = vmatprep.subr.bf16.mxu0 %v6936_v1  ;;  %3849 = vmatprep.subr.bf16.mxu1 %v6937_v4  ;;  %v6945_v1 = vsub.s32 1, %v6942_v41  ;;  %v5979_v45 = vrot.slane %v580_v11, %v6947_v14 }
 0x1ae   :  { %v5969_v54 = vrot.slane %v580_v11, %v6943_v52 }
 0x1af   :  { %v5973_v22 = vrot.slane %v580_v11, %v6945_v1  ;;  %6948 = vst [vmem:[#allocation75_spill] sm:$0xff] %v5979_v45  ;;  %v6949_v1 = vsub.s32 2, %v6942_v41 }
 0x1b0   :  { %3787 = vmatpush1.bf16.msra.mxu0 %v6938_v15  ;;  %3851 = vmatpush1.bf16.msra.mxu1 %v6939_v50  ;;  %6944 = vst [vmem:[#allocation70_spill] sm:$0xff] %v5969_v54 }
 0x1b1   :  { %3853 = vmatprep.subr.bf16.mxu0 %v6940_v18  ;;  %3885 = vmatprep.subr.bf16.mxu1 %v6941_v49  ;;  %6946 = vst [vmem:[#allocation74_spill] sm:$0xff] %v5973_v22  ;;  %v5984_v56 = vrot.slane %v580_v11, %v6949_v1 }
 0x1b3   :  { %6950 = vst [vmem:[#allocation76_spill] sm:$0xff] %v5984_v56 }
 0x226   :  { %v846_v4 = vpop.f32.mrb[16].mxu0  ;;  %v917_v15 = vpop.f32.mrb[16].mxu1 }
 0x227   :  { %v847_v50 = vadd.f32 %v846_v4, %v5969_v54  ;;  %v848_v10 = vpop.f32.mrb[17].mxu0  ;;  %v919_v18 = vpop.f32.mrb[17].mxu1  ;;  %v918_v4 = vadd.f32 %v917_v15, %v5984_v56  ;;  %v6951_v15 = vld [vmem:[#allocation71_spill] sm:$0xff] }
 0x228   :  { %v849_v49 = vadd.f32 %v848_v10, %v5973_v22  ;;  %v920_v52 = vadd.f32 %v919_v18, %v5979_v45 }
 0x229   :  { %v3412_v0 = vmul.f32 -1.442695, %v847_v50 }
 0x22a   :  { %v3413_v32 = vmul.f32 -1.442695, %v849_v49  ;;  %v3414_v42 = vmul.f32 -1.442695, %v920_v52 }
 0x22b   :  { %5089 = vpow2.f32 %v3412_v0 }
 0x22c   :  { %5091 = vpow2.f32 %v3413_v32 }
 0x22d   :  { %5093 = vpow2.f32 %v3414_v42 }
 0x22e   :  { %5095 = vtanh.f32 %v918_v4 }
 0x235   :  { %v5090_v54 = vpop.eup %5089 }
 0x236   :  { %v5092_v27 = vpop.eup %5091  ;;  %v925_v10 = vadd.f32 1.0, %v5090_v54 }
 0x237   :  { %v931_v50 = vadd.f32 1.0, %v5092_v27  ;;  %v5094_v14 = vpop.eup %5093  ;;  %v6952_v27 = vld [vmem:[#allocation72_spill] sm:$0xff] }
 0x238   :  { %5097 = vrcp.f32 %v925_v10  ;;  %v5096_v0 = vpop.eup %5095  ;;  %v938_v45 = vadd.f32 1.0, %v5094_v14 }
 0x239   :  { %5099 = vrcp.f32 %v931_v50 }
 0x23a   :  { %5101 = vrcp.f32 %v938_v45 }
 0x242   :  { %v5098_v32 = vpop.eup %5097 }
 0x243   :  { %v5100_v49 = vpop.eup %5099  ;;  %v942_v18 = vmul.f32 %v5098_v32, %v5096_v0  ;;  %v6953_v0 = vld [vmem:[#allocation73_spill] sm:$0xff] }
 0x244   :  { %v941_v41 = vmul.f32 0.0, %v5100_v49  ;;  %v5102_v32 = vpop.eup %5101 }
 0x246   :  { %v5987_v11 = vadd.f32 %v942_v18, %v941_v41  ;;  %v1019_v52 = vpop.f32.mrb[2].mxu0  ;;  %v1090_v1 = vpop.f32.mrb[2].mxu1 }
 0x247   :  { %v5006_v56 = vadd.f32 %v1019_v52, %v6951_v15  ;;  %v1021_v54 = vpop.f32.mrb[3].mxu0  ;;  %v1092_v42 = vpop.f32.mrb[3].mxu1  ;;  %v5022_v41 = vadd.f32 %v1090_v1, %v5860_v31 }
 0x248   :  { %5103 = vtanh.f32 %v5987_v11  ;;  %v5007_v4 = vadd.f32 %v1021_v54, %v6952_v27  ;;  %v5023_v14 = vadd.f32 %v1092_v42, %v6953_v0 }
 0x249   :  { %v3415_v10 = vmul.f32 -1.442695, %v5006_v56 }
 0x24a   :  { %v3416_v50 = vmul.f32 -1.442695, %v5007_v4  ;;  %v3417_v18 = vmul.f32 -1.442695, %v5023_v14 }
 0x24b   :  { %5105 = vpow2.f32 %v3415_v10 }
 0x24c   :  { %5107 = vpow2.f32 %v3416_v50 }
 0x24d   :  { %5109 = vpow2.f32 %v3417_v18  ;;  %v6957_v18 = vld [vmem:[#allocation21_spill] sm:$0xff] }
 0x24e   :  { %5111 = vtanh.f32 %v5022_v41  ;;  %v6958_v41 = vld [vmem:[#allocation22_spill] sm:$0xff] }
 0x252   :  { %v5104_v49 = vpop.eup %5103 }
 0x253   :  { %v945_v45 = vmul.f32 %v5104_v49, %v5102_v32 }
 0x255   :  { %v5106_v22 = vpop.eup %5105  ;;  %1187 = vmatprep.mubr.f32.mxu0 %v945_v45  ;;  %1258 = vmatprep.mubr.f32.mxu1 %v945_v45  ;;  %v6959_v45 = vld [vmem:[#allocation23_spill] sm:$0xff] }
 0x256   :  { %v5108_v52 = vpop.eup %5107  ;;  %v1102_v15 = vadd.f32 1.0, %v5106_v22 }
 0x257   :  { %v1108_v54 = vadd.f32 1.0, %v5108_v52  ;;  %v5110_v56 = vpop.eup %5109  ;;  %v6960_v52 = vld [vmem:[#allocation24_spill] sm:$0xff] }
 0x258   :  { %5113 = vrcp.f32 %v1102_v15  ;;  %v5112_v4 = vpop.eup %5111  ;;  %v1115_v0 = vadd.f32 1.0, %v5110_v56  ;;  %v6955_v15 = vld [vmem:[#allocation19_spill] sm:$0xff]  ;;  %v6962_v56 = vld [vmem:[#allocation26_spill] sm:$0xff] }
 0x259   :  { %5115 = vrcp.f32 %v1108_v54  ;;  %v6961_v54 = vld [vmem:[#allocation25_spill] sm:$0xff] }
 0x25a   :  { %5117 = vrcp.f32 %v1115_v0  ;;  %v6956_v0 = vld [vmem:[#allocation20_spill] sm:$0xff] }
 0x262   :  { %v5114_v10 = vpop.eup %5113 }
 0x263   :  { %v5116_v42 = vpop.eup %5115  ;;  %v1119_v50 = vmul.f32 %v5114_v10, %v5112_v4  ;;  %v6963_v4 = vld [vmem:[#allocation27_spill] sm:$0xff]  ;;  %v6964_v10 = vld [vmem:[#allocation28_spill] sm:$0xff] }
 0x264   :  { %v1118_v14 = vmul.f32 %v5116_v42, %v5863_v17  ;;  %v5118_v32 = vpop.eup %5117  ;;  %v6954_v17 = vld [vmem:[#allocation18_spill] sm:$0xff]  ;;  %v6965_v42 = vld [vmem:[#allocation29_spill] sm:$0xff] }
 0x266   :  { %v5995_v1 = vadd.f32 %v1119_v50, %v1118_v14  ;;  %v6966_v50 = vld [vmem:[#allocation30_spill] sm:$0xff]  ;;  %v6967_v14 = vld [vmem:[#allocation31_spill] sm:$0xff] }
 0x268   :  { %5119 = vtanh.f32 %v5995_v1 }
 0x272   :  { %v5120_v22 = vpop.eup %5119 }
 0x273   :  { %v1122_v49 = vmul.f32 %v5120_v22, %v5118_v32  ;;  %v6968_v32 = vld [vmem:[#allocation32_spill] sm:$0xff]  ;;  %v6969_v22 = vld [vmem:[#allocation33_spill] sm:$0xff] }
 0x275   :  { %1188 = vmatmul.mubr.f32.vlgmr.msra.gmra.mrb[18].mxu0 %v1122_v49  ;;  %1259 = vmatmul.mubr.f32.vlgmr.msra.gmra.mrb[18].mxu1 %v1122_v49 }
 0x276   :  { %3855 = vmatpush1.bf16.msra.mxu0 %v5491_v23  ;;  %3887 = vmatpush1.bf16.msra.mxu1 %v5494_v26 }
 0x277   :  { %3857 = vmatprep.subr.bf16.mxu0 %v5498_v30  ;;  %3889 = vmatprep.subr.bf16.mxu1 %v5505_v35 }
 0x278   :  { %1360 = vmatprep.mubr.f32.mxu0 %v6891_v5  ;;  %1431 = vmatprep.mubr.f32.mxu1 %v6891_v5 }
 0x27a   :  { %3859 = vmatpush1.bf16.msra.mxu0 %v5507_v36  ;;  %3891 = vmatpush1.bf16.msra.mxu1 %v5511_v39 }
 0x27b   :  { %3861 = vmatprep.subr.bf16.mxu0 %v5515_v43  ;;  %3893 = vmatprep.subr.bf16.mxu1 %v5522_v48 }
 0x27e   :  { %3863 = vmatpush1.bf16.msra.mxu0 %v5526_v51  ;;  %3895 = vmatpush1.bf16.msra.mxu1 %v5530_v55 }
 0x27f   :  { %3865 = vmatprep.subr.bf16.mxu0 %v5534_v59  ;;  %3897 = vmatprep.subr.bf16.mxu1 %v5538_v62 }
 0x282   :  { %3867 = vmatpush1.bf16.msra.mxu0 %v5545_v3  ;;  %3899 = vmatpush1.bf16.msra.mxu1 %v5549_v6 }
 0x283   :  { %3869 = vmatprep.subr.bf16.mxu0 %v5553_v9  ;;  %3901 = vmatprep.subr.bf16.mxu1 %v5557_v12 }
 0x286   :  { %3871 = vmatpush1.bf16.msra.mxu0 %v5564_v16  ;;  %3903 = vmatpush1.bf16.msra.mxu1 %v5568_v20 }
 0x287   :  { %3873 = vmatprep.subr.bf16.mxu0 %v5572_v25  ;;  %3905 = vmatprep.subr.bf16.mxu1 %v5576_v29 }
 0x28a   :  { %3875 = vmatpush1.bf16.msra.mxu0 %v5583_v34  ;;  %3907 = vmatpush1.bf16.msra.mxu1 %v5587_v40 }
 0x28b   :  { %3877 = vmatprep.subr.bf16.mxu0 %v5591_v44  ;;  %3909 = vmatprep.subr.bf16.mxu1 %v5595_v47 }
 0x28e   :  { %3879 = vmatpush1.bf16.msra.mxu0 %v5602_v53  ;;  %3911 = vmatpush1.bf16.msra.mxu1 %v5606_v57 }
 0x28f   :  { %3881 = vmatprep.subr.bf16.mxu0 %v5610_v61  ;;  %3913 = vmatprep.subr.bf16.mxu1 %v5614_v2 }
 0x292   :  { %3883 = vmatpush1.bf16.msra.mxu0 %v5621_v8  ;;  %3915 = vmatpush1.bf16.msra.mxu1 %v5625_v13 }
 0x293   :  { %3917 = vmatprep.subr.bf16.mxu0 %v5629_v19  ;;  %3981 = vmatprep.subr.bf16.mxu1 %v5633_v28 }
 0x295   :  { %1361 = vmatmul.mubr.f32.vlgmr.msra.gmra.mrb[4].mxu0 %v1122_v49  ;;  %1432 = vmatmul.mubr.f32.vlgmr.msra.gmra.mrb[4].mxu1 %v1122_v49  ;;  %v6970_v49 = vld [vmem:[#allocation34_spill] sm:$0xff] }
 0x296   :  { %3919 = vmatpush1.bf16.msra.mxu0 %v5637_v33  ;;  %3983 = vmatpush1.bf16.msra.mxu1 %v5641_v37 }
 0x297   :  { %3921 = vmatprep.subr.bf16.mxu0 %v5643_v38  ;;  %3985 = vmatprep.subr.bf16.mxu1 %v5647_v46 }
 0x29a   :  { %3923 = vmatpush1.bf16.msra.mxu0 %v5653_v58  ;;  %3987 = vmatpush1.bf16.msra.mxu1 %v5657_v60 }
 0x29b   :  { %3925 = vmatprep.subr.bf16.mxu0 %v5659_v63  ;;  %3989 = vmatprep.subr.bf16.mxu1 %v5662_v7 }
 0x29e   :  { %3927 = vmatpush1.bf16.msra.mxu0 %v5667_v21  ;;  %3991 = vmatpush1.bf16.msra.mxu1 %v5671_v24 }
 0x29f   :  { %3929 = vmatprep.subr.bf16.mxu0 %v6954_v17  ;;  %3993 = vmatprep.subr.bf16.mxu1 %v6955_v15 }
 0x2a2   :  { %3931 = vmatpush1.bf16.msra.mxu0 %v6956_v0  ;;  %3995 = vmatpush1.bf16.msra.mxu1 %v6957_v18  ;;  %v7009_v18 = vld [vmem:[#allocation74_spill] sm:$0xff] }
 0x2a3   :  { %3933 = vmatprep.subr.bf16.mxu0 %v6958_v41  ;;  %3997 = vmatprep.subr.bf16.mxu1 %v6959_v45  ;;  %v7008_v45 = vld [vmem:[#allocation70_spill] sm:$0xff] }
 0x2a6   :  { %3935 = vmatpush1.bf16.msra.mxu0 %v6960_v52  ;;  %3999 = vmatpush1.bf16.msra.mxu1 %v6961_v54  ;;  %v6971_v52 = vld [vmem:[#allocation35_spill] sm:$0xff]  ;;  %v6972_v54 = vld [vmem:[#allocation36_spill] sm:$0xff] }
 0x2a7   :  { %3937 = vmatprep.subr.bf16.mxu0 %v6962_v56  ;;  %4001 = vmatprep.subr.bf16.mxu1 %v6963_v4  ;;  %v6973_v56 = vld [vmem:[#allocation37_spill] sm:$0xff]  ;;  %v6974_v4 = vld [vmem:[#allocation38_spill] sm:$0xff] }
 0x2aa   :  { %3939 = vmatpush1.bf16.msra.mxu0 %v6964_v10  ;;  %4003 = vmatpush1.bf16.msra.mxu1 %v6965_v42  ;;  %v6975_v10 = vld [vmem:[#allocation39_spill] sm:$0xff]  ;;  %v6976_v42 = vld [vmem:[#allocation40_spill] sm:$0xff] }
 0x2ab   :  { %3941 = vmatprep.subr.bf16.mxu0 %v6966_v50  ;;  %4005 = vmatprep.subr.bf16.mxu1 %v6967_v14  ;;  %v6977_v50 = vld [vmem:[#allocation41_spill] sm:$0xff]  ;;  %v6978_v14 = vld [vmem:[#allocation42_spill] sm:$0xff] }
 0x2ae   :  { %3943 = vmatpush1.bf16.msra.mxu0 %v6968_v32  ;;  %4007 = vmatpush1.bf16.msra.mxu1 %v6969_v22  ;;  %v6979_v32 = vld [vmem:[#allocation43_spill] sm:$0xff]  ;;  %v6980_v22 = vld [vmem:[#allocation44_spill] sm:$0xff] }
 0x2af   :  { %3945 = vmatprep.subr.bf16.mxu0 %v6970_v49  ;;  %4009 = vmatprep.subr.bf16.mxu1 %v6971_v52  ;;  %v6981_v49 = vld [vmem:[#allocation45_spill] sm:$0xff]  ;;  %v6982_v52 = vld [vmem:[#allocation46_spill] sm:$0xff] }
 0x2b2   :  { %3947 = vmatpush1.bf16.msra.mxu0 %v6972_v54  ;;  %4011 = vmatpush1.bf16.msra.mxu1 %v6973_v56  ;;  %v6983_v54 = vld [vmem:[#allocation47_spill] sm:$0xff]  ;;  %v6984_v56 = vld [vmem:[#allocation48_spill] sm:$0xff] }
 0x2b3   :  { %3949 = vmatprep.subr.bf16.mxu0 %v6974_v4  ;;  %4013 = vmatprep.subr.bf16.mxu1 %v6975_v10  ;;  %v6985_v4 = vld [vmem:[#allocation49_spill] sm:$0xff]  ;;  %v6986_v10 = vld [vmem:[#allocation50_spill] sm:$0xff] }
 0x2b6   :  { %3951 = vmatpush1.bf16.msra.mxu0 %v6976_v42  ;;  %4015 = vmatpush1.bf16.msra.mxu1 %v6977_v50  ;;  %v6987_v42 = vld [vmem:[#allocation51_spill] sm:$0xff]  ;;  %v6988_v50 = vld [vmem:[#allocation52_spill] sm:$0xff] }
 0x2b7   :  { %3953 = vmatprep.subr.bf16.mxu0 %v6978_v14  ;;  %4017 = vmatprep.subr.bf16.mxu1 %v6979_v32  ;;  %v6989_v14 = vld [vmem:[#allocation53_spill] sm:$0xff]  ;;  %v6990_v32 = vld [vmem:[#allocation54_spill] sm:$0xff] }
 0x2ba   :  { %3955 = vmatpush1.bf16.msra.mxu0 %v6980_v22  ;;  %4019 = vmatpush1.bf16.msra.mxu1 %v6981_v49  ;;  %v6991_v22 = vld [vmem:[#allocation55_spill] sm:$0xff]  ;;  %v6992_v49 = vld [vmem:[#allocation56_spill] sm:$0xff] }
 0x2bb   :  { %3957 = vmatprep.subr.bf16.mxu0 %v6982_v52  ;;  %4021 = vmatprep.subr.bf16.mxu1 %v6983_v54  ;;  %v6993_v52 = vld [vmem:[#allocation57_spill] sm:$0xff]  ;;  %v6994_v54 = vld [vmem:[#allocation58_spill] sm:$0xff] }
 0x2be   :  { %3959 = vmatpush1.bf16.msra.mxu0 %v6984_v56  ;;  %4023 = vmatpush1.bf16.msra.mxu1 %v6985_v4  ;;  %v6995_v56 = vld [vmem:[#allocation59_spill] sm:$0xff]  ;;  %v6996_v4 = vld [vmem:[#allocation60_spill] sm:$0xff] }
 0x2bf   :  { %3961 = vmatprep.subr.bf16.mxu0 %v6986_v10  ;;  %4025 = vmatprep.subr.bf16.mxu1 %v6987_v42  ;;  %v6997_v10 = vld [vmem:[#allocation61_spill] sm:$0xff]  ;;  %v6998_v42 = vld [vmem:[#allocation62_spill] sm:$0xff] }
 0x2c2   :  { %3963 = vmatpush1.bf16.msra.mxu0 %v6988_v50  ;;  %4027 = vmatpush1.bf16.msra.mxu1 %v6989_v14  ;;  %v6999_v50 = vld [vmem:[#allocation63_spill] sm:$0xff]  ;;  %v7000_v14 = vld [vmem:[#allocation64_spill] sm:$0xff] }
 0x2c3   :  { %3965 = vmatprep.subr.bf16.mxu0 %v6990_v32  ;;  %4029 = vmatprep.subr.bf16.mxu1 %v6991_v22  ;;  %v7001_v32 = vld [vmem:[#allocation65_spill] sm:$0xff]  ;;  %v7002_v22 = vld [vmem:[#allocation66_spill] sm:$0xff] }
 0x2c6   :  { %3967 = vmatpush1.bf16.msra.mxu0 %v6992_v49  ;;  %4031 = vmatpush1.bf16.msra.mxu1 %v6993_v52  ;;  %v7003_v49 = vld [vmem:[#allocation67_spill] sm:$0xff]  ;;  %v7004_v52 = vld [vmem:[#allocation68_spill] sm:$0xff] }
 0x2c7   :  { %3969 = vmatprep.subr.bf16.mxu0 %v6994_v54  ;;  %4033 = vmatprep.subr.bf16.mxu1 %v6995_v56  ;;  %v7005_v54 = vld [vmem:[#allocation69_spill] sm:$0xff]  ;;  %v7006_v56 = vld [vmem:[#allocation14_spill] sm:$0xff] }
 0x2ca   :  { %3971 = vmatpush1.bf16.msra.mxu0 %v6996_v4  ;;  %4035 = vmatpush1.bf16.msra.mxu1 %v6997_v10  ;;  %v7007_v4 = vld [vmem:[#allocation15_spill] sm:$0xff] }
 0x2cb   :  { %3973 = vmatprep.subr.bf16.mxu0 %v6998_v42  ;;  %4037 = vmatprep.subr.bf16.mxu1 %v6999_v50 }
 0x2ce   :  { %3975 = vmatpush1.bf16.msra.mxu0 %v7000_v14  ;;  %4039 = vmatpush1.bf16.msra.mxu1 %v7001_v32 }
 0x2cf   :  { %3977 = vmatprep.subr.bf16.mxu0 %v7002_v22  ;;  %4041 = vmatprep.subr.bf16.mxu1 %v7003_v49  ;;  %v7010_v49 = vld [vmem:[#allocation75_spill] sm:$0xff] }
 0x2d2   :  { %3979 = vmatpush1.bf16.msra.mxu0 %v7004_v52  ;;  %4043 = vmatpush1.bf16.msra.mxu1 %v7005_v54  ;;  %v7011_v54 = vld [vmem:[#allocation76_spill] sm:$0xff] }
 0x2d3   :  { %4045 = vmatprep.subr.bf16.mxu0 %v7006_v56  ;;  %4077 = vmatprep.subr.bf16.mxu1 %v7007_v4 }
 0x348   :  { %v1189_v10 = vpop.f32.mrb[18].mxu0  ;;  %v1260_v42 = vpop.f32.mrb[18].mxu1 }
 0x349   :  { %v1190_v50 = vadd.f32 %v1189_v10, %v7008_v45  ;;  %v1191_v41 = vpop.f32.mrb[19].mxu0  ;;  %v1262_v14 = vpop.f32.mrb[19].mxu1  ;;  %v1261_v17 = vadd.f32 %v1260_v42, %v7011_v54  ;;  %v7012_v42 = vld [vmem:[#allocation71_spill] sm:$0xff] }
 0x34a   :  { %v1192_v32 = vadd.f32 %v1191_v41, %v7009_v18  ;;  %v1263_v52 = vadd.f32 %v1262_v14, %v7010_v49 }
 0x34b   :  { %v3418_v0 = vmul.f32 -1.442695, %v1190_v50 }
 0x34c   :  { %v3419_v22 = vmul.f32 -1.442695, %v1192_v32  ;;  %v3420_v15 = vmul.f32 -1.442695, %v1263_v52 }
 0x34d   :  { %5121 = vpow2.f32 %v3418_v0 }
 0x34e   :  { %5123 = vpow2.f32 %v3419_v22 }
 0x34f   :  { %5125 = vpow2.f32 %v3420_v15 }
 0x350   :  { %5127 = vtanh.f32 %v1261_v17 }
 0x357   :  { %v5122_v56 = vpop.eup %5121 }
 0x358   :  { %v5124_v24 = vpop.eup %5123  ;;  %v1268_v4 = vadd.f32 1.0, %v5122_v56 }
 0x359   :  { %v1274_v21 = vadd.f32 1.0, %v5124_v24  ;;  %v5126_v10 = vpop.eup %5125 }
 0x35a   :  { %5129 = vrcp.f32 %v1268_v4  ;;  %v5128_v45 = vpop.eup %5127  ;;  %v1281_v0 = vadd.f32 1.0, %v5126_v10 }
 0x35b   :  { %5131 = vrcp.f32 %v1274_v21 }
 0x35c   :  { %5133 = vrcp.f32 %v1281_v0 }
 0x364   :  { %v5130_v41 = vpop.eup %5129 }
 0x365   :  { %v5132_v50 = vpop.eup %5131  ;;  %v1285_v32 = vmul.f32 %v5130_v41, %v5128_v45  ;;  %v7013_v45 = vld [vmem:[#allocation73_spill] sm:$0xff] }
 0x366   :  { %v1284_v22 = vmul.f32 %v5132_v50, %v5987_v11  ;;  %v5134_v11 = vpop.eup %5133 }
 0x368   :  { %v1362_v14 = vpop.f32.mrb[4].mxu0  ;;  %v1433_v52 = vpop.f32.mrb[4].mxu1  ;;  %v6101_v49 = vadd.f32 %v1285_v32, %v1284_v22 }
 0x369   :  { %v5008_v56 = vadd.f32 %v1362_v14, %v7012_v42  ;;  %v1364_v15 = vpop.f32.mrb[5].mxu0  ;;  %v1435_v17 = vpop.f32.mrb[5].mxu1  ;;  %v5024_v32 = vadd.f32 %v1433_v52, %v5860_v31 }
 0x36a   :  { %v5009_v24 = vadd.f32 %v1364_v15, %v6952_v27  ;;  %5135 = vtanh.f32 %v6101_v49  ;;  %v5025_v10 = vadd.f32 %v1435_v17, %v7013_v45 }
 0x36b   :  { %v3421_v21 = vmul.f32 -1.442695, %v5008_v56 }
 0x36c   :  { %v3422_v4 = vmul.f32 -1.442695, %v5009_v24  ;;  %v3423_v50 = vmul.f32 -1.442695, %v5025_v10 }
 0x36d   :  { %5137 = vpow2.f32 %v3421_v21 }
 0x36e   :  { %5139 = vpow2.f32 %v3422_v4 }
 0x36f   :  { %5141 = vpow2.f32 %v3423_v50 }
 0x370   :  { %5143 = vtanh.f32 %v5024_v32  ;;  %v7017_v32 = vld [vmem:[#allocation19_spill] sm:$0xff] }
 0x374   :  { %v5136_v41 = vpop.eup %5135 }
 0x375   :  { %v1288_v0 = vmul.f32 %v5136_v41, %v5134_v11 }
 0x377   :  { %v5138_v22 = vpop.eup %5137  ;;  %1530 = vmatprep.mubr.f32.mxu0 %v1288_v0  ;;  %1601 = vmatprep.mubr.f32.mxu1 %v1288_v0  ;;  %v7018_v0 = vld [vmem:[#allocation20_spill] sm:$0xff] }
 0x378   :  { %v5140_v14 = vpop.eup %5139  ;;  %v1445_v42 = vadd.f32 1.0, %v5138_v22  ;;  %v7019_v22 = vld [vmem:[#allocation21_spill] sm:$0xff] }
 0x379   :  { %v1451_v15 = vadd.f32 1.0, %v5140_v14  ;;  %v5142_v56 = vpop.eup %5141  ;;  %v7020_v14 = vld [vmem:[#allocation22_spill] sm:$0xff] }
 0x37a   :  { %5145 = vrcp.f32 %v1445_v42  ;;  %v5144_v24 = vpop.eup %5143  ;;  %v1458_v45 = vadd.f32 1.0, %v5142_v56  ;;  %v7015_v42 = vld [vmem:[#allocation17_spill] sm:$0xff]  ;;  %v7022_v56 = vld [vmem:[#allocation24_spill] sm:$0xff] }
 0x37b   :  { %5147 = vrcp.f32 %v1451_v15  ;;  %v7021_v15 = vld [vmem:[#allocation23_spill] sm:$0xff] }
 0x37c   :  { %5149 = vrcp.f32 %v1458_v45  ;;  %v7016_v45 = vld [vmem:[#allocation18_spill] sm:$0xff] }
 0x384   :  { %v5146_v21 = vpop.eup %5145 }
 0x385   :  { %v5148_v17 = vpop.eup %5147  ;;  %v1462_v4 = vmul.f32 %v5146_v21, %v5144_v24  ;;  %v7023_v24 = vld [vmem:[#allocation25_spill] sm:$0xff]  ;;  %v7024_v21 = vld [vmem:[#allocation26_spill] sm:$0xff] }
 0x386   :  { %v1461_v10 = vmul.f32 %v5148_v17, %v5995_v1  ;;  %v5150_v11 = vpop.eup %5149  ;;  %v7014_v1 = vld [vmem:[#allocation16_spill] sm:$0xff]  ;;  %v7025_v17 = vld [vmem:[#allocation27_spill] sm:$0xff] }
 0x388   :  { %v6109_v52 = vadd.f32 %v1462_v4, %v1461_v10  ;;  %v7026_v4 = vld [vmem:[#allocation28_spill] sm:$0xff]  ;;  %v7027_v10 = vld [vmem:[#allocation29_spill] sm:$0xff] }
 0x38a   :  { %5151 = vtanh.f32 %v6109_v52 }
 0x394   :  { %v5152_v41 = vpop.eup %5151 }
 0x395   :  { %v1465_v50 = vmul.f32 %v5152_v41, %v5150_v11  ;;  %v7028_v11 = vld [vmem:[#allocation30_spill] sm:$0xff]  ;;  %v7029_v41 = vld [vmem:[#allocation31_spill] sm:$0xff] }
 0x397   :  { %1531 = vmatmul.mubr.f32.vlgmr.msra.gmra.mrb[20].mxu0 %v1465_v50  ;;  %1602 = vmatmul.mubr.f32.vlgmr.msra.gmra.mrb[20].mxu1 %v1465_v50 }
 0x398   :  { %4047 = vmatpush1.bf16.msra.mxu0 %v5491_v23  ;;  %4079 = vmatpush1.bf16.msra.mxu1 %v5494_v26 }
 0x399   :  { %4049 = vmatprep.subr.bf16.mxu0 %v5498_v30  ;;  %4081 = vmatprep.subr.bf16.mxu1 %v5505_v35 }
 0x39a   :  { %1703 = vmatprep.mubr.f32.mxu0 %v6891_v5  ;;  %1774 = vmatprep.mubr.f32.mxu1 %v6891_v5 }
 0x39c   :  { %4051 = vmatpush1.bf16.msra.mxu0 %v5507_v36  ;;  %4083 = vmatpush1.bf16.msra.mxu1 %v5511_v39 }
 0x39d   :  { %4053 = vmatprep.subr.bf16.mxu0 %v5515_v43  ;;  %4085 = vmatprep.subr.bf16.mxu1 %v5522_v48 }
 0x3a0   :  { %4055 = vmatpush1.bf16.msra.mxu0 %v5526_v51  ;;  %4087 = vmatpush1.bf16.msra.mxu1 %v5530_v55 }
 0x3a1   :  { %4057 = vmatprep.subr.bf16.mxu0 %v5534_v59  ;;  %4089 = vmatprep.subr.bf16.mxu1 %v5538_v62 }
 0x3a4   :  { %4059 = vmatpush1.bf16.msra.mxu0 %v5545_v3  ;;  %4091 = vmatpush1.bf16.msra.mxu1 %v5549_v6 }
 0x3a5   :  { %4061 = vmatprep.subr.bf16.mxu0 %v5553_v9  ;;  %4093 = vmatprep.subr.bf16.mxu1 %v5557_v12 }
 0x3a8   :  { %4063 = vmatpush1.bf16.msra.mxu0 %v5564_v16  ;;  %4095 = vmatpush1.bf16.msra.mxu1 %v5568_v20 }
 0x3a9   :  { %4065 = vmatprep.subr.bf16.mxu0 %v5572_v25  ;;  %4097 = vmatprep.subr.bf16.mxu1 %v5576_v29 }
 0x3ac   :  { %4067 = vmatpush1.bf16.msra.mxu0 %v5583_v34  ;;  %4099 = vmatpush1.bf16.msra.mxu1 %v5587_v40 }
 0x3ad   :  { %4069 = vmatprep.subr.bf16.mxu0 %v5591_v44  ;;  %4101 = vmatprep.subr.bf16.mxu1 %v5595_v47 }
 0x3b0   :  { %4071 = vmatpush1.bf16.msra.mxu0 %v5602_v53  ;;  %4103 = vmatpush1.bf16.msra.mxu1 %v5606_v57 }
 0x3b1   :  { %4073 = vmatprep.subr.bf16.mxu0 %v5610_v61  ;;  %4105 = vmatprep.subr.bf16.mxu1 %v5614_v2 }
 0x3b4   :  { %4075 = vmatpush1.bf16.msra.mxu0 %v5621_v8  ;;  %4107 = vmatpush1.bf16.msra.mxu1 %v5625_v13 }
 0x3b5   :  { %4109 = vmatprep.subr.bf16.mxu0 %v5629_v19  ;;  %4173 = vmatprep.subr.bf16.mxu1 %v5633_v28 }
 0x3b7   :  { %1704 = vmatmul.mubr.f32.vlgmr.msra.gmra.mrb[6].mxu0 %v1465_v50  ;;  %1775 = vmatmul.mubr.f32.vlgmr.msra.gmra.mrb[6].mxu1 %v1465_v50  ;;  %v7030_v50 = vld [vmem:[#allocation32_spill] sm:$0xff] }
 0x3b8   :  { %4111 = vmatpush1.bf16.msra.mxu0 %v5637_v33  ;;  %4175 = vmatpush1.bf16.msra.mxu1 %v5641_v37 }
 0x3b9   :  { %4113 = vmatprep.subr.bf16.mxu0 %v5643_v38  ;;  %4177 = vmatprep.subr.bf16.mxu1 %v5647_v46 }
 0x3bc   :  { %4115 = vmatpush1.bf16.msra.mxu0 %v5653_v58  ;;  %4179 = vmatpush1.bf16.msra.mxu1 %v5657_v60 }
 0x3bd   :  { %4117 = vmatprep.subr.bf16.mxu0 %v5659_v63  ;;  %4181 = vmatprep.subr.bf16.mxu1 %v5662_v7 }
 0x3c0   :  { %4119 = vmatpush1.bf16.msra.mxu0 %v7014_v1  ;;  %4183 = vmatpush1.bf16.msra.mxu1 %v7015_v42 }
 0x3c1   :  { %4121 = vmatprep.subr.bf16.mxu0 %v7016_v45  ;;  %4185 = vmatprep.subr.bf16.mxu1 %v7017_v32 }
 0x3c4   :  { %4123 = vmatpush1.bf16.msra.mxu0 %v7018_v0  ;;  %4187 = vmatpush1.bf16.msra.mxu1 %v7019_v22  ;;  %v7070_v22 = vld [vmem:[#allocation70_spill] sm:$0xff] }
 0x3c5   :  { %4125 = vmatprep.subr.bf16.mxu0 %v7020_v14  ;;  %4189 = vmatprep.subr.bf16.mxu1 %v7021_v15  ;;  %v7031_v14 = vld [vmem:[#allocation33_spill] sm:$0xff]  ;;  %v7032_v15 = vld [vmem:[#allocation34_spill] sm:$0xff] }
 0x3c8   :  { %4127 = vmatpush1.bf16.msra.mxu0 %v7022_v56  ;;  %4191 = vmatpush1.bf16.msra.mxu1 %v7023_v24  ;;  %v7033_v56 = vld [vmem:[#allocation35_spill] sm:$0xff]  ;;  %v7034_v24 = vld [vmem:[#allocation36_spill] sm:$0xff] }
 0x3c9   :  { %4129 = vmatprep.subr.bf16.mxu0 %v7024_v21  ;;  %4193 = vmatprep.subr.bf16.mxu1 %v7025_v17  ;;  %v7035_v21 = vld [vmem:[#allocation37_spill] sm:$0xff]  ;;  %v7036_v17 = vld [vmem:[#allocation38_spill] sm:$0xff] }
 0x3cc   :  { %4131 = vmatpush1.bf16.msra.mxu0 %v7026_v4  ;;  %4195 = vmatpush1.bf16.msra.mxu1 %v7027_v10  ;;  %v7037_v4 = vld [vmem:[#allocation39_spill] sm:$0xff]  ;;  %v7038_v10 = vld [vmem:[#allocation40_spill] sm:$0xff] }
 0x3cd   :  { %4133 = vmatprep.subr.bf16.mxu0 %v7028_v11  ;;  %4197 = vmatprep.subr.bf16.mxu1 %v7029_v41  ;;  %v7039_v11 = vld [vmem:[#allocation41_spill] sm:$0xff]  ;;  %v7040_v41 = vld [vmem:[#allocation42_spill] sm:$0xff] }
 0x3d0   :  { %4135 = vmatpush1.bf16.msra.mxu0 %v7030_v50  ;;  %4199 = vmatpush1.bf16.msra.mxu1 %v7031_v14  ;;  %v7041_v50 = vld [vmem:[#allocation43_spill] sm:$0xff]  ;;  %v7042_v14 = vld [vmem:[#allocation44_spill] sm:$0xff] }
 0x3d1   :  { %4137 = vmatprep.subr.bf16.mxu0 %v7032_v15  ;;  %4201 = vmatprep.subr.bf16.mxu1 %v7033_v56  ;;  %v7043_v15 = vld [vmem:[#allocation45_spill] sm:$0xff]  ;;  %v7044_v56 = vld [vmem:[#allocation46_spill] sm:$0xff] }
 0x3d4   :  { %4139 = vmatpush1.bf16.msra.mxu0 %v7034_v24  ;;  %4203 = vmatpush1.bf16.msra.mxu1 %v7035_v21  ;;  %v7045_v24 = vld [vmem:[#allocation47_spill] sm:$0xff]  ;;  %v7046_v21 = vld [vmem:[#allocation48_spill] sm:$0xff] }
 0x3d5   :  { %4141 = vmatprep.subr.bf16.mxu0 %v7036_v17  ;;  %4205 = vmatprep.subr.bf16.mxu1 %v7037_v4  ;;  %v7047_v17 = vld [vmem:[#allocation49_spill] sm:$0xff]  ;;  %v7048_v4 = vld [vmem:[#allocation50_spill] sm:$0xff] }
 0x3d8   :  { %4143 = vmatpush1.bf16.msra.mxu0 %v7038_v10  ;;  %4207 = vmatpush1.bf16.msra.mxu1 %v7039_v11  ;;  %v7049_v10 = vld [vmem:[#allocation51_spill] sm:$0xff]  ;;  %v7050_v11 = vld [vmem:[#allocation52_spill] sm:$0xff] }
 0x3d9   :  { %4145 = vmatprep.subr.bf16.mxu0 %v7040_v41  ;;  %4209 = vmatprep.subr.bf16.mxu1 %v7041_v50  ;;  %v7051_v41 = vld [vmem:[#allocation53_spill] sm:$0xff]  ;;  %v7052_v50 = vld [vmem:[#allocation54_spill] sm:$0xff] }
 0x3dc   :  { %4147 = vmatpush1.bf16.msra.mxu0 %v7042_v14  ;;  %4211 = vmatpush1.bf16.msra.mxu1 %v7043_v15  ;;  %v7053_v14 = vld [vmem:[#allocation55_spill] sm:$0xff]  ;;  %v7054_v15 = vld [vmem:[#allocation56_spill] sm:$0xff] }
 0x3dd   :  { %4149 = vmatprep.subr.bf16.mxu0 %v7044_v56  ;;  %4213 = vmatprep.subr.bf16.mxu1 %v7045_v24  ;;  %v7055_v56 = vld [vmem:[#allocation57_spill] sm:$0xff]  ;;  %v7056_v24 = vld [vmem:[#allocation58_spill] sm:$0xff] }
 0x3e0   :  { %4151 = vmatpush1.bf16.msra.mxu0 %v7046_v21  ;;  %4215 = vmatpush1.bf16.msra.mxu1 %v7047_v17  ;;  %v7057_v21 = vld [vmem:[#allocation59_spill] sm:$0xff]  ;;  %v7058_v17 = vld [vmem:[#allocation60_spill] sm:$0xff] }
 0x3e1   :  { %4153 = vmatprep.subr.bf16.mxu0 %v7048_v4  ;;  %4217 = vmatprep.subr.bf16.mxu1 %v7049_v10  ;;  %v7059_v4 = vld [vmem:[#allocation61_spill] sm:$0xff]  ;;  %v7060_v10 = vld [vmem:[#allocation62_spill] sm:$0xff] }
 0x3e4   :  { %4155 = vmatpush1.bf16.msra.mxu0 %v7050_v11  ;;  %4219 = vmatpush1.bf16.msra.mxu1 %v7051_v41  ;;  %v7061_v11 = vld [vmem:[#allocation63_spill] sm:$0xff]  ;;  %v7062_v41 = vld [vmem:[#allocation64_spill] sm:$0xff] }
 0x3e5   :  { %4157 = vmatprep.subr.bf16.mxu0 %v7052_v50  ;;  %4221 = vmatprep.subr.bf16.mxu1 %v7053_v14  ;;  %v7063_v50 = vld [vmem:[#allocation65_spill] sm:$0xff]  ;;  %v7064_v14 = vld [vmem:[#allocation66_spill] sm:$0xff] }
 0x3e8   :  { %4159 = vmatpush1.bf16.msra.mxu0 %v7054_v15  ;;  %4223 = vmatpush1.bf16.msra.mxu1 %v7055_v56  ;;  %v7065_v15 = vld [vmem:[#allocation67_spill] sm:$0xff]  ;;  %v7066_v56 = vld [vmem:[#allocation68_spill] sm:$0xff] }
 0x3e9   :  { %4161 = vmatprep.subr.bf16.mxu0 %v7056_v24  ;;  %4225 = vmatprep.subr.bf16.mxu1 %v7057_v21  ;;  %v7067_v24 = vld [vmem:[#allocation69_spill] sm:$0xff]  ;;  %v7068_v21 = vld [vmem:[#allocation14_spill] sm:$0xff] }
 0x3ec   :  { %4163 = vmatpush1.bf16.msra.mxu0 %v7058_v17  ;;  %4227 = vmatpush1.bf16.msra.mxu1 %v7059_v4  ;;  %v7069_v17 = vld [vmem:[#allocation15_spill] sm:$0xff] }
 0x3ed   :  { %4165 = vmatprep.subr.bf16.mxu0 %v7060_v10  ;;  %4229 = vmatprep.subr.bf16.mxu1 %v7061_v11 }
 0x3f0   :  { %4167 = vmatpush1.bf16.msra.mxu0 %v7062_v41  ;;  %4231 = vmatpush1.bf16.msra.mxu1 %v7063_v50 }
 0x3f1   :  { %4169 = vmatprep.subr.bf16.mxu0 %v7064_v14  ;;  %4233 = vmatprep.subr.bf16.mxu1 %v7065_v15  ;;  %v7071_v15 = vld [vmem:[#allocation75_spill] sm:$0xff] }
 0x3f4   :  { %4171 = vmatpush1.bf16.msra.mxu0 %v7066_v56  ;;  %4235 = vmatpush1.bf16.msra.mxu1 %v7067_v24 }
 0x3f5   :  { %4237 = vmatprep.subr.bf16.mxu0 %v7068_v21  ;;  %4269 = vmatprep.subr.bf16.mxu1 %v7069_v17 }
 0x46a   :  { %v1532_v4 = vpop.f32.mrb[20].mxu0  ;;  %v1603_v10 = vpop.f32.mrb[20].mxu1 }
 0x46b   :  { %v1533_v11 = vadd.f32 %v1532_v4, %v7070_v22  ;;  %v1534_v0 = vpop.f32.mrb[21].mxu0  ;;  %v1605_v41 = vpop.f32.mrb[21].mxu1  ;;  %v1604_v24 = vadd.f32 %v1603_v10, %v7011_v54  ;;  %v7072_v10 = vld [vmem:[#allocation71_spill] sm:$0xff] }
 0x46c   :  { %v1535_v50 = vadd.f32 %v1534_v0, %v7009_v18  ;;  %v1606_v56 = vadd.f32 %v1605_v41, %v7071_v15 }
 0x46d   :  { %v3424_v32 = vmul.f32 -1.442695, %v1533_v11 }
 0x46e   :  { %v3425_v14 = vmul.f32 -1.442695, %v1535_v50  ;;  %v3426_v45 = vmul.f32 -1.442695, %v1606_v56 }
 0x46f   :  { %5153 = vpow2.f32 %v3424_v32 }
 0x470   :  { %5155 = vpow2.f32 %v3425_v14 }
 0x471   :  { %5157 = vpow2.f32 %v3426_v45 }
 0x472   :  { %5159 = vtanh.f32 %v1604_v24 }
 0x479   :  { %v5154_v21 = vpop.eup %5153 }
 0x47a   :  { %v5156_v42 = vpop.eup %5155  ;;  %v1611_v17 = vadd.f32 1.0, %v5154_v21 }
 0x47b   :  { %v1617_v1 = vadd.f32 1.0, %v5156_v42  ;;  %v5158_v4 = vpop.eup %5157 }
 0x47c   :  { %5161 = vrcp.f32 %v1611_v17  ;;  %v5160_v22 = vpop.eup %5159  ;;  %v1624_v32 = vadd.f32 1.0, %v5158_v4 }
 0x47d   :  { %5163 = vrcp.f32 %v1617_v1 }
 0x47e   :  { %5165 = vrcp.f32 %v1624_v32 }
 0x486   :  { %v5162_v0 = vpop.eup %5161 }
 0x487   :  { %v5164_v11 = vpop.eup %5163  ;;  %v1628_v50 = vmul.f32 %v5162_v0, %v5160_v22  ;;  %v7073_v22 = vld [vmem:[#allocation73_spill] sm:$0xff] }
 0x488   :  { %v1627_v14 = vmul.f32 %v5164_v11, %v6101_v49  ;;  %v5166_v49 = vpop.eup %5165 }
 0x48a   :  { %v1705_v41 = vpop.f32.mrb[6].mxu0  ;;  %v1776_v56 = vpop.f32.mrb[6].mxu1  ;;  %v6215_v15 = vadd.f32 %v1628_v50, %v1627_v14 }
 0x48b   :  { %v5010_v21 = vadd.f32 %v1705_v41, %v7072_v10  ;;  %v1707_v45 = vpop.f32.mrb[7].mxu0  ;;  %v1778_v24 = vpop.f32.mrb[7].mxu1  ;;  %v5026_v50 = vadd.f32 %v1776_v56, %v5860_v31 }
 0x48c   :  { %v5011_v42 = vadd.f32 %v1707_v45, %v6952_v27  ;;  %5167 = vtanh.f32 %v6215_v15  ;;  %v5027_v4 = vadd.f32 %v1778_v24, %v7073_v22 }
 0x48d   :  { %v3427_v1 = vmul.f32 -1.442695, %v5010_v21 }
 0x48e   :  { %v3428_v17 = vmul.f32 -1.442695, %v5011_v42  ;;  %v3429_v11 = vmul.f32 -1.442695, %v5027_v4 }
 0x48f   :  { %5169 = vpow2.f32 %v3427_v1 }
 0x490   :  { %5171 = vpow2.f32 %v3428_v17 }
 0x491   :  { %5173 = vpow2.f32 %v3429_v11 }
 0x492   :  { %5175 = vtanh.f32 %v5026_v50  ;;  %v7077_v50 = vld [vmem:[#allocation19_spill] sm:$0xff] }
 0x496   :  { %v5168_v0 = vpop.eup %5167 }
 0x497   :  { %v1631_v32 = vmul.f32 %v5168_v0, %v5166_v49 }
 0x499   :  { %v5170_v14 = vpop.eup %5169  ;;  %1873 = vmatprep.mubr.f32.mxu0 %v1631_v32  ;;  %1944 = vmatprep.mubr.f32.mxu1 %v1631_v32  ;;  %v7078_v32 = vld [vmem:[#allocation20_spill] sm:$0xff] }
 0x49a   :  { %v5172_v41 = vpop.eup %5171  ;;  %v1788_v10 = vadd.f32 1.0, %v5170_v14  ;;  %v7079_v14 = vld [vmem:[#allocation21_spill] sm:$0xff] }
 0x49b   :  { %v1794_v45 = vadd.f32 1.0, %v5172_v41  ;;  %v5174_v21 = vpop.eup %5173  ;;  %v7080_v41 = vld [vmem:[#allocation22_spill] sm:$0xff] }
 0x49c   :  { %5177 = vrcp.f32 %v1788_v10  ;;  %v5176_v42 = vpop.eup %5175  ;;  %v1801_v22 = vadd.f32 1.0, %v5174_v21  ;;  %v7075_v10 = vld [vmem:[#allocation17_spill] sm:$0xff]  ;;  %v7082_v21 = vld [vmem:[#allocation24_spill] sm:$0xff] }
 0x49d   :  { %5179 = vrcp.f32 %v1794_v45  ;;  %v7081_v45 = vld [vmem:[#allocation23_spill] sm:$0xff] }
 0x49e   :  { %5181 = vrcp.f32 %v1801_v22  ;;  %v7076_v22 = vld [vmem:[#allocation18_spill] sm:$0xff] }
 0x4a6   :  { %v5178_v1 = vpop.eup %5177 }
 0x4a7   :  { %v5180_v24 = vpop.eup %5179  ;;  %v1805_v17 = vmul.f32 %v5178_v1, %v5176_v42  ;;  %v7083_v42 = vld [vmem:[#allocation25_spill] sm:$0xff]  ;;  %v7084_v1 = vld [vmem:[#allocation26_spill] sm:$0xff] }
 0x4a8   :  { %v1804_v4 = vmul.f32 %v5180_v24, %v6109_v52  ;;  %v5182_v49 = vpop.eup %5181  ;;  %v7074_v52 = vld [vmem:[#allocation16_spill] sm:$0xff]  ;;  %v7085_v24 = vld [vmem:[#allocation27_spill] sm:$0xff] }
 0x4aa   :  { %v6223_v56 = vadd.f32 %v1805_v17, %v1804_v4  ;;  %v7086_v17 = vld [vmem:[#allocation28_spill] sm:$0xff]  ;;  %v7087_v4 = vld [vmem:[#allocation29_spill] sm:$0xff] }
 0x4ac   :  { %5183 = vtanh.f32 %v6223_v56 }
 0x4b6   :  { %v5184_v0 = vpop.eup %5183 }
 0x4b7   :  { %v1808_v11 = vmul.f32 %v5184_v0, %v5182_v49  ;;  %v7088_v49 = vld [vmem:[#allocation30_spill] sm:$0xff]  ;;  %v7089_v0 = vld [vmem:[#allocation31_spill] sm:$0xff] }
 0x4b9   :  { %1874 = vmatmul.mubr.f32.vlgmr.msra.gmra.mrb[22].mxu0 %v1808_v11  ;;  %1945 = vmatmul.mubr.f32.vlgmr.msra.gmra.mrb[22].mxu1 %v1808_v11 }
 0x4ba   :  { %4239 = vmatpush1.bf16.msra.mxu0 %v5491_v23  ;;  %4271 = vmatpush1.bf16.msra.mxu1 %v5494_v26 }
 0x4bb   :  { %4241 = vmatprep.subr.bf16.mxu0 %v5498_v30  ;;  %4273 = vmatprep.subr.bf16.mxu1 %v5505_v35 }
 0x4bc   :  { %2046 = vmatprep.mubr.f32.mxu0 %v6891_v5  ;;  %2117 = vmatprep.mubr.f32.mxu1 %v6891_v5 }
 0x4be   :  { %4243 = vmatpush1.bf16.msra.mxu0 %v5507_v36  ;;  %4275 = vmatpush1.bf16.msra.mxu1 %v5511_v39 }
 0x4bf   :  { %4245 = vmatprep.subr.bf16.mxu0 %v5515_v43  ;;  %4277 = vmatprep.subr.bf16.mxu1 %v5522_v48 }
 0x4c2   :  { %4247 = vmatpush1.bf16.msra.mxu0 %v5526_v51  ;;  %4279 = vmatpush1.bf16.msra.mxu1 %v5530_v55 }
 0x4c3   :  { %4249 = vmatprep.subr.bf16.mxu0 %v5534_v59  ;;  %4281 = vmatprep.subr.bf16.mxu1 %v5538_v62 }
 0x4c6   :  { %4251 = vmatpush1.bf16.msra.mxu0 %v5545_v3  ;;  %4283 = vmatpush1.bf16.msra.mxu1 %v5549_v6 }
 0x4c7   :  { %4253 = vmatprep.subr.bf16.mxu0 %v5553_v9  ;;  %4285 = vmatprep.subr.bf16.mxu1 %v5557_v12 }
 0x4ca   :  { %4255 = vmatpush1.bf16.msra.mxu0 %v5564_v16  ;;  %4287 = vmatpush1.bf16.msra.mxu1 %v5568_v20 }
 0x4cb   :  { %4257 = vmatprep.subr.bf16.mxu0 %v5572_v25  ;;  %4289 = vmatprep.subr.bf16.mxu1 %v5576_v29 }
 0x4ce   :  { %4259 = vmatpush1.bf16.msra.mxu0 %v5583_v34  ;;  %4291 = vmatpush1.bf16.msra.mxu1 %v5587_v40 }
 0x4cf   :  { %4261 = vmatprep.subr.bf16.mxu0 %v5591_v44  ;;  %4293 = vmatprep.subr.bf16.mxu1 %v5595_v47 }
 0x4d2   :  { %4263 = vmatpush1.bf16.msra.mxu0 %v5602_v53  ;;  %4295 = vmatpush1.bf16.msra.mxu1 %v5606_v57 }
 0x4d3   :  { %4265 = vmatprep.subr.bf16.mxu0 %v5610_v61  ;;  %4297 = vmatprep.subr.bf16.mxu1 %v5614_v2 }
 0x4d6   :  { %4267 = vmatpush1.bf16.msra.mxu0 %v5621_v8  ;;  %4299 = vmatpush1.bf16.msra.mxu1 %v5625_v13 }
 0x4d7   :  { %4301 = vmatprep.subr.bf16.mxu0 %v5629_v19  ;;  %4365 = vmatprep.subr.bf16.mxu1 %v5633_v28 }
 0x4d9   :  { %2047 = vmatmul.mubr.f32.vlgmr.msra.gmra.mrb[8].mxu0 %v1808_v11  ;;  %2118 = vmatmul.mubr.f32.vlgmr.msra.gmra.mrb[8].mxu1 %v1808_v11  ;;  %v7090_v11 = vld [vmem:[#allocation32_spill] sm:$0xff] }
 0x4da   :  { %4303 = vmatpush1.bf16.msra.mxu0 %v5637_v33  ;;  %4367 = vmatpush1.bf16.msra.mxu1 %v5641_v37 }
 0x4db   :  { %4305 = vmatprep.subr.bf16.mxu0 %v5643_v38  ;;  %4369 = vmatprep.subr.bf16.mxu1 %v5647_v46 }
 0x4de   :  { %4307 = vmatpush1.bf16.msra.mxu0 %v5653_v58  ;;  %4371 = vmatpush1.bf16.msra.mxu1 %v5657_v60 }
 0x4df   :  { %4309 = vmatprep.subr.bf16.mxu0 %v5659_v63  ;;  %4373 = vmatprep.subr.bf16.mxu1 %v5662_v7 }
 0x4e2   :  { %4311 = vmatpush1.bf16.msra.mxu0 %v7074_v52  ;;  %4375 = vmatpush1.bf16.msra.mxu1 %v7075_v10 }
 0x4e3   :  { %4313 = vmatprep.subr.bf16.mxu0 %v7076_v22  ;;  %4377 = vmatprep.subr.bf16.mxu1 %v7077_v50 }
 0x4e6   :  { %4315 = vmatpush1.bf16.msra.mxu0 %v7078_v32  ;;  %4379 = vmatpush1.bf16.msra.mxu1 %v7079_v14  ;;  %v7130_v14 = vld [vmem:[#allocation70_spill] sm:$0xff] }
 0x4e7   :  { %4317 = vmatprep.subr.bf16.mxu0 %v7080_v41  ;;  %4381 = vmatprep.subr.bf16.mxu1 %v7081_v45  ;;  %v7091_v41 = vld [vmem:[#allocation33_spill] sm:$0xff]  ;;  %v7092_v45 = vld [vmem:[#allocation34_spill] sm:$0xff] }
 0x4ea   :  { %4319 = vmatpush1.bf16.msra.mxu0 %v7082_v21  ;;  %4383 = vmatpush1.bf16.msra.mxu1 %v7083_v42  ;;  %v7093_v21 = vld [vmem:[#allocation35_spill] sm:$0xff]  ;;  %v7094_v42 = vld [vmem:[#allocation36_spill] sm:$0xff] }
 0x4eb   :  { %4321 = vmatprep.subr.bf16.mxu0 %v7084_v1  ;;  %4385 = vmatprep.subr.bf16.mxu1 %v7085_v24  ;;  %v7095_v1 = vld [vmem:[#allocation37_spill] sm:$0xff]  ;;  %v7096_v24 = vld [vmem:[#allocation38_spill] sm:$0xff] }
 0x4ee   :  { %4323 = vmatpush1.bf16.msra.mxu0 %v7086_v17  ;;  %4387 = vmatpush1.bf16.msra.mxu1 %v7087_v4  ;;  %v7097_v17 = vld [vmem:[#allocation39_spill] sm:$0xff]  ;;  %v7098_v4 = vld [vmem:[#allocation40_spill] sm:$0xff] }
 0x4ef   :  { %4325 = vmatprep.subr.bf16.mxu0 %v7088_v49  ;;  %4389 = vmatprep.subr.bf16.mxu1 %v7089_v0  ;;  %v7099_v49 = vld [vmem:[#allocation41_spill] sm:$0xff]  ;;  %v7100_v0 = vld [vmem:[#allocation42_spill] sm:$0xff] }
 0x4f2   :  { %4327 = vmatpush1.bf16.msra.mxu0 %v7090_v11  ;;  %4391 = vmatpush1.bf16.msra.mxu1 %v7091_v41  ;;  %v7101_v11 = vld [vmem:[#allocation43_spill] sm:$0xff]  ;;  %v7102_v41 = vld [vmem:[#allocation44_spill] sm:$0xff] }
 0x4f3   :  { %4329 = vmatprep.subr.bf16.mxu0 %v7092_v45  ;;  %4393 = vmatprep.subr.bf16.mxu1 %v7093_v21  ;;  %v7103_v45 = vld [vmem:[#allocation45_spill] sm:$0xff]  ;;  %v7104_v21 = vld [vmem:[#allocation46_spill] sm:$0xff] }
 0x4f6   :  { %4331 = vmatpush1.bf16.msra.mxu0 %v7094_v42  ;;  %4395 = vmatpush1.bf16.msra.mxu1 %v7095_v1  ;;  %v7105_v42 = vld [vmem:[#allocation47_spill] sm:$0xff]  ;;  %v7106_v1 = vld [vmem:[#allocation48_spill] sm:$0xff] }
 0x4f7   :  { %4333 = vmatprep.subr.bf16.mxu0 %v7096_v24  ;;  %4397 = vmatprep.subr.bf16.mxu1 %v7097_v17  ;;  %v7107_v24 = vld [vmem:[#allocation49_spill] sm:$0xff]  ;;  %v7108_v17 = vld [vmem:[#allocation50_spill] sm:$0xff] }
 0x4fa   :  { %4335 = vmatpush1.bf16.msra.mxu0 %v7098_v4  ;;  %4399 = vmatpush1.bf16.msra.mxu1 %v7099_v49  ;;  %v7109_v4 = vld [vmem:[#allocation51_spill] sm:$0xff]  ;;  %v7110_v49 = vld [vmem:[#allocation52_spill] sm:$0xff] }
 0x4fb   :  { %4337 = vmatprep.subr.bf16.mxu0 %v7100_v0  ;;  %4401 = vmatprep.subr.bf16.mxu1 %v7101_v11  ;;  %v7111_v0 = vld [vmem:[#allocation53_spill] sm:$0xff]  ;;  %v7112_v11 = vld [vmem:[#allocation54_spill] sm:$0xff] }
 0x4fe   :  { %4339 = vmatpush1.bf16.msra.mxu0 %v7102_v41  ;;  %4403 = vmatpush1.bf16.msra.mxu1 %v7103_v45  ;;  %v7113_v41 = vld [vmem:[#allocation55_spill] sm:$0xff]  ;;  %v7114_v45 = vld [vmem:[#allocation56_spill] sm:$0xff] }
 0x4ff   :  { %4341 = vmatprep.subr.bf16.mxu0 %v7104_v21  ;;  %4405 = vmatprep.subr.bf16.mxu1 %v7105_v42  ;;  %v7115_v21 = vld [vmem:[#allocation57_spill] sm:$0xff]  ;;  %v7116_v42 = vld [vmem:[#allocation58_spill] sm:$0xff] }
 0x502   :  { %4343 = vmatpush1.bf16.msra.mxu0 %v7106_v1  ;;  %4407 = vmatpush1.bf16.msra.mxu1 %v7107_v24  ;;  %v7117_v1 = vld [vmem:[#allocation59_spill] sm:$0xff]  ;;  %v7118_v24 = vld [vmem:[#allocation60_spill] sm:$0xff] }
 0x503   :  { %4345 = vmatprep.subr.bf16.mxu0 %v7108_v17  ;;  %4409 = vmatprep.subr.bf16.mxu1 %v7109_v4  ;;  %v7119_v17 = vld [vmem:[#allocation61_spill] sm:$0xff]  ;;  %v7120_v4 = vld [vmem:[#allocation62_spill] sm:$0xff] }
 0x506   :  { %4347 = vmatpush1.bf16.msra.mxu0 %v7110_v49  ;;  %4411 = vmatpush1.bf16.msra.mxu1 %v7111_v0  ;;  %v7121_v49 = vld [vmem:[#allocation63_spill] sm:$0xff]  ;;  %v7122_v0 = vld [vmem:[#allocation64_spill] sm:$0xff] }
 0x507   :  { %4349 = vmatprep.subr.bf16.mxu0 %v7112_v11  ;;  %4413 = vmatprep.subr.bf16.mxu1 %v7113_v41  ;;  %v7123_v11 = vld [vmem:[#allocation65_spill] sm:$0xff]  ;;  %v7124_v41 = vld [vmem:[#allocation66_spill] sm:$0xff] }
 0x50a   :  { %4351 = vmatpush1.bf16.msra.mxu0 %v7114_v45  ;;  %4415 = vmatpush1.bf16.msra.mxu1 %v7115_v21  ;;  %v7125_v45 = vld [vmem:[#allocation67_spill] sm:$0xff]  ;;  %v7126_v21 = vld [vmem:[#allocation68_spill] sm:$0xff] }
 0x50b   :  { %4353 = vmatprep.subr.bf16.mxu0 %v7116_v42  ;;  %4417 = vmatprep.subr.bf16.mxu1 %v7117_v1  ;;  %v7127_v42 = vld [vmem:[#allocation69_spill] sm:$0xff]  ;;  %v7128_v1 = vld [vmem:[#allocation14_spill] sm:$0xff] }
 0x50e   :  { %4355 = vmatpush1.bf16.msra.mxu0 %v7118_v24  ;;  %4419 = vmatpush1.bf16.msra.mxu1 %v7119_v17  ;;  %v7129_v24 = vld [vmem:[#allocation15_spill] sm:$0xff] }
 0x50f   :  { %4357 = vmatprep.subr.bf16.mxu0 %v7120_v4  ;;  %4421 = vmatprep.subr.bf16.mxu1 %v7121_v49 }
 0x512   :  { %4359 = vmatpush1.bf16.msra.mxu0 %v7122_v0  ;;  %4423 = vmatpush1.bf16.msra.mxu1 %v7123_v11 }
 0x513   :  { %4361 = vmatprep.subr.bf16.mxu0 %v7124_v41  ;;  %4425 = vmatprep.subr.bf16.mxu1 %v7125_v45  ;;  %v7131_v45 = vld [vmem:[#allocation75_spill] sm:$0xff] }
 0x516   :  { %4363 = vmatpush1.bf16.msra.mxu0 %v7126_v21  ;;  %4427 = vmatpush1.bf16.msra.mxu1 %v7127_v42 }
 0x517   :  { %4429 = vmatprep.subr.bf16.mxu0 %v7128_v1  ;;  %4461 = vmatprep.subr.bf16.mxu1 %v7129_v24 }
 0x58c   :  { %v1875_v17 = vpop.f32.mrb[22].mxu0  ;;  %v1946_v4 = vpop.f32.mrb[22].mxu1 }
 0x58d   :  { %v1876_v49 = vadd.f32 %v1875_v17, %v7130_v14  ;;  %v1877_v32 = vpop.f32.mrb[23].mxu0  ;;  %v1948_v0 = vpop.f32.mrb[23].mxu1  ;;  %v1947_v42 = vadd.f32 %v1946_v4, %v7011_v54  ;;  %v7132_v4 = vld [vmem:[#allocation71_spill] sm:$0xff] }
 0x58e   :  { %v1878_v11 = vadd.f32 %v1877_v32, %v7009_v18  ;;  %v1949_v21 = vadd.f32 %v1948_v0, %v7131_v45 }
 0x58f   :  { %v3430_v50 = vmul.f32 -1.442695, %v1876_v49 }
 0x590   :  { %v3431_v41 = vmul.f32 -1.442695, %v1878_v11  ;;  %v3432_v22 = vmul.f32 -1.442695, %v1949_v21 }
 0x591   :  { %5185 = vpow2.f32 %v3430_v50 }
 0x592   :  { %5187 = vpow2.f32 %v3431_v41 }
 0x593   :  { %5189 = vpow2.f32 %v3432_v22 }
 0x594   :  { %5191 = vtanh.f32 %v1947_v42 }
 0x59b   :  { %v5186_v1 = vpop.eup %5185 }
 0x59c   :  { %v5188_v10 = vpop.eup %5187  ;;  %v1954_v24 = vadd.f32 1.0, %v5186_v1 }
 0x59d   :  { %v1960_v52 = vadd.f32 1.0, %v5188_v10  ;;  %v5190_v17 = vpop.eup %5189 }
 0x59e   :  { %5193 = vrcp.f32 %v1954_v24  ;;  %v5192_v14 = vpop.eup %5191  ;;  %v1967_v50 = vadd.f32 1.0, %v5190_v17 }
 0x59f   :  { %5195 = vrcp.f32 %v1960_v52 }
 0x5a0   :  { %5197 = vrcp.f32 %v1967_v50 }
 0x5a8   :  { %v5194_v32 = vpop.eup %5193 }
 0x5a9   :  { %v5196_v49 = vpop.eup %5195  ;;  %v1971_v11 = vmul.f32 %v5194_v32, %v5192_v14  ;;  %v7133_v14 = vld [vmem:[#allocation73_spill] sm:$0xff] }
 0x5aa   :  { %v1970_v41 = vmul.f32 %v5196_v49, %v6215_v15  ;;  %v5198_v15 = vpop.eup %5197 }
 0x5ac   :  { %v2048_v0 = vpop.f32.mrb[8].mxu0  ;;  %v2119_v21 = vpop.f32.mrb[8].mxu1  ;;  %v6329_v45 = vadd.f32 %v1971_v11, %v1970_v41 }
 0x5ad   :  { %v5012_v1 = vadd.f32 %v2048_v0, %v7132_v4  ;;  %v2050_v22 = vpop.f32.mrb[9].mxu0  ;;  %v2121_v42 = vpop.f32.mrb[9].mxu1  ;;  %v5028_v11 = vadd.f32 %v2119_v21, %v5860_v31 }
 0x5ae   :  { %v5013_v10 = vadd.f32 %v2050_v22, %v6952_v27  ;;  %5199 = vtanh.f32 %v6329_v45  ;;  %v5029_v17 = vadd.f32 %v2121_v42, %v7133_v14 }
 0x5af   :  { %v3433_v52 = vmul.f32 -1.442695, %v5012_v1 }
 0x5b0   :  { %v3434_v24 = vmul.f32 -1.442695, %v5013_v10  ;;  %v3435_v49 = vmul.f32 -1.442695, %v5029_v17 }
 0x5b1   :  { %5201 = vpow2.f32 %v3433_v52 }
 0x5b2   :  { %5203 = vpow2.f32 %v3434_v24 }
 0x5b3   :  { %5205 = vpow2.f32 %v3435_v49 }
 0x5b4   :  { %5207 = vtanh.f32 %v5028_v11  ;;  %v7137_v11 = vld [vmem:[#allocation19_spill] sm:$0xff] }
 0x5b8   :  { %v5200_v32 = vpop.eup %5199 }
 0x5b9   :  { %v1974_v50 = vmul.f32 %v5200_v32, %v5198_v15 }
 0x5bb   :  { %v5202_v41 = vpop.eup %5201  ;;  %2216 = vmatprep.mubr.f32.mxu0 %v1974_v50  ;;  %2287 = vmatprep.mubr.f32.mxu1 %v1974_v50  ;;  %v7138_v50 = vld [vmem:[#allocation20_spill] sm:$0xff] }
 0x5bc   :  { %v5204_v0 = vpop.eup %5203  ;;  %v2131_v4 = vadd.f32 1.0, %v5202_v41  ;;  %v7139_v41 = vld [vmem:[#allocation21_spill] sm:$0xff] }
 0x5bd   :  { %v2137_v22 = vadd.f32 1.0, %v5204_v0  ;;  %v5206_v1 = vpop.eup %5205  ;;  %v7140_v0 = vld [vmem:[#allocation22_spill] sm:$0xff] }
 0x5be   :  { %5209 = vrcp.f32 %v2131_v4  ;;  %v5208_v10 = vpop.eup %5207  ;;  %v2144_v14 = vadd.f32 1.0, %v5206_v1  ;;  %v7135_v4 = vld [vmem:[#allocation17_spill] sm:$0xff]  ;;  %v7142_v1 = vld [vmem:[#allocation24_spill] sm:$0xff] }
 0x5bf   :  { %5211 = vrcp.f32 %v2137_v22  ;;  %v7141_v22 = vld [vmem:[#allocation23_spill] sm:$0xff] }
 0x5c0   :  { %5213 = vrcp.f32 %v2144_v14  ;;  %v7136_v14 = vld [vmem:[#allocation18_spill] sm:$0xff] }
 0x5c8   :  { %v5210_v52 = vpop.eup %5209 }
 0x5c9   :  { %v5212_v42 = vpop.eup %5211  ;;  %v2148_v24 = vmul.f32 %v5210_v52, %v5208_v10  ;;  %v7143_v10 = vld [vmem:[#allocation25_spill] sm:$0xff]  ;;  %v7144_v52 = vld [vmem:[#allocation26_spill] sm:$0xff] }
 0x5ca   :  { %v2147_v17 = vmul.f32 %v5212_v42, %v6223_v56  ;;  %v5214_v15 = vpop.eup %5213  ;;  %v7134_v56 = vld [vmem:[#allocation16_spill] sm:$0xff]  ;;  %v7145_v42 = vld [vmem:[#allocation27_spill] sm:$0xff] }
 0x5cc   :  { %v6337_v21 = vadd.f32 %v2148_v24, %v2147_v17  ;;  %v7146_v24 = vld [vmem:[#allocation28_spill] sm:$0xff]  ;;  %v7147_v17 = vld [vmem:[#allocation29_spill] sm:$0xff] }
 0x5ce   :  { %5215 = vtanh.f32 %v6337_v21 }
 0x5d8   :  { %v5216_v32 = vpop.eup %5215 }
 0x5d9   :  { %v2151_v49 = vmul.f32 %v5216_v32, %v5214_v15  ;;  %v7148_v15 = vld [vmem:[#allocation30_spill] sm:$0xff]  ;;  %v7149_v32 = vld [vmem:[#allocation31_spill] sm:$0xff] }
 0x5db   :  { %2217 = vmatmul.mubr.f32.vlgmr.msra.gmra.mrb[24].mxu0 %v2151_v49  ;;  %2288 = vmatmul.mubr.f32.vlgmr.msra.gmra.mrb[24].mxu1 %v2151_v49 }
 0x5dc   :  { %4431 = vmatpush1.bf16.msra.mxu0 %v5491_v23  ;;  %4463 = vmatpush1.bf16.msra.mxu1 %v5494_v26 }
 0x5dd   :  { %4433 = vmatprep.subr.bf16.mxu0 %v5498_v30  ;;  %4465 = vmatprep.subr.bf16.mxu1 %v5505_v35 }
 0x5de   :  { %2389 = vmatprep.mubr.f32.mxu0 %v6891_v5  ;;  %2460 = vmatprep.mubr.f32.mxu1 %v6891_v5 }
 0x5e0   :  { %4435 = vmatpush1.bf16.msra.mxu0 %v5507_v36  ;;  %4467 = vmatpush1.bf16.msra.mxu1 %v5511_v39 }
 0x5e1   :  { %4437 = vmatprep.subr.bf16.mxu0 %v5515_v43  ;;  %4469 = vmatprep.subr.bf16.mxu1 %v5522_v48 }
 0x5e4   :  { %4439 = vmatpush1.bf16.msra.mxu0 %v5526_v51  ;;  %4471 = vmatpush1.bf16.msra.mxu1 %v5530_v55 }
 0x5e5   :  { %4441 = vmatprep.subr.bf16.mxu0 %v5534_v59  ;;  %4473 = vmatprep.subr.bf16.mxu1 %v5538_v62 }
 0x5e8   :  { %4443 = vmatpush1.bf16.msra.mxu0 %v5545_v3  ;;  %4475 = vmatpush1.bf16.msra.mxu1 %v5549_v6 }
 0x5e9   :  { %4445 = vmatprep.subr.bf16.mxu0 %v5553_v9  ;;  %4477 = vmatprep.subr.bf16.mxu1 %v5557_v12 }
 0x5ec   :  { %4447 = vmatpush1.bf16.msra.mxu0 %v5564_v16  ;;  %4479 = vmatpush1.bf16.msra.mxu1 %v5568_v20 }
 0x5ed   :  { %4449 = vmatprep.subr.bf16.mxu0 %v5572_v25  ;;  %4481 = vmatprep.subr.bf16.mxu1 %v5576_v29 }
 0x5f0   :  { %4451 = vmatpush1.bf16.msra.mxu0 %v5583_v34  ;;  %4483 = vmatpush1.bf16.msra.mxu1 %v5587_v40 }
 0x5f1   :  { %4453 = vmatprep.subr.bf16.mxu0 %v5591_v44  ;;  %4485 = vmatprep.subr.bf16.mxu1 %v5595_v47 }
 0x5f4   :  { %4455 = vmatpush1.bf16.msra.mxu0 %v5602_v53  ;;  %4487 = vmatpush1.bf16.msra.mxu1 %v5606_v57 }
 0x5f5   :  { %4457 = vmatprep.subr.bf16.mxu0 %v5610_v61  ;;  %4489 = vmatprep.subr.bf16.mxu1 %v5614_v2 }
 0x5f8   :  { %4459 = vmatpush1.bf16.msra.mxu0 %v5621_v8  ;;  %4491 = vmatpush1.bf16.msra.mxu1 %v5625_v13 }
 0x5f9   :  { %4493 = vmatprep.subr.bf16.mxu0 %v5629_v19  ;;  %4557 = vmatprep.subr.bf16.mxu1 %v5633_v28 }
 0x5fb   :  { %2390 = vmatmul.mubr.f32.vlgmr.msra.gmra.mrb[10].mxu0 %v2151_v49  ;;  %2461 = vmatmul.mubr.f32.vlgmr.msra.gmra.mrb[10].mxu1 %v2151_v49  ;;  %v7150_v49 = vld [vmem:[#allocation32_spill] sm:$0xff] }
 0x5fc   :  { %4495 = vmatpush1.bf16.msra.mxu0 %v5637_v33  ;;  %4559 = vmatpush1.bf16.msra.mxu1 %v5641_v37 }
 0x5fd   :  { %4497 = vmatprep.subr.bf16.mxu0 %v5643_v38  ;;  %4561 = vmatprep.subr.bf16.mxu1 %v5647_v46 }
 0x600   :  { %4499 = vmatpush1.bf16.msra.mxu0 %v5653_v58  ;;  %4563 = vmatpush1.bf16.msra.mxu1 %v5657_v60 }
 0x601   :  { %4501 = vmatprep.subr.bf16.mxu0 %v5659_v63  ;;  %4565 = vmatprep.subr.bf16.mxu1 %v5662_v7 }
 0x604   :  { %4503 = vmatpush1.bf16.msra.mxu0 %v7134_v56  ;;  %4567 = vmatpush1.bf16.msra.mxu1 %v7135_v4 }
 0x605   :  { %4505 = vmatprep.subr.bf16.mxu0 %v7136_v14  ;;  %4569 = vmatprep.subr.bf16.mxu1 %v7137_v11 }
 0x608   :  { %4507 = vmatpush1.bf16.msra.mxu0 %v7138_v50  ;;  %4571 = vmatpush1.bf16.msra.mxu1 %v7139_v41  ;;  %v7190_v41 = vld [vmem:[#allocation70_spill] sm:$0xff] }
 0x609   :  { %4509 = vmatprep.subr.bf16.mxu0 %v7140_v0  ;;  %4573 = vmatprep.subr.bf16.mxu1 %v7141_v22  ;;  %v7151_v0 = vld [vmem:[#allocation33_spill] sm:$0xff]  ;;  %v7152_v22 = vld [vmem:[#allocation34_spill] sm:$0xff] }
 0x60c   :  { %4511 = vmatpush1.bf16.msra.mxu0 %v7142_v1  ;;  %4575 = vmatpush1.bf16.msra.mxu1 %v7143_v10  ;;  %v7153_v1 = vld [vmem:[#allocation35_spill] sm:$0xff]  ;;  %v7154_v10 = vld [vmem:[#allocation36_spill] sm:$0xff] }
 0x60d   :  { %4513 = vmatprep.subr.bf16.mxu0 %v7144_v52  ;;  %4577 = vmatprep.subr.bf16.mxu1 %v7145_v42  ;;  %v7155_v52 = vld [vmem:[#allocation37_spill] sm:$0xff]  ;;  %v7156_v42 = vld [vmem:[#allocation38_spill] sm:$0xff] }
 0x610   :  { %4515 = vmatpush1.bf16.msra.mxu0 %v7146_v24  ;;  %4579 = vmatpush1.bf16.msra.mxu1 %v7147_v17  ;;  %v7157_v24 = vld [vmem:[#allocation39_spill] sm:$0xff]  ;;  %v7158_v17 = vld [vmem:[#allocation40_spill] sm:$0xff] }
 0x611   :  { %4517 = vmatprep.subr.bf16.mxu0 %v7148_v15  ;;  %4581 = vmatprep.subr.bf16.mxu1 %v7149_v32  ;;  %v7159_v15 = vld [vmem:[#allocation41_spill] sm:$0xff]  ;;  %v7160_v32 = vld [vmem:[#allocation42_spill] sm:$0xff] }
 0x614   :  { %4519 = vmatpush1.bf16.msra.mxu0 %v7150_v49  ;;  %4583 = vmatpush1.bf16.msra.mxu1 %v7151_v0  ;;  %v7161_v49 = vld [vmem:[#allocation43_spill] sm:$0xff]  ;;  %v7162_v0 = vld [vmem:[#allocation44_spill] sm:$0xff] }
 0x615   :  { %4521 = vmatprep.subr.bf16.mxu0 %v7152_v22  ;;  %4585 = vmatprep.subr.bf16.mxu1 %v7153_v1  ;;  %v7163_v22 = vld [vmem:[#allocation45_spill] sm:$0xff]  ;;  %v7164_v1 = vld [vmem:[#allocation46_spill] sm:$0xff] }
 0x618   :  { %4523 = vmatpush1.bf16.msra.mxu0 %v7154_v10  ;;  %4587 = vmatpush1.bf16.msra.mxu1 %v7155_v52  ;;  %v7165_v10 = vld [vmem:[#allocation47_spill] sm:$0xff]  ;;  %v7166_v52 = vld [vmem:[#allocation48_spill] sm:$0xff] }
 0x619   :  { %4525 = vmatprep.subr.bf16.mxu0 %v7156_v42  ;;  %4589 = vmatprep.subr.bf16.mxu1 %v7157_v24  ;;  %v7167_v42 = vld [vmem:[#allocation49_spill] sm:$0xff]  ;;  %v7168_v24 = vld [vmem:[#allocation50_spill] sm:$0xff] }
 0x61c   :  { %4527 = vmatpush1.bf16.msra.mxu0 %v7158_v17  ;;  %4591 = vmatpush1.bf16.msra.mxu1 %v7159_v15  ;;  %v7169_v17 = vld [vmem:[#allocation51_spill] sm:$0xff]  ;;  %v7170_v15 = vld [vmem:[#allocation52_spill] sm:$0xff] }
 0x61d   :  { %4529 = vmatprep.subr.bf16.mxu0 %v7160_v32  ;;  %4593 = vmatprep.subr.bf16.mxu1 %v7161_v49  ;;  %v7171_v32 = vld [vmem:[#allocation53_spill] sm:$0xff]  ;;  %v7172_v49 = vld [vmem:[#allocation54_spill] sm:$0xff] }
 0x620   :  { %4531 = vmatpush1.bf16.msra.mxu0 %v7162_v0  ;;  %4595 = vmatpush1.bf16.msra.mxu1 %v7163_v22  ;;  %v7173_v0 = vld [vmem:[#allocation55_spill] sm:$0xff]  ;;  %v7174_v22 = vld [vmem:[#allocation56_spill] sm:$0xff] }
 0x621   :  { %4533 = vmatprep.subr.bf16.mxu0 %v7164_v1  ;;  %4597 = vmatprep.subr.bf16.mxu1 %v7165_v10  ;;  %v7175_v1 = vld [vmem:[#allocation57_spill] sm:$0xff]  ;;  %v7176_v10 = vld [vmem:[#allocation58_spill] sm:$0xff] }
 0x624   :  { %4535 = vmatpush1.bf16.msra.mxu0 %v7166_v52  ;;  %4599 = vmatpush1.bf16.msra.mxu1 %v7167_v42  ;;  %v7177_v52 = vld [vmem:[#allocation59_spill] sm:$0xff]  ;;  %v7178_v42 = vld [vmem:[#allocation60_spill] sm:$0xff] }
 0x625   :  { %4537 = vmatprep.subr.bf16.mxu0 %v7168_v24  ;;  %4601 = vmatprep.subr.bf16.mxu1 %v7169_v17  ;;  %v7179_v24 = vld [vmem:[#allocation61_spill] sm:$0xff]  ;;  %v7180_v17 = vld [vmem:[#allocation62_spill] sm:$0xff] }
 0x628   :  { %4539 = vmatpush1.bf16.msra.mxu0 %v7170_v15  ;;  %4603 = vmatpush1.bf16.msra.mxu1 %v7171_v32  ;;  %v7181_v15 = vld [vmem:[#allocation63_spill] sm:$0xff]  ;;  %v7182_v32 = vld [vmem:[#allocation64_spill] sm:$0xff] }
 0x629   :  { %4541 = vmatprep.subr.bf16.mxu0 %v7172_v49  ;;  %4605 = vmatprep.subr.bf16.mxu1 %v7173_v0  ;;  %v7183_v49 = vld [vmem:[#allocation65_spill] sm:$0xff]  ;;  %v7184_v0 = vld [vmem:[#allocation66_spill] sm:$0xff] }
 0x62c   :  { %4543 = vmatpush1.bf16.msra.mxu0 %v7174_v22  ;;  %4607 = vmatpush1.bf16.msra.mxu1 %v7175_v1  ;;  %v7185_v22 = vld [vmem:[#allocation67_spill] sm:$0xff]  ;;  %v7186_v1 = vld [vmem:[#allocation68_spill] sm:$0xff] }
 0x62d   :  { %4545 = vmatprep.subr.bf16.mxu0 %v7176_v10  ;;  %4609 = vmatprep.subr.bf16.mxu1 %v7177_v52  ;;  %v7187_v10 = vld [vmem:[#allocation69_spill] sm:$0xff]  ;;  %v7188_v52 = vld [vmem:[#allocation14_spill] sm:$0xff] }
 0x630   :  { %4547 = vmatpush1.bf16.msra.mxu0 %v7178_v42  ;;  %4611 = vmatpush1.bf16.msra.mxu1 %v7179_v24  ;;  %v7189_v42 = vld [vmem:[#allocation15_spill] sm:$0xff] }
 0x631   :  { %4549 = vmatprep.subr.bf16.mxu0 %v7180_v17  ;;  %4613 = vmatprep.subr.bf16.mxu1 %v7181_v15 }
 0x634   :  { %4551 = vmatpush1.bf16.msra.mxu0 %v7182_v32  ;;  %4615 = vmatpush1.bf16.msra.mxu1 %v7183_v49 }
 0x635   :  { %4553 = vmatprep.subr.bf16.mxu0 %v7184_v0  ;;  %4617 = vmatprep.subr.bf16.mxu1 %v7185_v22  ;;  %v7191_v22 = vld [vmem:[#allocation75_spill] sm:$0xff] }
 0x638   :  { %4555 = vmatpush1.bf16.msra.mxu0 %v7186_v1  ;;  %4619 = vmatpush1.bf16.msra.mxu1 %v7187_v10 }
 0x639   :  { %4621 = vmatprep.subr.bf16.mxu0 %v7188_v52  ;;  %4653 = vmatprep.subr.bf16.mxu1 %v7189_v42 }
 0x6ae   :  { %v2218_v24 = vpop.f32.mrb[24].mxu0  ;;  %v2289_v17 = vpop.f32.mrb[24].mxu1 }
 0x6af   :  { %v2219_v15 = vadd.f32 %v2218_v24, %v7190_v41  ;;  %v2220_v50 = vpop.f32.mrb[25].mxu0  ;;  %v2291_v32 = vpop.f32.mrb[25].mxu1  ;;  %v2290_v10 = vadd.f32 %v2289_v17, %v7011_v54  ;;  %v7192_v17 = vld [vmem:[#allocation71_spill] sm:$0xff] }
 0x6b0   :  { %v2221_v49 = vadd.f32 %v2220_v50, %v7009_v18  ;;  %v2292_v1 = vadd.f32 %v2291_v32, %v7191_v22 }
 0x6b1   :  { %v3436_v11 = vmul.f32 -1.442695, %v2219_v15 }
 0x6b2   :  { %v3437_v0 = vmul.f32 -1.442695, %v2221_v49  ;;  %v3438_v14 = vmul.f32 -1.442695, %v2292_v1 }
 0x6b3   :  { %5217 = vpow2.f32 %v3436_v11 }
 0x6b4   :  { %5219 = vpow2.f32 %v3437_v0 }
 0x6b5   :  { %5221 = vpow2.f32 %v3438_v14 }
 0x6b6   :  { %5223 = vtanh.f32 %v2290_v10 }
 0x6bd   :  { %v5218_v52 = vpop.eup %5217 }
 0x6be   :  { %v5220_v4 = vpop.eup %5219  ;;  %v2297_v42 = vadd.f32 1.0, %v5218_v52 }
 0x6bf   :  { %v2303_v56 = vadd.f32 1.0, %v5220_v4  ;;  %v5222_v24 = vpop.eup %5221 }
 0x6c0   :  { %5225 = vrcp.f32 %v2297_v42  ;;  %v5224_v41 = vpop.eup %5223  ;;  %v2310_v11 = vadd.f32 1.0, %v5222_v24 }
 0x6c1   :  { %5227 = vrcp.f32 %v2303_v56 }
 0x6c2   :  { %5229 = vrcp.f32 %v2310_v11 }
 0x6ca   :  { %v5226_v50 = vpop.eup %5225 }
 0x6cb   :  { %v5228_v15 = vpop.eup %5227  ;;  %v2314_v49 = vmul.f32 %v5226_v50, %v5224_v41  ;;  %v7193_v41 = vld [vmem:[#allocation73_spill] sm:$0xff] }
 0x6cc   :  { %v2313_v0 = vmul.f32 %v5228_v15, %v6329_v45  ;;  %v5230_v45 = vpop.eup %5229 }
 0x6ce   :  { %v2391_v32 = vpop.f32.mrb[10].mxu0  ;;  %v2462_v1 = vpop.f32.mrb[10].mxu1  ;;  %v6443_v22 = vadd.f32 %v2314_v49, %v2313_v0 }
 0x6cf   :  { %v5014_v52 = vadd.f32 %v2391_v32, %v7192_v17  ;;  %v2393_v14 = vpop.f32.mrb[11].mxu0  ;;  %v2464_v10 = vpop.f32.mrb[11].mxu1  ;;  %v5030_v49 = vadd.f32 %v2462_v1, %v5860_v31 }
 0x6d0   :  { %v5015_v4 = vadd.f32 %v2393_v14, %v6952_v27  ;;  %5231 = vtanh.f32 %v6443_v22  ;;  %v5031_v24 = vadd.f32 %v2464_v10, %v7193_v41 }
 0x6d1   :  { %v3439_v56 = vmul.f32 -1.442695, %v5014_v52 }
 0x6d2   :  { %v3440_v42 = vmul.f32 -1.442695, %v5015_v4  ;;  %v3441_v15 = vmul.f32 -1.442695, %v5031_v24 }
 0x6d3   :  { %5233 = vpow2.f32 %v3439_v56 }
 0x6d4   :  { %5235 = vpow2.f32 %v3440_v42 }
 0x6d5   :  { %5237 = vpow2.f32 %v3441_v15 }
 0x6d6   :  { %5239 = vtanh.f32 %v5030_v49  ;;  %v7197_v49 = vld [vmem:[#allocation19_spill] sm:$0xff] }
 0x6da   :  { %v5232_v50 = vpop.eup %5231 }
 0x6db   :  { %v2317_v11 = vmul.f32 %v5232_v50, %v5230_v45 }
 0x6dd   :  { %v5234_v0 = vpop.eup %5233  ;;  %2559 = vmatprep.mubr.f32.mxu0 %v2317_v11  ;;  %2630 = vmatprep.mubr.f32.mxu1 %v2317_v11  ;;  %v7198_v11 = vld [vmem:[#allocation20_spill] sm:$0xff] }
 0x6de   :  { %v5236_v32 = vpop.eup %5235  ;;  %v2474_v17 = vadd.f32 1.0, %v5234_v0  ;;  %v7199_v0 = vld [vmem:[#allocation21_spill] sm:$0xff] }
 0x6df   :  { %v2480_v14 = vadd.f32 1.0, %v5236_v32  ;;  %v5238_v52 = vpop.eup %5237  ;;  %v7200_v32 = vld [vmem:[#allocation22_spill] sm:$0xff] }
 0x6e0   :  { %5241 = vrcp.f32 %v2474_v17  ;;  %v5240_v4 = vpop.eup %5239  ;;  %v2487_v41 = vadd.f32 1.0, %v5238_v52  ;;  %v7195_v17 = vld [vmem:[#allocation17_spill] sm:$0xff]  ;;  %v7202_v52 = vld [vmem:[#allocation24_spill] sm:$0xff] }
 0x6e1   :  { %5243 = vrcp.f32 %v2480_v14  ;;  %v7201_v14 = vld [vmem:[#allocation23_spill] sm:$0xff] }
 0x6e2   :  { %5245 = vrcp.f32 %v2487_v41  ;;  %v7196_v41 = vld [vmem:[#allocation18_spill] sm:$0xff] }
 0x6ea   :  { %v5242_v56 = vpop.eup %5241 }
 0x6eb   :  { %v5244_v10 = vpop.eup %5243  ;;  %v2491_v42 = vmul.f32 %v5242_v56, %v5240_v4  ;;  %v7203_v4 = vld [vmem:[#allocation25_spill] sm:$0xff]  ;;  %v7204_v56 = vld [vmem:[#allocation26_spill] sm:$0xff] }
 0x6ec   :  { %v2490_v24 = vmul.f32 %v5244_v10, %v6337_v21  ;;  %v5246_v45 = vpop.eup %5245  ;;  %v7194_v21 = vld [vmem:[#allocation16_spill] sm:$0xff]  ;;  %v7205_v10 = vld [vmem:[#allocation27_spill] sm:$0xff] }
 0x6ee   :  { %v6451_v1 = vadd.f32 %v2491_v42, %v2490_v24  ;;  %v7206_v42 = vld [vmem:[#allocation28_spill] sm:$0xff]  ;;  %v7207_v24 = vld [vmem:[#allocation29_spill] sm:$0xff] }
 0x6f0   :  { %5247 = vtanh.f32 %v6451_v1 }
 0x6fa   :  { %v5248_v50 = vpop.eup %5247 }
 0x6fb   :  { %v2494_v15 = vmul.f32 %v5248_v50, %v5246_v45  ;;  %v7208_v45 = vld [vmem:[#allocation30_spill] sm:$0xff]  ;;  %v7209_v50 = vld [vmem:[#allocation31_spill] sm:$0xff] }
 0x6fd   :  { %2560 = vmatmul.mubr.f32.vlgmr.msra.gmra.mrb[26].mxu0 %v2494_v15  ;;  %2631 = vmatmul.mubr.f32.vlgmr.msra.gmra.mrb[26].mxu1 %v2494_v15 }
 0x6fe   :  { %4623 = vmatpush1.bf16.msra.mxu0 %v5491_v23  ;;  %4655 = vmatpush1.bf16.msra.mxu1 %v5494_v26 }
 0x6ff   :  { %4625 = vmatprep.subr.bf16.mxu0 %v5498_v30  ;;  %4657 = vmatprep.subr.bf16.mxu1 %v5505_v35 }
 0x700   :  { %2732 = vmatprep.mubr.f32.mxu0 %v6891_v5  ;;  %2803 = vmatprep.mubr.f32.mxu1 %v6891_v5 }
 0x702   :  { %4627 = vmatpush1.bf16.msra.mxu0 %v5507_v36  ;;  %4659 = vmatpush1.bf16.msra.mxu1 %v5511_v39 }
 0x703   :  { %4629 = vmatprep.subr.bf16.mxu0 %v5515_v43  ;;  %4661 = vmatprep.subr.bf16.mxu1 %v5522_v48 }
 0x706   :  { %4631 = vmatpush1.bf16.msra.mxu0 %v5526_v51  ;;  %4663 = vmatpush1.bf16.msra.mxu1 %v5530_v55 }
 0x707   :  { %4633 = vmatprep.subr.bf16.mxu0 %v5534_v59  ;;  %4665 = vmatprep.subr.bf16.mxu1 %v5538_v62 }
 0x70a   :  { %4635 = vmatpush1.bf16.msra.mxu0 %v5545_v3  ;;  %4667 = vmatpush1.bf16.msra.mxu1 %v5549_v6 }
 0x70b   :  { %4637 = vmatprep.subr.bf16.mxu0 %v5553_v9  ;;  %4669 = vmatprep.subr.bf16.mxu1 %v5557_v12 }
 0x70e   :  { %4639 = vmatpush1.bf16.msra.mxu0 %v5564_v16  ;;  %4671 = vmatpush1.bf16.msra.mxu1 %v5568_v20 }
 0x70f   :  { %4641 = vmatprep.subr.bf16.mxu0 %v5572_v25  ;;  %4673 = vmatprep.subr.bf16.mxu1 %v5576_v29 }
 0x712   :  { %4643 = vmatpush1.bf16.msra.mxu0 %v5583_v34  ;;  %4675 = vmatpush1.bf16.msra.mxu1 %v5587_v40 }
 0x713   :  { %4645 = vmatprep.subr.bf16.mxu0 %v5591_v44  ;;  %4677 = vmatprep.subr.bf16.mxu1 %v5595_v47 }
 0x716   :  { %4647 = vmatpush1.bf16.msra.mxu0 %v5602_v53  ;;  %4679 = vmatpush1.bf16.msra.mxu1 %v5606_v57 }
 0x717   :  { %4649 = vmatprep.subr.bf16.mxu0 %v5610_v61  ;;  %4681 = vmatprep.subr.bf16.mxu1 %v5614_v2 }
 0x71a   :  { %4651 = vmatpush1.bf16.msra.mxu0 %v5621_v8  ;;  %4683 = vmatpush1.bf16.msra.mxu1 %v5625_v13 }
 0x71b   :  { %4685 = vmatprep.subr.bf16.mxu0 %v5629_v19  ;;  %4749 = vmatprep.subr.bf16.mxu1 %v5633_v28 }
 0x71d   :  { %2733 = vmatmul.mubr.f32.vlgmr.msra.gmra.mrb[12].mxu0 %v2494_v15  ;;  %2804 = vmatmul.mubr.f32.vlgmr.msra.gmra.mrb[12].mxu1 %v2494_v15  ;;  %v7210_v15 = vld [vmem:[#allocation32_spill] sm:$0xff] }
 0x71e   :  { %4687 = vmatpush1.bf16.msra.mxu0 %v5637_v33  ;;  %4751 = vmatpush1.bf16.msra.mxu1 %v5641_v37 }
 0x71f   :  { %4689 = vmatprep.subr.bf16.mxu0 %v5643_v38  ;;  %4753 = vmatprep.subr.bf16.mxu1 %v5647_v46 }
 0x722   :  { %4691 = vmatpush1.bf16.msra.mxu0 %v5653_v58  ;;  %4755 = vmatpush1.bf16.msra.mxu1 %v5657_v60 }
 0x723   :  { %4693 = vmatprep.subr.bf16.mxu0 %v5659_v63  ;;  %4757 = vmatprep.subr.bf16.mxu1 %v5662_v7 }
 0x726   :  { %4695 = vmatpush1.bf16.msra.mxu0 %v7194_v21  ;;  %4759 = vmatpush1.bf16.msra.mxu1 %v7195_v17 }
 0x727   :  { %4697 = vmatprep.subr.bf16.mxu0 %v7196_v41  ;;  %4761 = vmatprep.subr.bf16.mxu1 %v7197_v49 }
 0x72a   :  { %4699 = vmatpush1.bf16.msra.mxu0 %v7198_v11  ;;  %4763 = vmatpush1.bf16.msra.mxu1 %v7199_v0  ;;  %v7250_v0 = vld [vmem:[#allocation70_spill] sm:$0xff] }
 0x72b   :  { %4701 = vmatprep.subr.bf16.mxu0 %v7200_v32  ;;  %4765 = vmatprep.subr.bf16.mxu1 %v7201_v14  ;;  %v7211_v32 = vld [vmem:[#allocation33_spill] sm:$0xff]  ;;  %v7212_v14 = vld [vmem:[#allocation34_spill] sm:$0xff] }
 0x72e   :  { %4703 = vmatpush1.bf16.msra.mxu0 %v7202_v52  ;;  %4767 = vmatpush1.bf16.msra.mxu1 %v7203_v4  ;;  %v7213_v52 = vld [vmem:[#allocation35_spill] sm:$0xff]  ;;  %v7214_v4 = vld [vmem:[#allocation36_spill] sm:$0xff] }
 0x72f   :  { %4705 = vmatprep.subr.bf16.mxu0 %v7204_v56  ;;  %4769 = vmatprep.subr.bf16.mxu1 %v7205_v10  ;;  %v7215_v56 = vld [vmem:[#allocation37_spill] sm:$0xff]  ;;  %v7216_v10 = vld [vmem:[#allocation38_spill] sm:$0xff] }
 0x732   :  { %4707 = vmatpush1.bf16.msra.mxu0 %v7206_v42  ;;  %4771 = vmatpush1.bf16.msra.mxu1 %v7207_v24  ;;  %v7217_v42 = vld [vmem:[#allocation39_spill] sm:$0xff]  ;;  %v7218_v24 = vld [vmem:[#allocation40_spill] sm:$0xff] }
 0x733   :  { %4709 = vmatprep.subr.bf16.mxu0 %v7208_v45  ;;  %4773 = vmatprep.subr.bf16.mxu1 %v7209_v50  ;;  %v7219_v45 = vld [vmem:[#allocation41_spill] sm:$0xff]  ;;  %v7220_v50 = vld [vmem:[#allocation42_spill] sm:$0xff] }
 0x736   :  { %4711 = vmatpush1.bf16.msra.mxu0 %v7210_v15  ;;  %4775 = vmatpush1.bf16.msra.mxu1 %v7211_v32  ;;  %v7221_v15 = vld [vmem:[#allocation43_spill] sm:$0xff]  ;;  %v7222_v32 = vld [vmem:[#allocation44_spill] sm:$0xff] }
 0x737   :  { %4713 = vmatprep.subr.bf16.mxu0 %v7212_v14  ;;  %4777 = vmatprep.subr.bf16.mxu1 %v7213_v52  ;;  %v7223_v14 = vld [vmem:[#allocation45_spill] sm:$0xff]  ;;  %v7224_v52 = vld [vmem:[#allocation46_spill] sm:$0xff] }
 0x73a   :  { %4715 = vmatpush1.bf16.msra.mxu0 %v7214_v4  ;;  %4779 = vmatpush1.bf16.msra.mxu1 %v7215_v56  ;;  %v7225_v4 = vld [vmem:[#allocation47_spill] sm:$0xff]  ;;  %v7226_v56 = vld [vmem:[#allocation48_spill] sm:$0xff] }
 0x73b   :  { %4717 = vmatprep.subr.bf16.mxu0 %v7216_v10  ;;  %4781 = vmatprep.subr.bf16.mxu1 %v7217_v42  ;;  %v7227_v10 = vld [vmem:[#allocation49_spill] sm:$0xff]  ;;  %v7228_v42 = vld [vmem:[#allocation50_spill] sm:$0xff] }
 0x73e   :  { %4719 = vmatpush1.bf16.msra.mxu0 %v7218_v24  ;;  %4783 = vmatpush1.bf16.msra.mxu1 %v7219_v45  ;;  %v7229_v24 = vld [vmem:[#allocation51_spill] sm:$0xff]  ;;  %v7230_v45 = vld [vmem:[#allocation52_spill] sm:$0xff] }
 0x73f   :  { %4721 = vmatprep.subr.bf16.mxu0 %v7220_v50  ;;  %4785 = vmatprep.subr.bf16.mxu1 %v7221_v15  ;;  %v7231_v50 = vld [vmem:[#allocation53_spill] sm:$0xff]  ;;  %v7232_v15 = vld [vmem:[#allocation54_spill] sm:$0xff] }
 0x742   :  { %4723 = vmatpush1.bf16.msra.mxu0 %v7222_v32  ;;  %4787 = vmatpush1.bf16.msra.mxu1 %v7223_v14  ;;  %v7233_v32 = vld [vmem:[#allocation55_spill] sm:$0xff]  ;;  %v7234_v14 = vld [vmem:[#allocation56_spill] sm:$0xff] }
 0x743   :  { %4725 = vmatprep.subr.bf16.mxu0 %v7224_v52  ;;  %4789 = vmatprep.subr.bf16.mxu1 %v7225_v4  ;;  %v7235_v52 = vld [vmem:[#allocation57_spill] sm:$0xff]  ;;  %v7236_v4 = vld [vmem:[#allocation58_spill] sm:$0xff] }
 0x746   :  { %4727 = vmatpush1.bf16.msra.mxu0 %v7226_v56  ;;  %4791 = vmatpush1.bf16.msra.mxu1 %v7227_v10  ;;  %v7237_v56 = vld [vmem:[#allocation59_spill] sm:$0xff]  ;;  %v7238_v10 = vld [vmem:[#allocation60_spill] sm:$0xff] }
 0x747   :  { %4729 = vmatprep.subr.bf16.mxu0 %v7228_v42  ;;  %4793 = vmatprep.subr.bf16.mxu1 %v7229_v24  ;;  %v7239_v42 = vld [vmem:[#allocation61_spill] sm:$0xff]  ;;  %v7240_v24 = vld [vmem:[#allocation62_spill] sm:$0xff] }
 0x74a   :  { %4731 = vmatpush1.bf16.msra.mxu0 %v7230_v45  ;;  %4795 = vmatpush1.bf16.msra.mxu1 %v7231_v50  ;;  %v7241_v45 = vld [vmem:[#allocation63_spill] sm:$0xff]  ;;  %v7242_v50 = vld [vmem:[#allocation64_spill] sm:$0xff] }
 0x74b   :  { %4733 = vmatprep.subr.bf16.mxu0 %v7232_v15  ;;  %4797 = vmatprep.subr.bf16.mxu1 %v7233_v32  ;;  %v7243_v15 = vld [vmem:[#allocation65_spill] sm:$0xff]  ;;  %v7244_v32 = vld [vmem:[#allocation66_spill] sm:$0xff] }
 0x74e   :  { %4735 = vmatpush1.bf16.msra.mxu0 %v7234_v14  ;;  %4799 = vmatpush1.bf16.msra.mxu1 %v7235_v52  ;;  %v7245_v14 = vld [vmem:[#allocation67_spill] sm:$0xff]  ;;  %v7246_v52 = vld [vmem:[#allocation68_spill] sm:$0xff] }
 0x74f   :  { %4737 = vmatprep.subr.bf16.mxu0 %v7236_v4  ;;  %4801 = vmatprep.subr.bf16.mxu1 %v7237_v56  ;;  %v7247_v4 = vld [vmem:[#allocation69_spill] sm:$0xff]  ;;  %v7248_v56 = vld [vmem:[#allocation14_spill] sm:$0xff] }
 0x752   :  { %4739 = vmatpush1.bf16.msra.mxu0 %v7238_v10  ;;  %4803 = vmatpush1.bf16.msra.mxu1 %v7239_v42  ;;  %v7249_v10 = vld [vmem:[#allocation15_spill] sm:$0xff] }
 0x753   :  { %4741 = vmatprep.subr.bf16.mxu0 %v7240_v24  ;;  %4805 = vmatprep.subr.bf16.mxu1 %v7241_v45 }
 0x756   :  { %4743 = vmatpush1.bf16.msra.mxu0 %v7242_v50  ;;  %4807 = vmatpush1.bf16.msra.mxu1 %v7243_v15 }
 0x757   :  { %4745 = vmatprep.subr.bf16.mxu0 %v7244_v32  ;;  %4809 = vmatprep.subr.bf16.mxu1 %v7245_v14  ;;  %v7251_v14 = vld [vmem:[#allocation75_spill] sm:$0xff] }
 0x75a   :  { %4747 = vmatpush1.bf16.msra.mxu0 %v7246_v52  ;;  %4811 = vmatpush1.bf16.msra.mxu1 %v7247_v4 }
 0x75b   :  { %4813 = vmatprep.subr.bf16.mxu0 %v7248_v56  ;;  %4845 = vmatprep.subr.bf16.mxu1 %v7249_v10 }
 0x7d0   :  { %v2561_v42 = vpop.f32.mrb[26].mxu0  ;;  %v2632_v24 = vpop.f32.mrb[26].mxu1 }
 0x7d1   :  { %v2562_v45 = vadd.f32 %v2561_v42, %v7250_v0  ;;  %v2563_v11 = vpop.f32.mrb[27].mxu0  ;;  %v2634_v50 = vpop.f32.mrb[27].mxu1  ;;  %v2633_v4 = vadd.f32 %v2632_v24, %v7011_v54  ;;  %v7252_v24 = vld [vmem:[#allocation71_spill] sm:$0xff] }
 0x7d2   :  { %v2564_v15 = vadd.f32 %v2563_v11, %v7009_v18  ;;  %v2635_v52 = vadd.f32 %v2634_v50, %v7251_v14 }
 0x7d3   :  { %v3442_v49 = vmul.f32 -1.442695, %v2562_v45 }
 0x7d4   :  { %v3443_v32 = vmul.f32 -1.442695, %v2564_v15  ;;  %v3444_v41 = vmul.f32 -1.442695, %v2635_v52 }
 0x7d5   :  { %5249 = vpow2.f32 %v3442_v49 }
 0x7d6   :  { %5251 = vpow2.f32 %v3443_v32 }
 0x7d7   :  { %5253 = vpow2.f32 %v3444_v41 }
 0x7d8   :  { %5255 = vtanh.f32 %v2633_v4 }
 0x7df   :  { %v5250_v56 = vpop.eup %5249 }
 0x7e0   :  { %v5252_v17 = vpop.eup %5251  ;;  %v2640_v10 = vadd.f32 1.0, %v5250_v56 }
 0x7e1   :  { %v2646_v21 = vadd.f32 1.0, %v5252_v17  ;;  %v5254_v42 = vpop.eup %5253 }
 0x7e2   :  { %5257 = vrcp.f32 %v2640_v10  ;;  %v5256_v0 = vpop.eup %5255  ;;  %v2653_v49 = vadd.f32 1.0, %v5254_v42 }
 0x7e3   :  { %5259 = vrcp.f32 %v2646_v21 }
 0x7e4   :  { %5261 = vrcp.f32 %v2653_v49 }
 0x7ec   :  { %v5258_v11 = vpop.eup %5257 }
 0x7ed   :  { %v5260_v45 = vpop.eup %5259  ;;  %v2657_v15 = vmul.f32 %v5258_v11, %v5256_v0  ;;  %v7253_v0 = vld [vmem:[#allocation73_spill] sm:$0xff] }
 0x7ee   :  { %v2656_v32 = vmul.f32 %v5260_v45, %v6443_v22  ;;  %v5262_v22 = vpop.eup %5261 }
 0x7f0   :  { %v2734_v50 = vpop.f32.mrb[12].mxu0  ;;  %v2805_v52 = vpop.f32.mrb[12].mxu1  ;;  %v6557_v14 = vadd.f32 %v2657_v15, %v2656_v32 }
 0x7f1   :  { %v5016_v56 = vadd.f32 %v2734_v50, %v7252_v24  ;;  %v2736_v41 = vpop.f32.mrb[13].mxu0  ;;  %v2807_v4 = vpop.f32.mrb[13].mxu1  ;;  %v5032_v15 = vadd.f32 %v2805_v52, %v5860_v31 }
 0x7f2   :  { %v5017_v17 = vadd.f32 %v2736_v41, %v6952_v27  ;;  %5263 = vtanh.f32 %v6557_v14  ;;  %v5033_v42 = vadd.f32 %v2807_v4, %v7253_v0 }
 0x7f3   :  { %v3445_v21 = vmul.f32 -1.442695, %v5016_v56 }
 0x7f4   :  { %v3446_v10 = vmul.f32 -1.442695, %v5017_v17  ;;  %v3447_v45 = vmul.f32 -1.442695, %v5033_v42 }
 0x7f5   :  { %5265 = vpow2.f32 %v3445_v21 }
 0x7f6   :  { %5267 = vpow2.f32 %v3446_v10 }
 0x7f7   :  { %5269 = vpow2.f32 %v3447_v45 }
 0x7f8   :  { %5271 = vtanh.f32 %v5032_v15  ;;  %v7298_v15 = vld [vmem:[#allocation60_spill] sm:$0xff] }
 0x7fc   :  { %v5264_v11 = vpop.eup %5263 }
 0x7fd   :  { %v2660_v49 = vmul.f32 %v5264_v11, %v5262_v22 }
 0x7ff   :  { %v5266_v32 = vpop.eup %5265  ;;  %2902 = vmatprep.mubr.f32.mxu0 %v2660_v49  ;;  %2973 = vmatprep.mubr.f32.mxu1 %v2660_v49  ;;  %v7299_v49 = vld [vmem:[#allocation61_spill] sm:$0xff] }
 0x800   :  { %v5268_v50 = vpop.eup %5267  ;;  %v2817_v24 = vadd.f32 1.0, %v5266_v32  ;;  %v7300_v32 = vld [vmem:[#allocation62_spill] sm:$0xff] }
 0x801   :  { %v2823_v41 = vadd.f32 1.0, %v5268_v50  ;;  %v5270_v56 = vpop.eup %5269  ;;  %v7301_v50 = vld [vmem:[#allocation63_spill] sm:$0xff] }
 0x802   :  { %5273 = vrcp.f32 %v2817_v24  ;;  %v5272_v17 = vpop.eup %5271  ;;  %v2830_v0 = vadd.f32 1.0, %v5270_v56  ;;  %v7296_v24 = vld [vmem:[#allocation58_spill] sm:$0xff]  ;;  %v7303_v56 = vld [vmem:[#allocation65_spill] sm:$0xff] }
 0x803   :  { %5275 = vrcp.f32 %v2823_v41  ;;  %v7302_v41 = vld [vmem:[#allocation64_spill] sm:$0xff] }
 0x804   :  { %5277 = vrcp.f32 %v2830_v0  ;;  %v7297_v0 = vld [vmem:[#allocation59_spill] sm:$0xff] }
 0x80c   :  { %v5274_v21 = vpop.eup %5273 }
 0x80d   :  { %v5276_v4 = vpop.eup %5275  ;;  %v2834_v10 = vmul.f32 %v5274_v21, %v5272_v17  ;;  %v7304_v17 = vld [vmem:[#allocation66_spill] sm:$0xff]  ;;  %v7305_v21 = vld [vmem:[#allocation67_spill] sm:$0xff] }
 0x80e   :  { %v2833_v42 = vmul.f32 %v5276_v4, %v6451_v1  ;;  %v5278_v22 = vpop.eup %5277  ;;  %v7295_v1 = vld [vmem:[#allocation57_spill] sm:$0xff]  ;;  %v7306_v4 = vld [vmem:[#allocation68_spill] sm:$0xff] }
 0x810   :  { %v6565_v52 = vadd.f32 %v2834_v10, %v2833_v42  ;;  %v7307_v10 = vld [vmem:[#allocation69_spill] sm:$0xff] }
 0x812   :  { %5279 = vtanh.f32 %v6565_v52 }
 0x81c   :  { %v5280_v11 = vpop.eup %5279 }
 0x81d   :  { %v2837_v45 = vmul.f32 %v5280_v11, %v5278_v22  ;;  %v7308_v11 = vld [vmem:[#allocation70_spill] sm:$0xff] }
 0x81f   :  { %2903 = vmatmul.mubr.f32.vlgmr.msra.gmra.mrb[28].mxu0 %v2837_v45  ;;  %2974 = vmatmul.mubr.f32.vlgmr.msra.gmra.mrb[28].mxu1 %v2837_v45 }
 0x820   :  { %4815 = vmatpush1.bf16.msra.mxu0 %v5491_v23  ;;  %4847 = vmatpush1.bf16.msra.mxu1 %v5494_v26  ;;  %v7254_v23 = vld [vmem:[#allocation16_spill] sm:$0xff]  ;;  %v7255_v26 = vld [vmem:[#allocation17_spill] sm:$0xff] }
 0x821   :  { %4817 = vmatprep.subr.bf16.mxu0 %v5498_v30  ;;  %4849 = vmatprep.subr.bf16.mxu1 %v5505_v35  ;;  %v7256_v30 = vld [vmem:[#allocation18_spill] sm:$0xff]  ;;  %v7257_v35 = vld [vmem:[#allocation19_spill] sm:$0xff] }
 0x822   :  { %3075 = vmatprep.mubr.f32.mxu0 %v6891_v5  ;;  %3146 = vmatprep.mubr.f32.mxu1 %v6891_v5  ;;  %v7294_v5 = vld [vmem:[#allocation56_spill] sm:$0xff] }
 0x824   :  { %4819 = vmatpush1.bf16.msra.mxu0 %v5507_v36  ;;  %4851 = vmatpush1.bf16.msra.mxu1 %v5511_v39  ;;  %v7258_v36 = vld [vmem:[#allocation20_spill] sm:$0xff]  ;;  %v7259_v39 = vld [vmem:[#allocation21_spill] sm:$0xff] }
 0x825   :  { %4821 = vmatprep.subr.bf16.mxu0 %v5515_v43  ;;  %4853 = vmatprep.subr.bf16.mxu1 %v5522_v48  ;;  %v7260_v43 = vld [vmem:[#allocation22_spill] sm:$0xff]  ;;  %v7261_v48 = vld [vmem:[#allocation23_spill] sm:$0xff] }
 0x828   :  { %4823 = vmatpush1.bf16.msra.mxu0 %v5526_v51  ;;  %4855 = vmatpush1.bf16.msra.mxu1 %v5530_v55  ;;  %v7262_v51 = vld [vmem:[#allocation24_spill] sm:$0xff]  ;;  %v7263_v55 = vld [vmem:[#allocation25_spill] sm:$0xff] }
 0x829   :  { %4825 = vmatprep.subr.bf16.mxu0 %v5534_v59  ;;  %4857 = vmatprep.subr.bf16.mxu1 %v5538_v62  ;;  %v7264_v59 = vld [vmem:[#allocation26_spill] sm:$0xff]  ;;  %v7265_v62 = vld [vmem:[#allocation27_spill] sm:$0xff] }
 0x82c   :  { %4827 = vmatpush1.bf16.msra.mxu0 %v5545_v3  ;;  %4859 = vmatpush1.bf16.msra.mxu1 %v5549_v6  ;;  %v7266_v3 = vld [vmem:[#allocation28_spill] sm:$0xff]  ;;  %v7267_v6 = vld [vmem:[#allocation29_spill] sm:$0xff] }
 0x82d   :  { %4829 = vmatprep.subr.bf16.mxu0 %v5553_v9  ;;  %4861 = vmatprep.subr.bf16.mxu1 %v5557_v12  ;;  %v7268_v9 = vld [vmem:[#allocation30_spill] sm:$0xff]  ;;  %v7269_v12 = vld [vmem:[#allocation31_spill] sm:$0xff] }
 0x830   :  { %4831 = vmatpush1.bf16.msra.mxu0 %v5564_v16  ;;  %4863 = vmatpush1.bf16.msra.mxu1 %v5568_v20  ;;  %v7270_v16 = vld [vmem:[#allocation32_spill] sm:$0xff]  ;;  %v7271_v20 = vld [vmem:[#allocation33_spill] sm:$0xff] }
 0x831   :  { %4833 = vmatprep.subr.bf16.mxu0 %v5572_v25  ;;  %4865 = vmatprep.subr.bf16.mxu1 %v5576_v29  ;;  %v7272_v25 = vld [vmem:[#allocation34_spill] sm:$0xff]  ;;  %v7273_v29 = vld [vmem:[#allocation35_spill] sm:$0xff] }
 0x834   :  { %4835 = vmatpush1.bf16.msra.mxu0 %v5583_v34  ;;  %4867 = vmatpush1.bf16.msra.mxu1 %v5587_v40  ;;  %v7274_v34 = vld [vmem:[#allocation36_spill] sm:$0xff]  ;;  %v7275_v40 = vld [vmem:[#allocation37_spill] sm:$0xff] }
 0x835   :  { %4837 = vmatprep.subr.bf16.mxu0 %v5591_v44  ;;  %4869 = vmatprep.subr.bf16.mxu1 %v5595_v47  ;;  %v7276_v44 = vld [vmem:[#allocation38_spill] sm:$0xff]  ;;  %v7277_v47 = vld [vmem:[#allocation39_spill] sm:$0xff] }
 0x838   :  { %4839 = vmatpush1.bf16.msra.mxu0 %v5602_v53  ;;  %4871 = vmatpush1.bf16.msra.mxu1 %v5606_v57  ;;  %v7278_v53 = vld [vmem:[#allocation40_spill] sm:$0xff]  ;;  %v7279_v57 = vld [vmem:[#allocation41_spill] sm:$0xff] }
 0x839   :  { %4841 = vmatprep.subr.bf16.mxu0 %v5610_v61  ;;  %4873 = vmatprep.subr.bf16.mxu1 %v5614_v2  ;;  %v7280_v61 = vld [vmem:[#allocation42_spill] sm:$0xff]  ;;  %v7281_v2 = vld [vmem:[#allocation43_spill] sm:$0xff] }
 0x83c   :  { %4843 = vmatpush1.bf16.msra.mxu0 %v5621_v8  ;;  %4875 = vmatpush1.bf16.msra.mxu1 %v5625_v13  ;;  %v7282_v8 = vld [vmem:[#allocation44_spill] sm:$0xff]  ;;  %v7283_v13 = vld [vmem:[#allocation45_spill] sm:$0xff] }
 0x83d   :  { %4877 = vmatprep.subr.bf16.mxu0 %v5629_v19  ;;  %4941 = vmatprep.subr.bf16.mxu1 %v5633_v28  ;;  %v7284_v19 = vld [vmem:[#allocation46_spill] sm:$0xff]  ;;  %v7285_v28 = vld [vmem:[#allocation47_spill] sm:$0xff] }
 0x83f   :  { %3076 = vmatmul.mubr.f32.vlgmr.msra.gmra.mrb[14].mxu0 %v2837_v45  ;;  %3147 = vmatmul.mubr.f32.vlgmr.msra.gmra.mrb[14].mxu1 %v2837_v45 }
 0x840   :  { %4879 = vmatpush1.bf16.msra.mxu0 %v5637_v33  ;;  %4943 = vmatpush1.bf16.msra.mxu1 %v5641_v37  ;;  %v7286_v33 = vld [vmem:[#allocation48_spill] sm:$0xff]  ;;  %v7287_v37 = vld [vmem:[#allocation49_spill] sm:$0xff] }
 0x841   :  { %4881 = vmatprep.subr.bf16.mxu0 %v5643_v38  ;;  %4945 = vmatprep.subr.bf16.mxu1 %v5647_v46  ;;  %v7288_v38 = vld [vmem:[#allocation50_spill] sm:$0xff]  ;;  %v7289_v46 = vld [vmem:[#allocation51_spill] sm:$0xff] }
 0x844   :  { %4883 = vmatpush1.bf16.msra.mxu0 %v5653_v58  ;;  %4947 = vmatpush1.bf16.msra.mxu1 %v5657_v60  ;;  %v7290_v58 = vld [vmem:[#allocation52_spill] sm:$0xff]  ;;  %v7291_v60 = vld [vmem:[#allocation53_spill] sm:$0xff] }
 0x845   :  { %4885 = vmatprep.subr.bf16.mxu0 %v5659_v63  ;;  %4949 = vmatprep.subr.bf16.mxu1 %v5662_v7  ;;  %v7292_v63 = vld [vmem:[#allocation54_spill] sm:$0xff]  ;;  %v7293_v7 = vld [vmem:[#allocation55_spill] sm:$0xff] }
 0x848   :  { %4887 = vmatpush1.bf16.msra.mxu0 %v7254_v23  ;;  %4951 = vmatpush1.bf16.msra.mxu1 %v7255_v26 }
 0x849   :  { %4889 = vmatprep.subr.bf16.mxu0 %v7256_v30  ;;  %4953 = vmatprep.subr.bf16.mxu1 %v7257_v35 }
 0x84c   :  { %4891 = vmatpush1.bf16.msra.mxu0 %v7258_v36  ;;  %4955 = vmatpush1.bf16.msra.mxu1 %v7259_v39  ;;  %v7309_v39 = vld [vmem:[#allocation75_spill] sm:$0xff] }
 0x84d   :  { %4893 = vmatprep.subr.bf16.mxu0 %v7260_v43  ;;  %4957 = vmatprep.subr.bf16.mxu1 %v7261_v48 }
 0x850   :  { %4895 = vmatpush1.bf16.msra.mxu0 %v7262_v51  ;;  %4959 = vmatpush1.bf16.msra.mxu1 %v7263_v55 }
 0x851   :  { %4897 = vmatprep.subr.bf16.mxu0 %v7264_v59  ;;  %4961 = vmatprep.subr.bf16.mxu1 %v7265_v62 }
 0x854   :  { %4899 = vmatpush1.bf16.msra.mxu0 %v7266_v3  ;;  %4963 = vmatpush1.bf16.msra.mxu1 %v7267_v6 }
 0x855   :  { %4901 = vmatprep.subr.bf16.mxu0 %v7268_v9  ;;  %4965 = vmatprep.subr.bf16.mxu1 %v7269_v12 }
 0x858   :  { %4903 = vmatpush1.bf16.msra.mxu0 %v7270_v16  ;;  %4967 = vmatpush1.bf16.msra.mxu1 %v7271_v20 }
 0x859   :  { %4905 = vmatprep.subr.bf16.mxu0 %v7272_v25  ;;  %4969 = vmatprep.subr.bf16.mxu1 %v7273_v29 }
 0x85c   :  { %4907 = vmatpush1.bf16.msra.mxu0 %v7274_v34  ;;  %4971 = vmatpush1.bf16.msra.mxu1 %v7275_v40 }
 0x85d   :  { %4909 = vmatprep.subr.bf16.mxu0 %v7276_v44  ;;  %4973 = vmatprep.subr.bf16.mxu1 %v7277_v47  ;;  %v7310_v47 = vld [vmem:[#allocation71_spill] sm:$0xff] }
 0x860   :  { %4911 = vmatpush1.bf16.msra.mxu0 %v7278_v53  ;;  %4975 = vmatpush1.bf16.msra.mxu1 %v7279_v57 }
 0x861   :  { %4913 = vmatprep.subr.bf16.mxu0 %v7280_v61  ;;  %4977 = vmatprep.subr.bf16.mxu1 %v7281_v2 }
 0x864   :  { %4915 = vmatpush1.bf16.msra.mxu0 %v7282_v8  ;;  %4979 = vmatpush1.bf16.msra.mxu1 %v7283_v13 }
 0x865   :  { %4917 = vmatprep.subr.bf16.mxu0 %v7284_v19  ;;  %4981 = vmatprep.subr.bf16.mxu1 %v7285_v28  ;;  %v7311_v19 = vld [vmem:[#allocation73_spill] sm:$0xff] }
 0x868   :  { %4919 = vmatpush1.bf16.msra.mxu0 %v7286_v33  ;;  %4983 = vmatpush1.bf16.msra.mxu1 %v7287_v37 }
 0x869   :  { %4921 = vmatprep.subr.bf16.mxu0 %v7288_v38  ;;  %4985 = vmatprep.subr.bf16.mxu1 %v7289_v46 }
 0x86c   :  { %4923 = vmatpush1.bf16.msra.mxu0 %v7290_v58  ;;  %4987 = vmatpush1.bf16.msra.mxu1 %v7291_v60 }
 0x86d   :  { %4925 = vmatprep.subr.bf16.mxu0 %v7292_v63  ;;  %4989 = vmatprep.subr.bf16.mxu1 %v7293_v7 }
 0x870   :  { %4927 = vmatpush1.bf16.msra.mxu0 %v7294_v5  ;;  %4991 = vmatpush1.bf16.msra.mxu1 %v7295_v1 }
 0x871   :  { %4929 = vmatprep.subr.bf16.mxu0 %v7296_v24  ;;  %4993 = vmatprep.subr.bf16.mxu1 %v7297_v0 }
 0x874   :  { %4931 = vmatpush1.bf16.msra.mxu0 %v7298_v15  ;;  %4995 = vmatpush1.bf16.msra.mxu1 %v7299_v49 }
 0x875   :  { %4933 = vmatprep.subr.bf16.mxu0 %v7300_v32  ;;  %4997 = vmatprep.subr.bf16.mxu1 %v7301_v50 }
 0x878   :  { %4935 = vmatpush1.bf16.msra.mxu0 %v7302_v41  ;;  %4999 = vmatpush1.bf16.msra.mxu1 %v7303_v56 }
 0x879   :  { %4937 = vmatprep.subr.bf16.mxu0 %v7304_v17  ;;  %5001 = vmatprep.subr.bf16.mxu1 %v7305_v21 }
 0x87c   :  { %4939 = vmatpush1.bf16.msra.mxu0 %v7306_v4  ;;  %5003 = vmatpush1.bf16.msra.mxu1 %v7307_v10 }
 0x8f2   :  { %v2904_v42 = vpop.f32.mrb[28].mxu0  ;;  %v2975_v22 = vpop.f32.mrb[28].mxu1 }
 0x8f3   :  { %v2905_v45 = vadd.f32 %v2904_v42, %v7308_v11  ;;  %v2906_v23 = vpop.f32.mrb[29].mxu0  ;;  %v2977_v26 = vpop.f32.mrb[29].mxu1  ;;  %v2976_v51 = vadd.f32 %v2975_v22, %v7011_v54 }
 0x8f4   :  { %v2907_v30 = vadd.f32 %v2906_v23, %v7009_v18  ;;  %v2978_v43 = vadd.f32 %v2977_v26, %v7309_v39 }
 0x8f5   :  { %v3448_v35 = vmul.f32 -1.442695, %v2905_v45 }
 0x8f6   :  { %v3449_v36 = vmul.f32 -1.442695, %v2907_v30  ;;  %v3450_v48 = vmul.f32 -1.442695, %v2978_v43 }
 0x8f7   :  { %5281 = vpow2.f32 %v3448_v35 }
 0x8f8   :  { %5283 = vpow2.f32 %v3449_v36 }
 0x8f9   :  { %5285 = vpow2.f32 %v3450_v48 }
 0x8fa   :  { %5287 = vtanh.f32 %v2976_v51 }
 0x901   :  { %v5282_v55 = vpop.eup %5281 }
 0x902   :  { %v5284_v59 = vpop.eup %5283  ;;  %v2983_v62 = vadd.f32 1.0, %v5282_v55 }
 0x903   :  { %v2989_v3 = vadd.f32 1.0, %v5284_v59  ;;  %v5286_v6 = vpop.eup %5285 }
 0x904   :  { %5289 = vrcp.f32 %v2983_v62  ;;  %v5288_v9 = vpop.eup %5287  ;;  %v2996_v25 = vadd.f32 1.0, %v5286_v6  ;;  %v3457_v6 = vld [vmem:[%s6694_s6] ss:$0 sm:$0xff] }
 0x905   :  { %5291 = vrcp.f32 %v2989_v3 }
 0x906   :  { %5293 = vrcp.f32 %v2996_v25 }
 0x90e   :  { %v5290_v12 = vpop.eup %5289 }
 0x90f   :  { %v5292_v16 = vpop.eup %5291  ;;  %v3000_v20 = vmul.f32 %v5290_v12, %v5288_v9 }
 0x910   :  { %v2999_v29 = vmul.f32 %v5292_v16, %v6557_v14  ;;  %v5294_v14 = vpop.eup %5293  ;;  %v3458_v16 = vld [vmem:[#allocation7] ss:$0 sm:$0xff] }
 0x912   :  { %v3077_v34 = vpop.f32.mrb[14].mxu0  ;;  %v3148_v40 = vpop.f32.mrb[14].mxu1  ;;  %v6669_v44 = vadd.f32 %v3000_v20, %v2999_v29 }
 0x913   :  { %v5018_v53 = vadd.f32 %v3077_v34, %v7310_v47  ;;  %v3079_v57 = vpop.f32.mrb[15].mxu0  ;;  %v3150_v61 = vpop.f32.mrb[15].mxu1  ;;  %v5034_v38 = vadd.f32 %v3148_v40, %v5860_v31 }
 0x914   :  { %v5019_v2 = vadd.f32 %v3079_v57, %v6952_v27  ;;  %5295 = vtanh.f32 %v6669_v44  ;;  %v5035_v28 = vadd.f32 %v3150_v61, %v7311_v19 }
 0x915   :  { %v3451_v8 = vmul.f32 -1.442695, %v5018_v53 }
 0x916   :  { %v3452_v13 = vmul.f32 -1.442695, %v5019_v2  ;;  %v3453_v37 = vmul.f32 -1.442695, %v5035_v28 }
 0x917   :  { %5297 = vpow2.f32 %v3451_v8 }
 0x918   :  { %5299 = vpow2.f32 %v3452_v13 }
 0x919   :  { %5301 = vpow2.f32 %v3453_v37 }
 0x91a   :  { %5303 = vtanh.f32 %v5034_v38 }
 0x91e   :  { %v5296_v33 = vpop.eup %5295 }
 0x91f   :  { %v3003_v46 = vmul.f32 %v5296_v33, %v5294_v14 }
 0x921   :  { %v5298_v58 = vpop.eup %5297  ;;  %3245 = vmatprep.mubr.f32.mxu0 %v3003_v46  ;;  %3316 = vmatprep.mubr.f32.mxu1 %v3003_v46 }
 0x922   :  { %v5300_v60 = vpop.eup %5299  ;;  %v3160_v63 = vadd.f32 1.0, %v5298_v58 }
 0x923   :  { %v3166_v27 = vadd.f32 1.0, %v5300_v60  ;;  %v5302_v7 = vpop.eup %5301 }
 0x924   :  { %5305 = vrcp.f32 %v3160_v63  ;;  %v5304_v5 = vpop.eup %5303  ;;  %v3173_v15 = vadd.f32 1.0, %v5302_v7 }
 0x925   :  { %5307 = vrcp.f32 %v3166_v27 }
 0x926   :  { %5309 = vrcp.f32 %v3173_v15 }
 0x92e   :  { %v5306_v1 = vpop.eup %5305 }
 0x92f   :  { %v5308_v24 = vpop.eup %5307  ;;  %v3177_v0 = vmul.f32 %v5306_v1, %v5304_v5 }
 0x930   :  { %v3176_v49 = vmul.f32 %v5308_v24, %v6565_v52  ;;  %v5310_v32 = vpop.eup %5309 }
 0x932   :  { %v3178_v31 = vadd.f32 %v3177_v0, %v3176_v49 }
 0x934   :  { %5311 = vtanh.f32 %v3178_v31 }
 0x93e   :  { %v5312_v50 = vpop.eup %5311 }
 0x93f   :  { %v3180_v41 = vmul.f32 %v5312_v50, %v5310_v32 }
 0x941   :  { %3246 = vmatmul.mubr.f32.vlgmr.msra.gmra.mrb[30].mxu0 %v3180_v41  ;;  %3317 = vmatmul.mubr.f32.vlgmr.msra.gmra.mrb[30].mxu1 %v3180_v41 }
 0xa14   :  { %v3247_v56 = vpop.f32.mrb[30].mxu0  ;;  %v3318_v17 = vpop.f32.mrb[30].mxu1 }
 0xa15   :  { %v3248_v21 = vadd.f32 %v3247_v56, %v7308_v11  ;;  %v3249_v4 = vpop.f32.mrb[31].mxu0  ;;  %v3320_v10 = vpop.f32.mrb[31].mxu1  ;;  %v3319_v26 = vadd.f32 %v3318_v17, %v7011_v54 }
 0xa16   :  { %v3250_v42 = vadd.f32 %v3249_v4, %v7009_v18  ;;  %v3321_v52 = vadd.f32 %v3320_v10, %v7309_v39 }
 0xa17   :  { %v3454_v22 = vmul.f32 -1.442695, %v3248_v21 }
 0xa18   :  { %v3455_v45 = vmul.f32 -1.442695, %v3250_v42  ;;  %v3456_v23 = vmul.f32 -1.442695, %v3321_v52 }
 0xa19   :  { %5313 = vpow2.f32 %v3454_v22 }
 0xa1a   :  { %5315 = vpow2.f32 %v3455_v45 }
 0xa1b   :  { %5317 = vpow2.f32 %v3456_v23 }
 0xa1c   :  { %5319 = vtanh.f32 %v3319_v26 }
 0xa23   :  { %v5314_v30 = vpop.eup %5313 }
 0xa24   :  { %v5316_v35 = vpop.eup %5315  ;;  %v3326_v36 = vadd.f32 1.0, %v5314_v30 }
 0xa25   :  { %v3332_v43 = vadd.f32 1.0, %v5316_v35  ;;  %v5318_v11 = vpop.eup %5317 }
 0xa26   :  { %5321 = vrcp.f32 %v3326_v36  ;;  %v5320_v48 = vpop.eup %5319  ;;  %v3339_v59 = vadd.f32 1.0, %v5318_v11 }
 0xa27   :  { %5323 = vrcp.f32 %v3332_v43 }
 0xa28   :  { %5325 = vrcp.f32 %v3339_v59 }
 0xa30   :  { %v5322_v18 = vpop.eup %5321 }
 0xa31   :  { %v5324_v51 = vpop.eup %5323  ;;  %v3343_v55 = vmul.f32 %v5322_v18, %v5320_v48 }
 0xa32   :  { %v3342_v62 = vmul.f32 %v5324_v51, %v6669_v44  ;;  %v5326_v54 = vpop.eup %5325 }
 0xa34   :  { %v3344_v39 = vadd.f32 %v3343_v55, %v3342_v62 }
 0xa36   :  { %5327 = vtanh.f32 %v3344_v39 }
 0xa40   :  { %v5328_v3 = vpop.eup %5327 }
 0xa41   :  { %v3346_v9 = vmul.f32 %v5328_v3, %v5326_v54 }
 0xa43   :  { %v3361_v12 = vmul.f32 %v3457_v6, %v3346_v9 }
 0xa45   :  { %3362 = vadd.xlane.f32.xlu0 %v3361_v12 }
 0xad2   :  { %v3363_v20 = vpop.xlane.xlu0 %3362 }
 0xad3   :  { %v3371_v25 = vadd.f32 %v3458_v16, %v3363_v20 }
 0xad5   :  { %v3459_v29 = vmul.f32 -1.442695, %v3371_v25 }
 0xad7   :  { %5329 = vpow2.f32 %v3459_v29 }
 0xae1   :  { %v5330_v34 = vpop.eup %5329 }
 0xae2   :  { %v3375_v40 = vadd.f32 1.0, %v5330_v34 }
 0xae4   :  { %5331 = vrcp.f32 %v3375_v40 }
 0xaee   :  { %v5332_v44 = vpop.eup %5331 }
 0xaef   :  { %3379 = vst.msk [vmem:[%s6696_s8] sm:$0xff] %vm3378_vm1, %v5332_v44 }
 0xaf0   :  { %3384 = vsyncpa [#allocation9], 1 }
 0xaf1   :  { %3385 = vsyncpa [#allocation11], 1 }

</bundles_post_ra>
